<compile_context>
chip_gen: v7x
topology: tpu7x:2x2x1
jax: 0.10.0
libtpu: 0.0.40
codegen_flags: <defaults>
</compile_context>

<pallas_src>
import functools

import jax
import jax.numpy as jnp
from jax.experimental import pallas as pl
from jax.experimental.pallas import tpu as pltpu

LANES = 128          # channel padding target (one vreg lane width)
MAX_TM = 512         # GEMM row-tile (keeps VMEM bounded on v7x's 64 MiB too)
_BN_EPS = 1e-5


def _round_up(x, m):
    return (x + m - 1) // m * m


# ----------------------------- Pallas kernels ------------------------------

def _conv_gemm_kernel(a_relu, relu, has_bias, has_res, want_stats, *refs):
    """Fused GEMM: y = epilogue( relu?(a) @ b )  (+ optional column stats)."""
    it = iter(refs)
    a_ref = next(it)
    b_ref = next(it)
    bias_ref = next(it) if has_bias else None
    res_ref = next(it) if has_res else None
    y_ref = next(it)
    sum_ref = next(it) if want_stats else None
    sq_ref = next(it) if want_stats else None

    a = a_ref[...]
    if a_relu:                         # nn.ReLU() preceding the conv
        a = jnp.maximum(a, 0)
    y = jnp.dot(a, b_ref[...], preferred_element_type=jnp.float32)
    if has_bias:
        y = y + bias_ref[...]
    if has_res:
        y = y + res_ref[...].astype(jnp.float32)
    if relu:
        y = jnp.maximum(y, 0.0)
    y_ref[...] = y.astype(y_ref.dtype)
    if want_stats:
        # Per-tile partial sums for training-mode BatchNorm statistics;
        # broadcast over the 8-sublane output block (glue reads row 0).
        sum_ref[...] = jnp.broadcast_to(jnp.sum(y, axis=0, keepdims=True),
                                        sum_ref.shape)
        sq_ref[...] = jnp.broadcast_to(jnp.sum(y * y, axis=0, keepdims=True),
                                       sq_ref.shape)


def _affine_kernel(relu, has_res, *refs):
    """y = [relu]( x * scale + shift [+ residual] ) per channel."""
    it = iter(refs)
    x_ref = next(it)
    s_ref = next(it)
    t_ref = next(it)
    res_ref = next(it) if has_res else None
    o_ref = next(it)

    y = x_ref[...].astype(jnp.float32) * s_ref[...] + t_ref[...]
    if has_res:
        y = y + res_ref[...].astype(jnp.float32)
    if relu:
        y = jnp.maximum(y, 0.0)
    o_ref[...] = y.astype(o_ref.dtype)


_COMPILER_PARAMS = pltpu.CompilerParams(
    dimension_semantics=("parallel",),
    vmem_limit_bytes=32 * 1024 * 1024,
)


def fused_conv_gemm(a, b, *, bias=None, residual=None, relu=False,
                    a_relu=False, want_stats=False):
    """(M, K) @ (K, 128) with fused epilogue; tiled over M ('parallel')."""
    M, K = a.shape
    Kb, N = b.shape
    assert Kb == K and N == LANES
    tm = min(MAX_TM, _round_up(M, 16))
    Mp = _round_up(M, tm)
    if Mp != M:
        a = jnp.pad(a, ((0, Mp - M), (0, 0)))
        if residual is not None:
            residual = jnp.pad(residual, ((0, Mp - M), (0, 0)))
    nt = Mp // tm

    in_specs = [pl.BlockSpec((tm, K), lambda i: (i, 0)),
                pl.BlockSpec((K, N), lambda i: (0, 0))]
    args = [a, b]
    if bias is not None:
        in_specs.append(pl.BlockSpec((1, N), lambda i: (0, 0)))
        args.append(bias.astype(jnp.float32).reshape(1, N))
    if residual is not None:
        in_specs.append(pl.BlockSpec((tm, N), lambda i: (i, 0)))
        args.append(residual)

    out_shape = [jax.ShapeDtypeStruct((Mp, N), jnp.bfloat16)]
    out_specs = [pl.BlockSpec((tm, N), lambda i: (i, 0))]
    if want_stats:
        out_shape += [jax.ShapeDtypeStruct((nt * 8, N), jnp.float32)] * 2
        out_specs += [pl.BlockSpec((8, N), lambda i: (i, 0))] * 2

    kernel = functools.partial(_conv_gemm_kernel, a_relu, relu,
                               bias is not None, residual is not None,
                               want_stats)
    outs = pl.pallas_call(
        kernel,
        grid=(nt,),
        in_specs=in_specs,
        out_specs=tuple(out_specs) if want_stats else out_specs[0],
        out_shape=tuple(out_shape) if want_stats else out_shape[0],
        compiler_params=_COMPILER_PARAMS,
        cost_estimate=pl.CostEstimate(
            flops=2 * Mp * K * N, transcendentals=0,
            bytes_accessed=(Mp * K + K * N) * 2 + Mp * N * 2),
    )(*args)

    if want_stats:
        y, s8, q8 = outs
        s = jnp.sum(s8.reshape(nt, 8, N)[:, 0, :], axis=0, keepdims=True)
        q = jnp.sum(q8.reshape(nt, 8, N)[:, 0, :], axis=0, keepdims=True)
        return y[:M], (s, q)
    return outs[:M], None


def pallas_affine(x, scale, shift, *, residual=None, relu=False):
    """y = [relu](x*scale + shift [+ residual]), tiled over M ('parallel')."""
    M, N = x.shape
    assert N == LANES
    tm = min(MAX_TM, _round_up(M, 16))
    Mp = _round_up(M, tm)
    if Mp != M:
        x = jnp.pad(x, ((0, Mp - M), (0, 0)))
        if residual is not None:
            residual = jnp.pad(residual, ((0, Mp - M), (0, 0)))
    nt = Mp // tm

    in_specs = [pl.BlockSpec((tm, N), lambda i: (i, 0)),
                pl.BlockSpec((1, N), lambda i: (0, 0)),
                pl.BlockSpec((1, N), lambda i: (0, 0))]
    args = [x, scale.reshape(1, N).astype(jnp.float32),
            shift.reshape(1, N).astype(jnp.float32)]
    if residual is not None:
        in_specs.append(pl.BlockSpec((tm, N), lambda i: (i, 0)))
        args.append(residual)

    kernel = functools.partial(_affine_kernel, relu, residual is not None)
    y = pl.pallas_call(
        kernel,
        grid=(nt,),
        in_specs=in_specs,
        out_specs=pl.BlockSpec((tm, N), lambda i: (i, 0)),
        out_shape=jax.ShapeDtypeStruct((Mp, N), jnp.bfloat16),
        compiler_params=_COMPILER_PARAMS,
    )(*args)
    return y[:M]


# ------------------------------- JAX glue ----------------------------------

def _im2col(x, k, stride, pad):
    """x: (N,H,W,C) -> (N*Ho*Wo, k*k*C) patches, (ky, kx, c) fastest-last."""
    N, H, W, C = x.shape
    Ho = (H + 2 * pad - k) // stride + 1
    Wo = (W + 2 * pad - k) // stride + 1
    xp = jnp.pad(x, ((0, 0), (pad, pad), (pad, pad), (0, 0)))
    cols = []
    for ky in range(k):
        for kx in range(k):
            cols.append(xp[:, ky: ky + stride * (Ho - 1) + 1: stride,
                           kx: kx + stride * (Wo - 1) + 1: stride, :])
    patches = jnp.concatenate(cols, axis=-1)            # (N, Ho, Wo, k*k*C)
    return patches.reshape(N * Ho * Wo, k * k * C), (N, Ho, Wo)


def conv2d(x, w_mat, k, stride, pad, *, bias=None, residual=None,
           relu=False, a_relu=False, want_stats=False):
    """x: (N,H,W,LANES) bf16; w_mat: (k*k*LANES, LANES) bf16 -> NHWC bf16."""
    N, H, W, C = x.shape
    if k == 1 and stride == 1 and pad == 0:
        a, dims = x.reshape(-1, C), (N, H, W)
    else:
        # TODO(synk): build patches in-kernel (halo DMA) instead of
        # materializing the im2col matrix in HBM.
        a, dims = _im2col(x, k, stride, pad)
    res2 = residual.reshape(-1, LANES) if residual is not None else None
    y, stats = fused_conv_gemm(a, w_mat, bias=bias, residual=res2, relu=relu,
                               a_relu=a_relu, want_stats=want_stats)
    No, Ho, Wo = dims
    return y.reshape(No, Ho, Wo, LANES), stats


def _bn_scale_shift(stats, m, gamma, beta, eps=_BN_EPS):
    s, q = stats
    mean = s / m
    var = jnp.maximum(q / m - mean * mean, 0.0)     # guard fp cancellation
    scale = gamma / jnp.sqrt(var + eps)
    shift = beta - mean * scale
    return scale, shift


def conv_bn(x, w_mat, k, stride, pad, gamma, beta, *, relu=False,
            residual=None, a_relu=False):
    """conv -> training-mode BatchNorm2d [-> +residual] [-> ReLU]."""
    y, stats = conv2d(x, w_mat, k, stride, pad, a_relu=a_relu, want_stats=True)
    No, Ho, Wo, _ = y.shape
    m = No * Ho * Wo
    scale, shift = _bn_scale_shift(stats, m, gamma, beta)
    res2 = residual.reshape(-1, LANES) if residual is not None else None
    out = pallas_affine(y.reshape(-1, LANES), scale, shift,
                        residual=res2, relu=relu)
    return out.reshape(No, Ho, Wo, LANES)


# ----------------------------- parameter init ------------------------------

def _prep_w(key, cout, cin, k):
    """PyTorch-layout conv weight -> padded (k*k*128, 128) bf16 GEMM matrix."""
    assert cin <= LANES and cout <= LANES
    w = 0.1 * jax.random.normal(key, (cout, cin, k, k), jnp.float32)
    wm = jnp.transpose(w, (2, 3, 1, 0))                 # (ky, kx, cin, cout)
    wm = jnp.pad(wm, ((0, 0), (0, 0), (0, LANES - cin), (0, LANES - cout)))
    return wm.reshape(k * k * LANES, LANES).astype(jnp.bfloat16)


def _prep_b(key, c):
    b = 0.05 * jax.random.normal(key, (c,), jnp.float32)
    return jnp.pad(b, (0, LANES - c)).reshape(1, LANES)


def _prep_bn(key, c):
    k1, k2 = jax.random.split(key)
    gamma = 1.0 + 0.05 * jax.random.normal(k1, (c,), jnp.float32)
    beta = 0.05 * jax.random.normal(k2, (c,), jnp.float32)
    return (jnp.pad(gamma, (0, LANES - c)).reshape(1, LANES),
            jnp.pad(beta, (0, LANES - c)).reshape(1, LANES))


def build_encoder_params(plan, n_res_block, key):
    keys = iter(jax.random.split(key, 512))

    def bottleneck(inpl, outpl, stride):
        width = min(inpl, outpl, 32) // 2
        d = dict(stride=stride,
                 conv1=_prep_w(next(keys), width, inpl, 1),
                 bn1=_prep_bn(next(keys), width),
                 conv2=_prep_w(next(keys), width, width, 3),
                 bn2=_prep_bn(next(keys), width),
                 conv3=_prep_w(next(keys), outpl, width, 1),
                 bn3=_prep_bn(next(keys), outpl))
        if stride > 1:
            # Conv2d(in,out,4,2,1): its bias is exactly cancelled by the
            # following training-mode BatchNorm -> dropped (no-op).
            d['res_type'] = 'down'
            d['res_w'] = _prep_w(next(keys), outpl, inpl, 4)
            d['res_bn'] = _prep_bn(next(keys), outpl)
        elif inpl != outpl:
            d['res_type'] = 'proj'
            d['res_w'] = _prep_w(next(keys), outpl, inpl, 1)
            d['res_bn'] = _prep_bn(next(keys), outpl)
        else:
            d['res_type'] = 'id'
        return d

    params = dict(
        # stem conv bias is cancelled by the training-mode BN -> dropped.
        stem_w=_prep_w(next(keys), plan[1], plan[0], 4),
        stem_bn=_prep_bn(next(keys), plan[1]),
        bottlenecks=[],
        resblocks=[],
        final_w=_prep_w(next(keys), plan[-1], plan[-1], 3),
    )
    for i, o in zip(plan[1:-1], plan[2:]):
        params['bottlenecks'].append(bottleneck(i, o, 2))
        params['bottlenecks'].append(bottleneck(o, o, 1))
    ch, mid = plan[-1], plan[-1] // 2
    for _ in range(n_res_block):
        params['resblocks'].append(dict(
            w1=_prep_w(next(keys), mid, ch, 3), b1=_prep_b(next(keys), mid),
            w2=_prep_w(next(keys), ch, mid, 1), b2=_prep_b(next(keys), ch)))
    return params


# ------------------------------ forward pass --------------------------------

def bottleneck_forward(p, x):
    stride = p['stride']
    if p['res_type'] == 'down':
        idn = conv_bn(x, p['res_w'], 4, 2, 1, *p['res_bn'])
    elif p['res_type'] == 'proj':
        idn = conv_bn(x, p['res_w'], 1, 1, 0, *p['res_bn'])
    else:
        idn = x
    out = conv_bn(x, p['conv1'], 1, 1, 0, *p['bn1'], relu=True)
    out = conv_bn(out, p['conv2'], 3, stride, 1, *p['bn2'], relu=True)
    # bn3 + residual add + relu fused into the single affine pass.
    out = conv_bn(out, p['conv3'], 1, 1, 0, *p['bn3'], relu=True, residual=idn)
    return out


def resblock_forward(p, x):
    # nn.ReLU() on the block input is fused into the first GEMM (a_relu);
    # bias/ReLU and bias/residual are fused into the GEMM epilogues.
    h, _ = conv2d(x, p['w1'], 3, 1, 1, bias=p['b1'], relu=True, a_relu=True)
    h, _ = conv2d(h, p['w2'], 1, 1, 0, bias=p['b2'], residual=x)
    return h


def encoder_forward(params, x_nchw, out_channels):
    x = jnp.transpose(x_nchw, (0, 2, 3, 1)).astype(jnp.float32)   # -> NHWC
    N, H, W, C = x.shape
    x = jnp.pad(x, ((0, 0), (0, 0), (0, 0), (0, LANES - C))).astype(jnp.bfloat16)
    # stem: Conv2d(plan0, plan1, 4, s2, p1) + BatchNorm2d + ReLU
    x = conv_bn(x, params['stem_w'], 4, 2, 1, *params['stem_bn'], relu=True)
    for bp in params['bottlenecks']:
        x = bottleneck_forward(bp, x)
    for rp in params['resblocks']:
        x = resblock_forward(rp, x)
    # final Conv2d(plan[-1], plan[-1], 3, padding=1, bias=False)
    x, _ = conv2d(x, params['final_w'], 3, 1, 1)
    y = x[..., :out_channels].astype(jnp.float32)
    return jnp.transpose(y, (0, 3, 1, 2))                          # -> NCHW


# ---------------------------------- main ------------------------------------

if __name__ == "__main__":
    plan = [4, 8, 16]
    n_res_block = 1

    key = jax.random.PRNGKey(0)
    pkey, xkey = jax.random.split(key)
    params = build_encoder_params(plan, n_res_block, pkey)

    x = jax.random.normal(xkey, (2, plan[0], 16, 16), jnp.float32)

    fwd = jax.jit(functools.partial(encoder_forward, params,
                                    out_channels=plan[-1]))
    y = jax.block_until_ready(fwd(x))

    # 16x16 -> stem /2 -> 8x8 -> bottleneck /2 -> 4x4
    assert y.shape == (2, plan[-1], 4, 4), y.shape
    assert jnp.isfinite(y).all()
    print("KERNEL_OK")
</pallas_src>

<mosaic_0001>
module attributes {stable_mosaic.version = 11 : i64} {
  func.func @_conv_gemm_kernel(%arg0: i32, %arg1: memref<128x2048xbf16, #tpu.memory_space<vmem>>, %arg2: memref<2048x128xbf16, #tpu.memory_space<vmem>>, %arg3: memref<128x128xbf16, #tpu.memory_space<vmem>>, %arg4: memref<8x128xf32, #tpu.memory_space<vmem>>, %arg5: memref<8x128xf32, #tpu.memory_space<vmem>>) attributes {dimension_semantics = [#tpu.dimension_semantics<parallel>], iteration_bounds = array<i64: 1>, scalar_prefetch = 0 : i64, scratch_operands = 0 : i64, tpu.core_type = #tpu.core_type<tc>, window_params = [{transform_indices = @transform_0, window_bounds = array<i64: 128, 2048>}, {pipeline_mode = #tpu.pipeline_mode<synchronous>, transform_indices = @transform_1, window_bounds = array<i64: 2048, 128>}, {transform_indices = @transform_2, window_bounds = array<i64: 128, 128>}, {transform_indices = @transform_3, window_bounds = array<i64: 8, 128>}, {transform_indices = @transform_4, window_bounds = array<i64: 8, 128>}]} {
    %c0 = arith.constant 0 : index
    %c0_0 = arith.constant 0 : index
    %0 = vector.load %arg1[%c0, %c0_0] : memref<128x2048xbf16, #tpu.memory_space<vmem>>, vector<128x2048xbf16>
    %c0_1 = arith.constant 0 : index
    %c0_2 = arith.constant 0 : index
    %1 = vector.load %arg2[%c0_1, %c0_2] : memref<2048x128xbf16, #tpu.memory_space<vmem>>, vector<2048x128xbf16>
    %cst = arith.constant dense<0.000000e+00> : vector<128x128xf32>
    %2 = tpu.matmul %0, %1, %cst {dimension_numbers = #tpu.dot_dimension_numbers<[1], [0], [0], [1], [0, 0, 1, 1], [], []>} : vector<128x2048xbf16>, vector<2048x128xbf16>, vector<128x128xf32> -> vector<128x128xf32>
    %3 = arith.truncf %2 : vector<128x128xf32> to vector<128x128xbf16>
    %c0_3 = arith.constant 0 : index
    %c0_4 = arith.constant 0 : index
    %4 = vector.load %arg3[%c0_3, %c0_4] : memref<128x128xbf16, #tpu.memory_space<vmem>>, vector<128x128xbf16>
    tpu.vector_store %arg3[%c0_3, %c0_4], %3 {strides = array<i32>} : memref<128x128xbf16, #tpu.memory_space<vmem>>, vector<128x128xbf16>,
    %cst_5 = arith.constant dense<0.000000e+00> : vector<128xf32>
    %5 = vector.multi_reduction <add>, %2, %cst_5 [0] : vector<128x128xf32> to vector<128xf32>
    %6 = vector.shape_cast %5 : vector<128xf32> to vector<1x128xf32>
    %7 = vector.shape_cast %6 : vector<1x128xf32> to vector<1x128xf32>
    %8 = vector.broadcast %7 : vector<1x128xf32> to vector<8x128xf32>
    %c0_6 = arith.constant 0 : index
    %c0_7 = arith.constant 0 : index
    %9 = vector.load %arg4[%c0_6, %c0_7] : memref<8x128xf32, #tpu.memory_space<vmem>>, vector<8x128xf32>
    tpu.vector_store %arg4[%c0_6, %c0_7], %8 {strides = array<i32>} : memref<8x128xf32, #tpu.memory_space<vmem>>, vector<8x128xf32>,
    %10 = arith.mulf %2, %2 : vector<128x128xf32>
    %cst_8 = arith.constant dense<0.000000e+00> : vector<128xf32>
    %11 = vector.multi_reduction <add>, %10, %cst_8 [0] : vector<128x128xf32> to vector<128xf32>
    %12 = vector.shape_cast %11 : vector<128xf32> to vector<1x128xf32>
    %13 = vector.shape_cast %12 : vector<1x128xf32> to vector<1x128xf32>
    %14 = vector.broadcast %13 : vector<1x128xf32> to vector<8x128xf32>
    %c0_9 = arith.constant 0 : index
    %c0_10 = arith.constant 0 : index
    %15 = vector.load %arg5[%c0_9, %c0_10] : memref<8x128xf32, #tpu.memory_space<vmem>>, vector<8x128xf32>
    tpu.vector_store %arg5[%c0_9, %c0_10], %14 {strides = array<i32>} : memref<8x128xf32, #tpu.memory_space<vmem>>, vector<8x128xf32>,
    return
  }
  func.func @transform_0(%arg0: i32) -> (i32, i32) {
    %c0_i32 = arith.constant 0 : i32
    %c0_i32_0 = arith.constant 0 : i32
    return %arg0, %c0_i32 : i32, i32
  }
  func.func @transform_1(%arg0: i32) -> (i32, i32) {
    %c0_i32 = arith.constant 0 : i32
    %c0_i32_0 = arith.constant 0 : i32
    %c0_i32_1 = arith.constant 0 : i32
    return %c0_i32, %c0_i32_0 : i32, i32
  }
  func.func @transform_2(%arg0: i32) -> (i32, i32) {
    %c0_i32 = arith.constant 0 : i32
    %c0_i32_0 = arith.constant 0 : i32
    return %arg0, %c0_i32 : i32, i32
  }
  func.func @transform_3(%arg0: i32) -> (i32, i32) {
    %c0_i32 = arith.constant 0 : i32
    %c0_i32_0 = arith.constant 0 : i32
    return %arg0, %c0_i32 : i32, i32
  }
  func.func @transform_4(%arg0: i32) -> (i32, i32) {
    %c0_i32 = arith.constant 0 : i32
    %c0_i32_0 = arith.constant 0 : i32
    return %arg0, %c0_i32 : i32, i32
  }
}

module attributes {stable_mosaic.version = 11 : i64} {
  func.func @_affine_kernel(%arg0: i32, %arg1: memref<128x128xbf16, #tpu.memory_space<vmem>>, %arg2: memref<1x128xf32, #tpu.memory_space<vmem>>, %arg3: memref<1x128xf32, #tpu.memory_space<vmem>>, %arg4: memref<128x128xbf16, #tpu.memory_space<vmem>>) attributes {dimension_semantics = [#tpu.dimension_semantics<parallel>], iteration_bounds = array<i64: 1>, scalar_prefetch = 0 : i64, scratch_operands = 0 : i64, tpu.core_type = #tpu.core_type<tc>, window_params = [{transform_indices = @transform_0, window_bounds = array<i64: 128, 128>}, {pipeline_mode = #tpu.pipeline_mode<synchronous>, transform_indices = @transform_1, window_bounds = array<i64: 1, 128>}, {pipeline_mode = #tpu.pipeline_mode<synchronous>, transform_indices = @transform_2, window_bounds = array<i64: 1, 128>}, {transform_indices = @transform_3, window_bounds = array<i64: 128, 128>}]} {
    %c0 = arith.constant 0 : index
    %c0_0 = arith.constant 0 : index
    %0 = vector.load %arg1[%c0, %c0_0] : memref<128x128xbf16, #tpu.memory_space<vmem>>, vector<128x128xbf16>
    %1 = arith.extf %0 : vector<128x128xbf16> to vector<128x128xf32>
    %c0_1 = arith.constant 0 : index
    %c0_2 = arith.constant 0 : index
    %2 = vector.load %arg2[%c0_1, %c0_2] : memref<1x128xf32, #tpu.memory_space<vmem>>, vector<1x128xf32>
    %3 = vector.broadcast %2 : vector<1x128xf32> to vector<128x128xf32>
    %4 = arith.mulf %1, %3 : vector<128x128xf32>
    %c0_3 = arith.constant 0 : index
    %c0_4 = arith.constant 0 : index
    %5 = vector.load %arg3[%c0_3, %c0_4] : memref<1x128xf32, #tpu.memory_space<vmem>>, vector<1x128xf32>
    %6 = vector.broadcast %5 : vector<1x128xf32> to vector<128x128xf32>
    %7 = arith.addf %4, %6 : vector<128x128xf32>
    %cst = arith.constant 0.000000e+00 : f32
    %8 = vector.broadcast %cst : f32 to vector<128x128xf32>
    %9 = arith.maximumf %7, %8 : vector<128x128xf32>
    %10 = arith.truncf %9 : vector<128x128xf32> to vector<128x128xbf16>
    %c0_5 = arith.constant 0 : index
    %c0_6 = arith.constant 0 : index
    %11 = vector.load %arg4[%c0_5, %c0_6] : memref<128x128xbf16, #tpu.memory_space<vmem>>, vector<128x128xbf16>
    tpu.vector_store %arg4[%c0_5, %c0_6], %10 {strides = array<i32>} : memref<128x128xbf16, #tpu.memory_space<vmem>>, vector<128x128xbf16>,
    return
  }
  func.func @transform_0(%arg0: i32) -> (i32, i32) {
    %c0_i32 = arith.constant 0 : i32
    %c0_i32_0 = arith.constant 0 : i32
    return %arg0, %c0_i32 : i32, i32
  }
  func.func @transform_1(%arg0: i32) -> (i32, i32) {
    %c0_i32 = arith.constant 0 : i32
    %c0_i32_0 = arith.constant 0 : i32
    %c0_i32_1 = arith.constant 0 : i32
    return %c0_i32, %c0_i32_0 : i32, i32
  }
  func.func @transform_2(%arg0: i32) -> (i32, i32) {
    %c0_i32 = arith.constant 0 : i32
    %c0_i32_0 = arith.constant 0 : i32
    %c0_i32_1 = arith.constant 0 : i32
    return %c0_i32, %c0_i32_0 : i32, i32
  }
  func.func @transform_3(%arg0: i32) -> (i32, i32) {
    %c0_i32 = arith.constant 0 : i32
    %c0_i32_0 = arith.constant 0 : i32
    return %arg0, %c0_i32 : i32, i32
  }
}

module attributes {stable_mosaic.version = 11 : i64} {
  func.func @_conv_gemm_kernel(%arg0: i32, %arg1: memref<32x2048xbf16, #tpu.memory_space<vmem>>, %arg2: memref<2048x128xbf16, #tpu.memory_space<vmem>>, %arg3: memref<32x128xbf16, #tpu.memory_space<vmem>>, %arg4: memref<8x128xf32, #tpu.memory_space<vmem>>, %arg5: memref<8x128xf32, #tpu.memory_space<vmem>>) attributes {dimension_semantics = [#tpu.dimension_semantics<parallel>], iteration_bounds = array<i64: 1>, scalar_prefetch = 0 : i64, scratch_operands = 0 : i64, tpu.core_type = #tpu.core_type<tc>, window_params = [{transform_indices = @transform_0, window_bounds = array<i64: 32, 2048>}, {pipeline_mode = #tpu.pipeline_mode<synchronous>, transform_indices = @transform_1, window_bounds = array<i64: 2048, 128>}, {transform_indices = @transform_2, window_bounds = array<i64: 32, 128>}, {transform_indices = @transform_3, window_bounds = array<i64: 8, 128>}, {transform_indices = @transform_4, window_bounds = array<i64: 8, 128>}]} {
    %c0 = arith.constant 0 : index
    %c0_0 = arith.constant 0 : index
    %0 = vector.load %arg1[%c0, %c0_0] : memref<32x2048xbf16, #tpu.memory_space<vmem>>, vector<32x2048xbf16>
    %c0_1 = arith.constant 0 : index
    %c0_2 = arith.constant 0 : index
    %1 = vector.load %arg2[%c0_1, %c0_2] : memref<2048x128xbf16, #tpu.memory_space<vmem>>, vector<2048x128xbf16>
    %cst = arith.constant dense<0.000000e+00> : vector<32x128xf32>
    %2 = tpu.matmul %0, %1, %cst {dimension_numbers = #tpu.dot_dimension_numbers<[1], [0], [0], [1], [0, 0, 1, 1], [], []>} : vector<32x2048xbf16>, vector<2048x128xbf16>, vector<32x128xf32> -> vector<32x128xf32>
    %3 = arith.truncf %2 : vector<32x128xf32> to vector<32x128xbf16>
    %c0_3 = arith.constant 0 : index
    %c0_4 = arith.constant 0 : index
    %4 = vector.load %arg3[%c0_3, %c0_4] : memref<32x128xbf16, #tpu.memory_space<vmem>>, vector<32x128xbf16>
    tpu.vector_store %arg3[%c0_3, %c0_4], %3 {strides = array<i32>} : memref<32x128xbf16, #tpu.memory_space<vmem>>, vector<32x128xbf16>,
    %cst_5 = arith.constant dense<0.000000e+00> : vector<128xf32>
    %5 = vector.multi_reduction <add>, %2, %cst_5 [0] : vector<32x128xf32> to vector<128xf32>
    %6 = vector.shape_cast %5 : vector<128xf32> to vector<1x128xf32>
    %7 = vector.shape_cast %6 : vector<1x128xf32> to vector<1x128xf32>
    %8 = vector.broadcast %7 : vector<1x128xf32> to vector<8x128xf32>
    %c0_6 = arith.constant 0 : index
    %c0_7 = arith.constant 0 : index
    %9 = vector.load %arg4[%c0_6, %c0_7] : memref<8x128xf32, #tpu.memory_space<vmem>>, vector<8x128xf32>
    tpu.vector_store %arg4[%c0_6, %c0_7], %8 {strides = array<i32>} : memref<8x128xf32, #tpu.memory_space<vmem>>, vector<8x128xf32>,
    %10 = arith.mulf %2, %2 : vector<32x128xf32>
    %cst_8 = arith.constant dense<0.000000e+00> : vector<128xf32>
    %11 = vector.multi_reduction <add>, %10, %cst_8 [0] : vector<32x128xf32> to vector<128xf32>
    %12 = vector.shape_cast %11 : vector<128xf32> to vector<1x128xf32>
    %13 = vector.shape_cast %12 : vector<1x128xf32> to vector<1x128xf32>
    %14 = vector.broadcast %13 : vector<1x128xf32> to vector<8x128xf32>
    %c0_9 = arith.constant 0 : index
    %c0_10 = arith.constant 0 : index
    %15 = vector.load %arg5[%c0_9, %c0_10] : memref<8x128xf32, #tpu.memory_space<vmem>>, vector<8x128xf32>
    tpu.vector_store %arg5[%c0_9, %c0_10], %14 {strides = array<i32>} : memref<8x128xf32, #tpu.memory_space<vmem>>, vector<8x128xf32>,
    return
  }
  func.func @transform_0(%arg0: i32) -> (i32, i32) {
    %c0_i32 = arith.constant 0 : i32
    %c0_i32_0 = arith.constant 0 : i32
    return %arg0, %c0_i32 : i32, i32
  }
  func.func @transform_1(%arg0: i32) -> (i32, i32) {
    %c0_i32 = arith.constant 0 : i32
    %c0_i32_0 = arith.constant 0 : i32
    %c0_i32_1 = arith.constant 0 : i32
    return %c0_i32, %c0_i32_0 : i32, i32
  }
  func.func @transform_2(%arg0: i32) -> (i32, i32) {
    %c0_i32 = arith.constant 0 : i32
    %c0_i32_0 = arith.constant 0 : i32
    return %arg0, %c0_i32 : i32, i32
  }
  func.func @transform_3(%arg0: i32) -> (i32, i32) {
    %c0_i32 = arith.constant 0 : i32
    %c0_i32_0 = arith.constant 0 : i32
    return %arg0, %c0_i32 : i32, i32
  }
  func.func @transform_4(%arg0: i32) -> (i32, i32) {
    %c0_i32 = arith.constant 0 : i32
    %c0_i32_0 = arith.constant 0 : i32
    return %arg0, %c0_i32 : i32, i32
  }
}

module attributes {stable_mosaic.version = 11 : i64} {
  func.func @_affine_kernel(%arg0: i32, %arg1: memref<32x128xbf16, #tpu.memory_space<vmem>>, %arg2: memref<1x128xf32, #tpu.memory_space<vmem>>, %arg3: memref<1x128xf32, #tpu.memory_space<vmem>>, %arg4: memref<32x128xbf16, #tpu.memory_space<vmem>>) attributes {dimension_semantics = [#tpu.dimension_semantics<parallel>], iteration_bounds = array<i64: 1>, scalar_prefetch = 0 : i64, scratch_operands = 0 : i64, tpu.core_type = #tpu.core_type<tc>, window_params = [{transform_indices = @transform_0, window_bounds = array<i64: 32, 128>}, {pipeline_mode = #tpu.pipeline_mode<synchronous>, transform_indices = @transform_1, window_bounds = array<i64: 1, 128>}, {pipeline_mode = #tpu.pipeline_mode<synchronous>, transform_indices = @transform_2, window_bounds = array<i64: 1, 128>}, {transform_indices = @transform_3, window_bounds = array<i64: 32, 128>}]} {
    %c0 = arith.constant 0 : index
    %c0_0 = arith.constant 0 : index
    %0 = vector.load %arg1[%c0, %c0_0] : memref<32x128xbf16, #tpu.memory_space<vmem>>, vector<32x128xbf16>
    %1 = arith.extf %0 : vector<32x128xbf16> to vector<32x128xf32>
    %c0_1 = arith.constant 0 : index
    %c0_2 = arith.constant 0 : index
    %2 = vector.load %arg2[%c0_1, %c0_2] : memref<1x128xf32, #tpu.memory_space<vmem>>, vector<1x128xf32>
    %3 = vector.broadcast %2 : vector<1x128xf32> to vector<32x128xf32>
    %4 = arith.mulf %1, %3 : vector<32x128xf32>
    %c0_3 = arith.constant 0 : index
    %c0_4 = arith.constant 0 : index
    %5 = vector.load %arg3[%c0_3, %c0_4] : memref<1x128xf32, #tpu.memory_space<vmem>>, vector<1x128xf32>
    %6 = vector.broadcast %5 : vector<1x128xf32> to vector<32x128xf32>
    %7 = arith.addf %4, %6 : vector<32x128xf32>
    %8 = arith.truncf %7 : vector<32x128xf32> to vector<32x128xbf16>
    %c0_5 = arith.constant 0 : index
    %c0_6 = arith.constant 0 : index
    %9 = vector.load %arg4[%c0_5, %c0_6] : memref<32x128xbf16, #tpu.memory_space<vmem>>, vector<32x128xbf16>
    tpu.vector_store %arg4[%c0_5, %c0_6], %8 {strides = array<i32>} : memref<32x128xbf16, #tpu.memory_space<vmem>>, vector<32x128xbf16>,
    return
  }
  func.func @transform_0(%arg0: i32) -> (i32, i32) {
    %c0_i32 = arith.constant 0 : i32
    %c0_i32_0 = arith.constant 0 : i32
    return %arg0, %c0_i32 : i32, i32
  }
  func.func @transform_1(%arg0: i32) -> (i32, i32) {
    %c0_i32 = arith.constant 0 : i32
    %c0_i32_0 = arith.constant 0 : i32
    %c0_i32_1 = arith.constant 0 : i32
    return %c0_i32, %c0_i32_0 : i32, i32
  }
  func.func @transform_2(%arg0: i32) -> (i32, i32) {
    %c0_i32 = arith.constant 0 : i32
    %c0_i32_0 = arith.constant 0 : i32
    %c0_i32_1 = arith.constant 0 : i32
    return %c0_i32, %c0_i32_0 : i32, i32
  }
  func.func @transform_3(%arg0: i32) -> (i32, i32) {
    %c0_i32 = arith.constant 0 : i32
    %c0_i32_0 = arith.constant 0 : i32
    return %arg0, %c0_i32 : i32, i32
  }
}

module attributes {stable_mosaic.version = 11 : i64} {
  func.func @_conv_gemm_kernel(%arg0: i32, %arg1: memref<128x128xbf16, #tpu.memory_space<vmem>>, %arg2: memref<128x128xbf16, #tpu.memory_space<vmem>>, %arg3: memref<128x128xbf16, #tpu.memory_space<vmem>>, %arg4: memref<8x128xf32, #tpu.memory_space<vmem>>, %arg5: memref<8x128xf32, #tpu.memory_space<vmem>>) attributes {dimension_semantics = [#tpu.dimension_semantics<parallel>], iteration_bounds = array<i64: 1>, scalar_prefetch = 0 : i64, scratch_operands = 0 : i64, tpu.core_type = #tpu.core_type<tc>, window_params = [{transform_indices = @transform_0, window_bounds = array<i64: 128, 128>}, {pipeline_mode = #tpu.pipeline_mode<synchronous>, transform_indices = @transform_1, window_bounds = array<i64: 128, 128>}, {transform_indices = @transform_2, window_bounds = array<i64: 128, 128>}, {transform_indices = @transform_3, window_bounds = array<i64: 8, 128>}, {transform_indices = @transform_4, window_bounds = array<i64: 8, 128>}]} {
    %c0 = arith.constant 0 : index
    %c0_0 = arith.constant 0 : index
    %0 = vector.load %arg1[%c0, %c0_0] : memref<128x128xbf16, #tpu.memory_space<vmem>>, vector<128x128xbf16>
    %c0_1 = arith.constant 0 : index
    %c0_2 = arith.constant 0 : index
    %1 = vector.load %arg2[%c0_1, %c0_2] : memref<128x128xbf16, #tpu.memory_space<vmem>>, vector<128x128xbf16>
    %cst = arith.constant dense<0.000000e+00> : vector<128x128xf32>
    %2 = tpu.matmul %0, %1, %cst {dimension_numbers = #tpu.dot_dimension_numbers<[1], [0], [0], [1], [0, 0, 1, 1], [], []>} : vector<128x128xbf16>, vector<128x128xbf16>, vector<128x128xf32> -> vector<128x128xf32>
    %3 = arith.truncf %2 : vector<128x128xf32> to vector<128x128xbf16>
    %c0_3 = arith.constant 0 : index
    %c0_4 = arith.constant 0 : index
    %4 = vector.load %arg3[%c0_3, %c0_4] : memref<128x128xbf16, #tpu.memory_space<vmem>>, vector<128x128xbf16>
    tpu.vector_store %arg3[%c0_3, %c0_4], %3 {strides = array<i32>} : memref<128x128xbf16, #tpu.memory_space<vmem>>, vector<128x128xbf16>,
    %cst_5 = arith.constant dense<0.000000e+00> : vector<128xf32>
    %5 = vector.multi_reduction <add>, %2, %cst_5 [0] : vector<128x128xf32> to vector<128xf32>
    %6 = vector.shape_cast %5 : vector<128xf32> to vector<1x128xf32>
    %7 = vector.shape_cast %6 : vector<1x128xf32> to vector<1x128xf32>
    %8 = vector.broadcast %7 : vector<1x128xf32> to vector<8x128xf32>
    %c0_6 = arith.constant 0 : index
    %c0_7 = arith.constant 0 : index
    %9 = vector.load %arg4[%c0_6, %c0_7] : memref<8x128xf32, #tpu.memory_space<vmem>>, vector<8x128xf32>
    tpu.vector_store %arg4[%c0_6, %c0_7], %8 {strides = array<i32>} : memref<8x128xf32, #tpu.memory_space<vmem>>, vector<8x128xf32>,
    %10 = arith.mulf %2, %2 : vector<128x128xf32>
    %cst_8 = arith.constant dense<0.000000e+00> : vector<128xf32>
    %11 = vector.multi_reduction <add>, %10, %cst_8 [0] : vector<128x128xf32> to vector<128xf32>
    %12 = vector.shape_cast %11 : vector<128xf32> to vector<1x128xf32>
    %13 = vector.shape_cast %12 : vector<1x128xf32> to vector<1x128xf32>
    %14 = vector.broadcast %13 : vector<1x128xf32> to vector<8x128xf32>
    %c0_9 = arith.constant 0 : index
    %c0_10 = arith.constant 0 : index
    %15 = vector.load %arg5[%c0_9, %c0_10] : memref<8x128xf32, #tpu.memory_space<vmem>>, vector<8x128xf32>
    tpu.vector_store %arg5[%c0_9, %c0_10], %14 {strides = array<i32>} : memref<8x128xf32, #tpu.memory_space<vmem>>, vector<8x128xf32>,
    return
  }
  func.func @transform_0(%arg0: i32) -> (i32, i32) {
    %c0_i32 = arith.constant 0 : i32
    %c0_i32_0 = arith.constant 0 : i32
    return %arg0, %c0_i32 : i32, i32
  }
  func.func @transform_1(%arg0: i32) -> (i32, i32) {
    %c0_i32 = arith.constant 0 : i32
    %c0_i32_0 = arith.constant 0 : i32
    %c0_i32_1 = arith.constant 0 : i32
    return %c0_i32, %c0_i32_0 : i32, i32
  }
  func.func @transform_2(%arg0: i32) -> (i32, i32) {
    %c0_i32 = arith.constant 0 : i32
    %c0_i32_0 = arith.constant 0 : i32
    return %arg0, %c0_i32 : i32, i32
  }
  func.func @transform_3(%arg0: i32) -> (i32, i32) {
    %c0_i32 = arith.constant 0 : i32
    %c0_i32_0 = arith.constant 0 : i32
    return %arg0, %c0_i32 : i32, i32
  }
  func.func @transform_4(%arg0: i32) -> (i32, i32) {
    %c0_i32 = arith.constant 0 : i32
    %c0_i32_0 = arith.constant 0 : i32
    return %arg0, %c0_i32 : i32, i32
  }
}

module attributes {stable_mosaic.version = 11 : i64} {
  func.func @_conv_gemm_kernel(%arg0: i32, %arg1: memref<32x1152xbf16, #tpu.memory_space<vmem>>, %arg2: memref<1152x128xbf16, #tpu.memory_space<vmem>>, %arg3: memref<32x128xbf16, #tpu.memory_space<vmem>>, %arg4: memref<8x128xf32, #tpu.memory_space<vmem>>, %arg5: memref<8x128xf32, #tpu.memory_space<vmem>>) attributes {dimension_semantics = [#tpu.dimension_semantics<parallel>], iteration_bounds = array<i64: 1>, scalar_prefetch = 0 : i64, scratch_operands = 0 : i64, tpu.core_type = #tpu.core_type<tc>, window_params = [{transform_indices = @transform_0, window_bounds = array<i64: 32, 1152>}, {pipeline_mode = #tpu.pipeline_mode<synchronous>, transform_indices = @transform_1, window_bounds = array<i64: 1152, 128>}, {transform_indices = @transform_2, window_bounds = array<i64: 32, 128>}, {transform_indices = @transform_3, window_bounds = array<i64: 8, 128>}, {transform_indices = @transform_4, window_bounds = array<i64: 8, 128>}]} {
    %c0 = arith.constant 0 : index
    %c0_0 = arith.constant 0 : index
    %0 = vector.load %arg1[%c0, %c0_0] : memref<32x1152xbf16, #tpu.memory_space<vmem>>, vector<32x1152xbf16>
    %c0_1 = arith.constant 0 : index
    %c0_2 = arith.constant 0 : index
    %1 = vector.load %arg2[%c0_1, %c0_2] : memref<1152x128xbf16, #tpu.memory_space<vmem>>, vector<1152x128xbf16>
    %cst = arith.constant dense<0.000000e+00> : vector<32x128xf32>
    %2 = tpu.matmul %0, %1, %cst {dimension_numbers = #tpu.dot_dimension_numbers<[1], [0], [0], [1], [0, 0, 1, 1], [], []>} : vector<32x1152xbf16>, vector<1152x128xbf16>, vector<32x128xf32> -> vector<32x128xf32>
    %3 = arith.truncf %2 : vector<32x128xf32> to vector<32x128xbf16>
    %c0_3 = arith.constant 0 : index
    %c0_4 = arith.constant 0 : index
    %4 = vector.load %arg3[%c0_3, %c0_4] : memref<32x128xbf16, #tpu.memory_space<vmem>>, vector<32x128xbf16>
    tpu.vector_store %arg3[%c0_3, %c0_4], %3 {strides = array<i32>} : memref<32x128xbf16, #tpu.memory_space<vmem>>, vector<32x128xbf16>,
    %cst_5 = arith.constant dense<0.000000e+00> : vector<128xf32>
    %5 = vector.multi_reduction <add>, %2, %cst_5 [0] : vector<32x128xf32> to vector<128xf32>
    %6 = vector.shape_cast %5 : vector<128xf32> to vector<1x128xf32>
    %7 = vector.shape_cast %6 : vector<1x128xf32> to vector<1x128xf32>
    %8 = vector.broadcast %7 : vector<1x128xf32> to vector<8x128xf32>
    %c0_6 = arith.constant 0 : index
    %c0_7 = arith.constant 0 : index
    %9 = vector.load %arg4[%c0_6, %c0_7] : memref<8x128xf32, #tpu.memory_space<vmem>>, vector<8x128xf32>
    tpu.vector_store %arg4[%c0_6, %c0_7], %8 {strides = array<i32>} : memref<8x128xf32, #tpu.memory_space<vmem>>, vector<8x128xf32>,
    %10 = arith.mulf %2, %2 : vector<32x128xf32>
    %cst_8 = arith.constant dense<0.000000e+00> : vector<128xf32>
    %11 = vector.multi_reduction <add>, %10, %cst_8 [0] : vector<32x128xf32> to vector<128xf32>
    %12 = vector.shape_cast %11 : vector<128xf32> to vector<1x128xf32>
    %13 = vector.shape_cast %12 : vector<1x128xf32> to vector<1x128xf32>
    %14 = vector.broadcast %13 : vector<1x128xf32> to vector<8x128xf32>
    %c0_9 = arith.constant 0 : index
    %c0_10 = arith.constant 0 : index
    %15 = vector.load %arg5[%c0_9, %c0_10] : memref<8x128xf32, #tpu.memory_space<vmem>>, vector<8x128xf32>
    tpu.vector_store %arg5[%c0_9, %c0_10], %14 {strides = array<i32>} : memref<8x128xf32, #tpu.memory_space<vmem>>, vector<8x128xf32>,
    return
  }
  func.func @transform_0(%arg0: i32) -> (i32, i32) {
    %c0_i32 = arith.constant 0 : i32
    %c0_i32_0 = arith.constant 0 : i32
    return %arg0, %c0_i32 : i32, i32
  }
  func.func @transform_1(%arg0: i32) -> (i32, i32) {
    %c0_i32 = arith.constant 0 : i32
    %c0_i32_0 = arith.constant 0 : i32
    %c0_i32_1 = arith.constant 0 : i32
    return %c0_i32, %c0_i32_0 : i32, i32
  }
  func.func @transform_2(%arg0: i32) -> (i32, i32) {
    %c0_i32 = arith.constant 0 : i32
    %c0_i32_0 = arith.constant 0 : i32
    return %arg0, %c0_i32 : i32, i32
  }
  func.func @transform_3(%arg0: i32) -> (i32, i32) {
    %c0_i32 = arith.constant 0 : i32
    %c0_i32_0 = arith.constant 0 : i32
    return %arg0, %c0_i32 : i32, i32
  }
  func.func @transform_4(%arg0: i32) -> (i32, i32) {
    %c0_i32 = arith.constant 0 : i32
    %c0_i32_0 = arith.constant 0 : i32
    return %arg0, %c0_i32 : i32, i32
  }
}

module attributes {stable_mosaic.version = 11 : i64} {
  func.func @_affine_kernel(%arg0: i32, %arg1: memref<32x128xbf16, #tpu.memory_space<vmem>>, %arg2: memref<1x128xf32, #tpu.memory_space<vmem>>, %arg3: memref<1x128xf32, #tpu.memory_space<vmem>>, %arg4: memref<32x128xbf16, #tpu.memory_space<vmem>>) attributes {dimension_semantics = [#tpu.dimension_semantics<parallel>], iteration_bounds = array<i64: 1>, scalar_prefetch = 0 : i64, scratch_operands = 0 : i64, tpu.core_type = #tpu.core_type<tc>, window_params = [{transform_indices = @transform_0, window_bounds = array<i64: 32, 128>}, {pipeline_mode = #tpu.pipeline_mode<synchronous>, transform_indices = @transform_1, window_bounds = array<i64: 1, 128>}, {pipeline_mode = #tpu.pipeline_mode<synchronous>, transform_indices = @transform_2, window_bounds = array<i64: 1, 128>}, {transform_indices = @transform_3, window_bounds = array<i64: 32, 128>}]} {
    %c0 = arith.constant 0 : index
    %c0_0 = arith.constant 0 : index
    %0 = vector.load %arg1[%c0, %c0_0] : memref<32x128xbf16, #tpu.memory_space<vmem>>, vector<32x128xbf16>
    %1 = arith.extf %0 : vector<32x128xbf16> to vector<32x128xf32>
    %c0_1 = arith.constant 0 : index
    %c0_2 = arith.constant 0 : index
    %2 = vector.load %arg2[%c0_1, %c0_2] : memref<1x128xf32, #tpu.memory_space<vmem>>, vector<1x128xf32>
    %3 = vector.broadcast %2 : vector<1x128xf32> to vector<32x128xf32>
    %4 = arith.mulf %1, %3 : vector<32x128xf32>
    %c0_3 = arith.constant 0 : index
    %c0_4 = arith.constant 0 : index
    %5 = vector.load %arg3[%c0_3, %c0_4] : memref<1x128xf32, #tpu.memory_space<vmem>>, vector<1x128xf32>
    %6 = vector.broadcast %5 : vector<1x128xf32> to vector<32x128xf32>
    %7 = arith.addf %4, %6 : vector<32x128xf32>
    %cst = arith.constant 0.000000e+00 : f32
    %8 = vector.broadcast %cst : f32 to vector<32x128xf32>
    %9 = arith.maximumf %7, %8 : vector<32x128xf32>
    %10 = arith.truncf %9 : vector<32x128xf32> to vector<32x128xbf16>
    %c0_5 = arith.constant 0 : index
    %c0_6 = arith.constant 0 : index
    %11 = vector.load %arg4[%c0_5, %c0_6] : memref<32x128xbf16, #tpu.memory_space<vmem>>, vector<32x128xbf16>
    tpu.vector_store %arg4[%c0_5, %c0_6], %10 {strides = array<i32>} : memref<32x128xbf16, #tpu.memory_space<vmem>>, vector<32x128xbf16>,
    return
  }
  func.func @transform_0(%arg0: i32) -> (i32, i32) {
    %c0_i32 = arith.constant 0 : i32
    %c0_i32_0 = arith.constant 0 : i32
    return %arg0, %c0_i32 : i32, i32
  }
  func.func @transform_1(%arg0: i32) -> (i32, i32) {
    %c0_i32 = arith.constant 0 : i32
    %c0_i32_0 = arith.constant 0 : i32
    %c0_i32_1 = arith.constant 0 : i32
    return %c0_i32, %c0_i32_0 : i32, i32
  }
  func.func @transform_2(%arg0: i32) -> (i32, i32) {
    %c0_i32 = arith.constant 0 : i32
    %c0_i32_0 = arith.constant 0 : i32
    %c0_i32_1 = arith.constant 0 : i32
    return %c0_i32, %c0_i32_0 : i32, i32
  }
  func.func @transform_3(%arg0: i32) -> (i32, i32) {
    %c0_i32 = arith.constant 0 : i32
    %c0_i32_0 = arith.constant 0 : i32
    return %arg0, %c0_i32 : i32, i32
  }
}

module attributes {stable_mosaic.version = 11 : i64} {
  func.func @_conv_gemm_kernel(%arg0: i32, %arg1: memref<32x128xbf16, #tpu.memory_space<vmem>>, %arg2: memref<128x128xbf16, #tpu.memory_space<vmem>>, %arg3: memref<32x128xbf16, #tpu.memory_space<vmem>>, %arg4: memref<8x128xf32, #tpu.memory_space<vmem>>, %arg5: memref<8x128xf32, #tpu.memory_space<vmem>>) attributes {dimension_semantics = [#tpu.dimension_semantics<parallel>], iteration_bounds = array<i64: 1>, scalar_prefetch = 0 : i64, scratch_operands = 0 : i64, tpu.core_type = #tpu.core_type<tc>, window_params = [{transform_indices = @transform_0, window_bounds = array<i64: 32, 128>}, {pipeline_mode = #tpu.pipeline_mode<synchronous>, transform_indices = @transform_1, window_bounds = array<i64: 128, 128>}, {transform_indices = @transform_2, window_bounds = array<i64: 32, 128>}, {transform_indices = @transform_3, window_bounds = array<i64: 8, 128>}, {transform_indices = @transform_4, window_bounds = array<i64: 8, 128>}]} {
    %c0 = arith.constant 0 : index
    %c0_0 = arith.constant 0 : index
    %0 = vector.load %arg1[%c0, %c0_0] : memref<32x128xbf16, #tpu.memory_space<vmem>>, vector<32x128xbf16>
    %c0_1 = arith.constant 0 : index
    %c0_2 = arith.constant 0 : index
    %1 = vector.load %arg2[%c0_1, %c0_2] : memref<128x128xbf16, #tpu.memory_space<vmem>>, vector<128x128xbf16>
    %cst = arith.constant dense<0.000000e+00> : vector<32x128xf32>
    %2 = tpu.matmul %0, %1, %cst {dimension_numbers = #tpu.dot_dimension_numbers<[1], [0], [0], [1], [0, 0, 1, 1], [], []>} : vector<32x128xbf16>, vector<128x128xbf16>, vector<32x128xf32> -> vector<32x128xf32>
    %3 = arith.truncf %2 : vector<32x128xf32> to vector<32x128xbf16>
    %c0_3 = arith.constant 0 : index
    %c0_4 = arith.constant 0 : index
    %4 = vector.load %arg3[%c0_3, %c0_4] : memref<32x128xbf16, #tpu.memory_space<vmem>>, vector<32x128xbf16>
    tpu.vector_store %arg3[%c0_3, %c0_4], %3 {strides = array<i32>} : memref<32x128xbf16, #tpu.memory_space<vmem>>, vector<32x128xbf16>,
    %cst_5 = arith.constant dense<0.000000e+00> : vector<128xf32>
    %5 = vector.multi_reduction <add>, %2, %cst_5 [0] : vector<32x128xf32> to vector<128xf32>
    %6 = vector.shape_cast %5 : vector<128xf32> to vector<1x128xf32>
    %7 = vector.shape_cast %6 : vector<1x128xf32> to vector<1x128xf32>
    %8 = vector.broadcast %7 : vector<1x128xf32> to vector<8x128xf32>
    %c0_6 = arith.constant 0 : index
    %c0_7 = arith.constant 0 : index
    %9 = vector.load %arg4[%c0_6, %c0_7] : memref<8x128xf32, #tpu.memory_space<vmem>>, vector<8x128xf32>
    tpu.vector_store %arg4[%c0_6, %c0_7], %8 {strides = array<i32>} : memref<8x128xf32, #tpu.memory_space<vmem>>, vector<8x128xf32>,
    %10 = arith.mulf %2, %2 : vector<32x128xf32>
    %cst_8 = arith.constant dense<0.000000e+00> : vector<128xf32>
    %11 = vector.multi_reduction <add>, %10, %cst_8 [0] : vector<32x128xf32> to vector<128xf32>
    %12 = vector.shape_cast %11 : vector<128xf32> to vector<1x128xf32>
    %13 = vector.shape_cast %12 : vector<1x128xf32> to vector<1x128xf32>
    %14 = vector.broadcast %13 : vector<1x128xf32> to vector<8x128xf32>
    %c0_9 = arith.constant 0 : index
    %c0_10 = arith.constant 0 : index
    %15 = vector.load %arg5[%c0_9, %c0_10] : memref<8x128xf32, #tpu.memory_space<vmem>>, vector<8x128xf32>
    tpu.vector_store %arg5[%c0_9, %c0_10], %14 {strides = array<i32>} : memref<8x128xf32, #tpu.memory_space<vmem>>, vector<8x128xf32>,
    return
  }
  func.func @transform_0(%arg0: i32) -> (i32, i32) {
    %c0_i32 = arith.constant 0 : i32
    %c0_i32_0 = arith.constant 0 : i32
    return %arg0, %c0_i32 : i32, i32
  }
  func.func @transform_1(%arg0: i32) -> (i32, i32) {
    %c0_i32 = arith.constant 0 : i32
    %c0_i32_0 = arith.constant 0 : i32
    %c0_i32_1 = arith.constant 0 : i32
    return %c0_i32, %c0_i32_0 : i32, i32
  }
  func.func @transform_2(%arg0: i32) -> (i32, i32) {
    %c0_i32 = arith.constant 0 : i32
    %c0_i32_0 = arith.constant 0 : i32
    return %arg0, %c0_i32 : i32, i32
  }
  func.func @transform_3(%arg0: i32) -> (i32, i32) {
    %c0_i32 = arith.constant 0 : i32
    %c0_i32_0 = arith.constant 0 : i32
    return %arg0, %c0_i32 : i32, i32
  }
  func.func @transform_4(%arg0: i32) -> (i32, i32) {
    %c0_i32 = arith.constant 0 : i32
    %c0_i32_0 = arith.constant 0 : i32
    return %arg0, %c0_i32 : i32, i32
  }
}

module attributes {stable_mosaic.version = 11 : i64} {
  func.func @_affine_kernel(%arg0: i32, %arg1: memref<32x128xbf16, #tpu.memory_space<vmem>>, %arg2: memref<1x128xf32, #tpu.memory_space<vmem>>, %arg3: memref<1x128xf32, #tpu.memory_space<vmem>>, %arg4: memref<32x128xbf16, #tpu.memory_space<vmem>>, %arg5: memref<32x128xbf16, #tpu.memory_space<vmem>>) attributes {dimension_semantics = [#tpu.dimension_semantics<parallel>], iteration_bounds = array<i64: 1>, scalar_prefetch = 0 : i64, scratch_operands = 0 : i64, tpu.core_type = #tpu.core_type<tc>, window_params = [{transform_indices = @transform_0, window_bounds = array<i64: 32, 128>}, {pipeline_mode = #tpu.pipeline_mode<synchronous>, transform_indices = @transform_1, window_bounds = array<i64: 1, 128>}, {pipeline_mode = #tpu.pipeline_mode<synchronous>, transform_indices = @transform_2, window_bounds = array<i64: 1, 128>}, {transform_indices = @transform_3, window_bounds = array<i64: 32, 128>}, {transform_indices = @transform_4, window_bounds = array<i64: 32, 128>}]} {
    %c0 = arith.constant 0 : index
    %c0_0 = arith.constant 0 : index
    %0 = vector.load %arg1[%c0, %c0_0] : memref<32x128xbf16, #tpu.memory_space<vmem>>, vector<32x128xbf16>
    %1 = arith.extf %0 : vector<32x128xbf16> to vector<32x128xf32>
    %c0_1 = arith.constant 0 : index
    %c0_2 = arith.constant 0 : index
    %2 = vector.load %arg2[%c0_1, %c0_2] : memref<1x128xf32, #tpu.memory_space<vmem>>, vector<1x128xf32>
    %3 = vector.broadcast %2 : vector<1x128xf32> to vector<32x128xf32>
    %4 = arith.mulf %1, %3 : vector<32x128xf32>
    %c0_3 = arith.constant 0 : index
    %c0_4 = arith.constant 0 : index
    %5 = vector.load %arg3[%c0_3, %c0_4] : memref<1x128xf32, #tpu.memory_space<vmem>>, vector<1x128xf32>
    %6 = vector.broadcast %5 : vector<1x128xf32> to vector<32x128xf32>
    %7 = arith.addf %4, %6 : vector<32x128xf32>
    %c0_5 = arith.constant 0 : index
    %c0_6 = arith.constant 0 : index
    %8 = vector.load %arg4[%c0_5, %c0_6] : memref<32x128xbf16, #tpu.memory_space<vmem>>, vector<32x128xbf16>
    %9 = arith.extf %8 : vector<32x128xbf16> to vector<32x128xf32>
    %10 = arith.addf %7, %9 : vector<32x128xf32>
    %cst = arith.constant 0.000000e+00 : f32
    %11 = vector.broadcast %cst : f32 to vector<32x128xf32>
    %12 = arith.maximumf %10, %11 : vector<32x128xf32>
    %13 = arith.truncf %12 : vector<32x128xf32> to vector<32x128xbf16>
    %c0_7 = arith.constant 0 : index
    %c0_8 = arith.constant 0 : index
    %14 = vector.load %arg5[%c0_7, %c0_8] : memref<32x128xbf16, #tpu.memory_space<vmem>>, vector<32x128xbf16>
    tpu.vector_store %arg5[%c0_7, %c0_8], %13 {strides = array<i32>} : memref<32x128xbf16, #tpu.memory_space<vmem>>, vector<32x128xbf16>,
    return
  }
  func.func @transform_0(%arg0: i32) -> (i32, i32) {
    %c0_i32 = arith.constant 0 : i32
    %c0_i32_0 = arith.constant 0 : i32
    return %arg0, %c0_i32 : i32, i32
  }
  func.func @transform_1(%arg0: i32) -> (i32, i32) {
    %c0_i32 = arith.constant 0 : i32
    %c0_i32_0 = arith.constant 0 : i32
    %c0_i32_1 = arith.constant 0 : i32
    return %c0_i32, %c0_i32_0 : i32, i32
  }
  func.func @transform_2(%arg0: i32) -> (i32, i32) {
    %c0_i32 = arith.constant 0 : i32
    %c0_i32_0 = arith.constant 0 : i32
    %c0_i32_1 = arith.constant 0 : i32
    return %c0_i32, %c0_i32_0 : i32, i32
  }
  func.func @transform_3(%arg0: i32) -> (i32, i32) {
    %c0_i32 = arith.constant 0 : i32
    %c0_i32_0 = arith.constant 0 : i32
    return %arg0, %c0_i32 : i32, i32
  }
  func.func @transform_4(%arg0: i32) -> (i32, i32) {
    %c0_i32 = arith.constant 0 : i32
    %c0_i32_0 = arith.constant 0 : i32
    return %arg0, %c0_i32 : i32, i32
  }
}

module attributes {stable_mosaic.version = 11 : i64} {
  func.func @_conv_gemm_kernel(%arg0: i32, %arg1: memref<32x1152xbf16, #tpu.memory_space<vmem>>, %arg2: memref<1152x128xbf16, #tpu.memory_space<vmem>>, %arg3: memref<32x128xbf16, #tpu.memory_space<vmem>>) attributes {dimension_semantics = [#tpu.dimension_semantics<parallel>], iteration_bounds = array<i64: 1>, scalar_prefetch = 0 : i64, scratch_operands = 0 : i64, tpu.core_type = #tpu.core_type<tc>, window_params = [{transform_indices = @transform_0, window_bounds = array<i64: 32, 1152>}, {pipeline_mode = #tpu.pipeline_mode<synchronous>, transform_indices = @transform_1, window_bounds = array<i64: 1152, 128>}, {transform_indices = @transform_2, window_bounds = array<i64: 32, 128>}]} {
    %c0 = arith.constant 0 : index
    %c0_0 = arith.constant 0 : index
    %0 = vector.load %arg1[%c0, %c0_0] : memref<32x1152xbf16, #tpu.memory_space<vmem>>, vector<32x1152xbf16>
    %c0_1 = arith.constant 0 : index
    %c0_2 = arith.constant 0 : index
    %1 = vector.load %arg2[%c0_1, %c0_2] : memref<1152x128xbf16, #tpu.memory_space<vmem>>, vector<1152x128xbf16>
    %cst = arith.constant dense<0.000000e+00> : vector<32x128xf32>
    %2 = tpu.matmul %0, %1, %cst {dimension_numbers = #tpu.dot_dimension_numbers<[1], [0], [0], [1], [0, 0, 1, 1], [], []>} : vector<32x1152xbf16>, vector<1152x128xbf16>, vector<32x128xf32> -> vector<32x128xf32>
    %3 = arith.truncf %2 : vector<32x128xf32> to vector<32x128xbf16>
    %c0_3 = arith.constant 0 : index
    %c0_4 = arith.constant 0 : index
    %4 = vector.load %arg3[%c0_3, %c0_4] : memref<32x128xbf16, #tpu.memory_space<vmem>>, vector<32x128xbf16>
    tpu.vector_store %arg3[%c0_3, %c0_4], %3 {strides = array<i32>} : memref<32x128xbf16, #tpu.memory_space<vmem>>, vector<32x128xbf16>,
    return
  }
  func.func @transform_0(%arg0: i32) -> (i32, i32) {
    %c0_i32 = arith.constant 0 : i32
    %c0_i32_0 = arith.constant 0 : i32
    return %arg0, %c0_i32 : i32, i32
  }
  func.func @transform_1(%arg0: i32) -> (i32, i32) {
    %c0_i32 = arith.constant 0 : i32
    %c0_i32_0 = arith.constant 0 : i32
    %c0_i32_1 = arith.constant 0 : i32
    return %c0_i32, %c0_i32_0 : i32, i32
  }
  func.func @transform_2(%arg0: i32) -> (i32, i32) {
    %c0_i32 = arith.constant 0 : i32
    %c0_i32_0 = arith.constant 0 : i32
    return %arg0, %c0_i32 : i32, i32
  }
}

module attributes {stable_mosaic.version = 11 : i64} {
  func.func @_conv_gemm_kernel(%arg0: i32, %arg1: memref<32x1152xbf16, #tpu.memory_space<vmem>>, %arg2: memref<1152x128xbf16, #tpu.memory_space<vmem>>, %arg3: memref<1x128xf32, #tpu.memory_space<vmem>>, %arg4: memref<32x128xbf16, #tpu.memory_space<vmem>>) attributes {dimension_semantics = [#tpu.dimension_semantics<parallel>], iteration_bounds = array<i64: 1>, scalar_prefetch = 0 : i64, scratch_operands = 0 : i64, tpu.core_type = #tpu.core_type<tc>, window_params = [{transform_indices = @transform_0, window_bounds = array<i64: 32, 1152>}, {pipeline_mode = #tpu.pipeline_mode<synchronous>, transform_indices = @transform_1, window_bounds = array<i64: 1152, 128>}, {pipeline_mode = #tpu.pipeline_mode<synchronous>, transform_indices = @transform_2, window_bounds = array<i64: 1, 128>}, {transform_indices = @transform_3, window_bounds = array<i64: 32, 128>}]} {
    %c0 = arith.constant 0 : index
    %c0_0 = arith.constant 0 : index
    %0 = vector.load %arg1[%c0, %c0_0] : memref<32x1152xbf16, #tpu.memory_space<vmem>>, vector<32x1152xbf16>
    %cst = arith.constant 0.000000e+00 : bf16
    %1 = vector.broadcast %cst : bf16 to vector<32x1152xbf16>
    %2 = arith.maximumf %0, %1 : vector<32x1152xbf16>
    %c0_1 = arith.constant 0 : index
    %c0_2 = arith.constant 0 : index
    %3 = vector.load %arg2[%c0_1, %c0_2] : memref<1152x128xbf16, #tpu.memory_space<vmem>>, vector<1152x128xbf16>
    %cst_3 = arith.constant dense<0.000000e+00> : vector<32x128xf32>
    %4 = tpu.matmul %2, %3, %cst_3 {dimension_numbers = #tpu.dot_dimension_numbers<[1], [0], [0], [1], [0, 0, 1, 1], [], []>} : vector<32x1152xbf16>, vector<1152x128xbf16>, vector<32x128xf32> -> vector<32x128xf32>
    %c0_4 = arith.constant 0 : index
    %c0_5 = arith.constant 0 : index
    %5 = vector.load %arg3[%c0_4, %c0_5] : memref<1x128xf32, #tpu.memory_space<vmem>>, vector<1x128xf32>
    %6 = vector.broadcast %5 : vector<1x128xf32> to vector<32x128xf32>
    %7 = arith.addf %4, %6 : vector<32x128xf32>
    %cst_6 = arith.constant 0.000000e+00 : f32
    %8 = vector.broadcast %cst_6 : f32 to vector<32x128xf32>
    %9 = arith.maximumf %7, %8 : vector<32x128xf32>
    %10 = arith.truncf %9 : vector<32x128xf32> to vector<32x128xbf16>
    %c0_7 = arith.constant 0 : index
    %c0_8 = arith.constant 0 : index
    %11 = vector.load %arg4[%c0_7, %c0_8] : memref<32x128xbf16, #tpu.memory_space<vmem>>, vector<32x128xbf16>
    tpu.vector_store %arg4[%c0_7, %c0_8], %10 {strides = array<i32>} : memref<32x128xbf16, #tpu.memory_space<vmem>>, vector<32x128xbf16>,
    return
  }
  func.func @transform_0(%arg0: i32) -> (i32, i32) {
    %c0_i32 = arith.constant 0 : i32
    %c0_i32_0 = arith.constant 0 : i32
    return %arg0, %c0_i32 : i32, i32
  }
  func.func @transform_1(%arg0: i32) -> (i32, i32) {
    %c0_i32 = arith.constant 0 : i32
    %c0_i32_0 = arith.constant 0 : i32
    %c0_i32_1 = arith.constant 0 : i32
    return %c0_i32, %c0_i32_0 : i32, i32
  }
  func.func @transform_2(%arg0: i32) -> (i32, i32) {
    %c0_i32 = arith.constant 0 : i32
    %c0_i32_0 = arith.constant 0 : i32
    %c0_i32_1 = arith.constant 0 : i32
    return %c0_i32, %c0_i32_0 : i32, i32
  }
  func.func @transform_3(%arg0: i32) -> (i32, i32) {
    %c0_i32 = arith.constant 0 : i32
    %c0_i32_0 = arith.constant 0 : i32
    return %arg0, %c0_i32 : i32, i32
  }
}

module attributes {stable_mosaic.version = 11 : i64} {
  func.func @_conv_gemm_kernel(%arg0: i32, %arg1: memref<32x128xbf16, #tpu.memory_space<vmem>>, %arg2: memref<128x128xbf16, #tpu.memory_space<vmem>>, %arg3: memref<1x128xf32, #tpu.memory_space<vmem>>, %arg4: memref<32x128xbf16, #tpu.memory_space<vmem>>, %arg5: memref<32x128xbf16, #tpu.memory_space<vmem>>) attributes {dimension_semantics = [#tpu.dimension_semantics<parallel>], iteration_bounds = array<i64: 1>, scalar_prefetch = 0 : i64, scratch_operands = 0 : i64, tpu.core_type = #tpu.core_type<tc>, window_params = [{transform_indices = @transform_0, window_bounds = array<i64: 32, 128>}, {pipeline_mode = #tpu.pipeline_mode<synchronous>, transform_indices = @transform_1, window_bounds = array<i64: 128, 128>}, {pipeline_mode = #tpu.pipeline_mode<synchronous>, transform_indices = @transform_2, window_bounds = array<i64: 1, 128>}, {transform_indices = @transform_3, window_bounds = array<i64: 32, 128>}, {transform_indices = @transform_4, window_bounds = array<i64: 32, 128>}]} {
    %c0 = arith.constant 0 : index
    %c0_0 = arith.constant 0 : index
    %0 = vector.load %arg1[%c0, %c0_0] : memref<32x128xbf16, #tpu.memory_space<vmem>>, vector<32x128xbf16>
    %c0_1 = arith.constant 0 : index
    %c0_2 = arith.constant 0 : index
    %1 = vector.load %arg2[%c0_1, %c0_2] : memref<128x128xbf16, #tpu.memory_space<vmem>>, vector<128x128xbf16>
    %cst = arith.constant dense<0.000000e+00> : vector<32x128xf32>
    %2 = tpu.matmul %0, %1, %cst {dimension_numbers = #tpu.dot_dimension_numbers<[1], [0], [0], [1], [0, 0, 1, 1], [], []>} : vector<32x128xbf16>, vector<128x128xbf16>, vector<32x128xf32> -> vector<32x128xf32>
    %c0_3 = arith.constant 0 : index
    %c0_4 = arith.constant 0 : index
    %3 = vector.load %arg3[%c0_3, %c0_4] : memref<1x128xf32, #tpu.memory_space<vmem>>, vector<1x128xf32>
    %4 = vector.broadcast %3 : vector<1x128xf32> to vector<32x128xf32>
    %5 = arith.addf %2, %4 : vector<32x128xf32>
    %c0_5 = arith.constant 0 : index
    %c0_6 = arith.constant 0 : index
    %6 = vector.load %arg4[%c0_5, %c0_6] : memref<32x128xbf16, #tpu.memory_space<vmem>>, vector<32x128xbf16>
    %7 = arith.extf %6 : vector<32x128xbf16> to vector<32x128xf32>
    %8 = arith.addf %5, %7 : vector<32x128xf32>
    %9 = arith.truncf %8 : vector<32x128xf32> to vector<32x128xbf16>
    %c0_7 = arith.constant 0 : index
    %c0_8 = arith.constant 0 : index
    %10 = vector.load %arg5[%c0_7, %c0_8] : memref<32x128xbf16, #tpu.memory_space<vmem>>, vector<32x128xbf16>
    tpu.vector_store %arg5[%c0_7, %c0_8], %9 {strides = array<i32>} : memref<32x128xbf16, #tpu.memory_space<vmem>>, vector<32x128xbf16>,
    return
  }
  func.func @transform_0(%arg0: i32) -> (i32, i32) {
    %c0_i32 = arith.constant 0 : i32
    %c0_i32_0 = arith.constant 0 : i32
    return %arg0, %c0_i32 : i32, i32
  }
  func.func @transform_1(%arg0: i32) -> (i32, i32) {
    %c0_i32 = arith.constant 0 : i32
    %c0_i32_0 = arith.constant 0 : i32
    %c0_i32_1 = arith.constant 0 : i32
    return %c0_i32, %c0_i32_0 : i32, i32
  }
  func.func @transform_2(%arg0: i32) -> (i32, i32) {
    %c0_i32 = arith.constant 0 : i32
    %c0_i32_0 = arith.constant 0 : i32
    %c0_i32_1 = arith.constant 0 : i32
    return %c0_i32, %c0_i32_0 : i32, i32
  }
  func.func @transform_3(%arg0: i32) -> (i32, i32) {
    %c0_i32 = arith.constant 0 : i32
    %c0_i32_0 = arith.constant 0 : i32
    return %arg0, %c0_i32 : i32, i32
  }
  func.func @transform_4(%arg0: i32) -> (i32, i32) {
    %c0_i32 = arith.constant 0 : i32
    %c0_i32_0 = arith.constant 0 : i32
    return %arg0, %c0_i32 : i32, i32
  }
}

</mosaic_0001>

<bundles_post_ra>
// kernel: encoder_forward.20
= control target key start
LH: loop header
LB: loop body
LE: loop exit
PB: predicated region body
PF: predicated region fallthrough
CT: control target
= control target key end

     0   :  { %s422_s0 = inlined_call_operand.vmem [shape: bf16[128,128], index: 0, kind: input, shape index: {}]   ;;  %s423_s1 = inlined_call_operand.vmem [shape: f32[1,128], index: 1, kind: input, shape index: {}]   ;;  %s424_s2 = inlined_call_operand.vmem [shape: f32[1,128], index: 2, kind: input, shape index: {}]   ;;  %s425_s3 = inlined_call_operand.vmem [shape: bf16[128,128], index: 3, kind: output, shape index: {}]  }
   0x1   :  { %v227_v0 = vld [vmem:[%s422_s0] sm:$0xff]   ;;  %v298_v4 = vld [vmem:[%s422_s0 + $0x8] sm:$0xff]   ;;  %v299_v5 = vld [vmem:[%s422_s0 + $0x10] sm:$0xff]  }
   0x2   :  { %v338_v1 = vld [vmem:[%s423_s1] ss:$0 sm:$0xff]  ;;  %v228_v2 = vunpack.c.l.bf16 %v227_v0  ;;  %v229_v3 = vunpack.c.h.bf16 %v227_v0  ;;  %v300_v6 = vld [vmem:[%s422_s0 + $0x18] sm:$0xff]   ;;  %v232_v8 = vunpack.c.l.bf16 %v298_v4  ;;  %v233_v9 = vunpack.c.h.bf16 %v298_v4  ;;  %v302_v33 = vld [vmem:[%s422_s0 + $0x28] sm:$0xff]  }
   0x3   :  { %v352_v7 = vld [vmem:[%s424_s2] ss:$0 sm:$0xff]  ;;  %v236_v10 = vunpack.c.l.bf16 %v299_v5  ;;  %v237_v11 = vunpack.c.h.bf16 %v299_v5  ;;  %v240_v14 = vunpack.c.l.bf16 %v300_v6  ;;  %v241_v15 = vunpack.c.h.bf16 %v300_v6  ;;  %v303_v38 = vld [vmem:[%s422_s0 + $0x30] sm:$0xff]   ;;  %v304_v43 = vld [vmem:[%s422_s0 + $0x38] sm:$0xff]  }
   0x4   :  { %v53_v12 = vmul.f32 %v228_v2, %v338_v1  ;;  %v54_v13 = vmul.f32 %v229_v3, %v338_v1  ;;  %v55_v16 = vmul.f32 %v232_v8, %v338_v1  ;;  %v56_v17 = vmul.f32 %v233_v9, %v338_v1  ;;  %v301_v28 = vld [vmem:[%s422_s0 + $0x20] sm:$0xff]  }
   0x5   :  { %v57_v18 = vmul.f32 %v236_v10, %v338_v1  ;;  %v58_v19 = vmul.f32 %v237_v11, %v338_v1  ;;  %v59_v22 = vmul.f32 %v240_v14, %v338_v1  ;;  %v60_v23 = vmul.f32 %v241_v15, %v338_v1 }
   0x6   :  { %v76_v20 = vadd.f32 %v352_v7, %v53_v12  ;;  %v77_v21 = vadd.f32 %v352_v7, %v54_v13  ;;  %v78_v24 = vadd.f32 %v352_v7, %v55_v16  ;;  %v79_v25 = vadd.f32 %v352_v7, %v56_v17 }
   0x7   :  { %v80_v26 = vadd.f32 %v352_v7, %v57_v18  ;;  %v81_v27 = vadd.f32 %v352_v7, %v58_v19  ;;  %v82_v31 = vadd.f32 %v352_v7, %v59_v22  ;;  %v83_v32 = vadd.f32 %v352_v7, %v60_v23 }
   0x8   :  { %v92_v29 = vmax.f32 %v76_v20, 0.0  ;;  %v93_v30 = vmax.f32 %v77_v21, 0.0  ;;  %v94_v34 = vmax.f32 %v78_v24, 0.0  ;;  %v95_v35 = vmax.f32 %v79_v25, 0.0 }
   0x9   :  { %v96_v36 = vmax.f32 %v80_v26, 0.0  ;;  %v97_v37 = vmax.f32 %v81_v27, 0.0  ;;  %v98_v40 = vmax.f32 %v82_v31, 0.0  ;;  %v99_v41 = vmax.f32 %v83_v32, 0.0 }
   0xa   :  { %v261_v39 = vpack.c.bf16 %v93_v30, %v92_v29  ;;  %v244_v42 = vunpack.c.l.bf16 %v301_v28  ;;  %v266_v44 = vpack.c.bf16 %v95_v35, %v94_v34  ;;  %v245_v46 = vunpack.c.h.bf16 %v301_v28 }
   0xb   :  { %v271_v45 = vpack.c.bf16 %v97_v37, %v96_v36  ;;  %v248_v47 = vunpack.c.l.bf16 %v302_v33  ;;  %v276_v48 = vpack.c.bf16 %v99_v41, %v98_v40  ;;  %v249_v50 = vunpack.c.h.bf16 %v302_v33 }
   0xc   :  { %262 = vst [vmem:[%s425_s3] sm:$0xff] %v261_v39   ;;  %v61_v49 = vmul.f32 %v244_v42, %v338_v1  ;;  %v252_v51 = vunpack.c.l.bf16 %v303_v38  ;;  %305 = vst [vmem:[%s425_s3 + $0x8] sm:$0xff] %v266_v44   ;;  %v62_v52 = vmul.f32 %v245_v46, %v338_v1  ;;  %v253_v54 = vunpack.c.h.bf16 %v303_v38 }
   0xd   :  { %306 = vst [vmem:[%s425_s3 + $0x10] sm:$0xff] %v271_v45   ;;  %v63_v53 = vmul.f32 %v248_v47, %v338_v1  ;;  %v256_v55 = vunpack.c.l.bf16 %v304_v43  ;;  %307 = vst [vmem:[%s425_s3 + $0x18] sm:$0xff] %v276_v48   ;;  %v64_v57 = vmul.f32 %v249_v50, %v338_v1  ;;  %v257_v59 = vunpack.c.h.bf16 %v304_v43 }
   0xe   :  { %v84_v56 = vadd.f32 %v352_v7, %v61_v49  ;;  %v65_v58 = vmul.f32 %v252_v51, %v338_v1  ;;  %v85_v60 = vadd.f32 %v352_v7, %v62_v52  ;;  %v66_v62 = vmul.f32 %v253_v54, %v338_v1 }
   0xf   :  { %v86_v61 = vadd.f32 %v352_v7, %v63_v53  ;;  %v67_v63 = vmul.f32 %v256_v55, %v338_v1  ;;  %v87_v2 = vadd.f32 %v352_v7, %v64_v57  ;;  %v68_v4 = vmul.f32 %v257_v59, %v338_v1 }
  0x10   :  { %v100_v0 = vmax.f32 %v84_v56, 0.0  ;;  %v88_v3 = vadd.f32 %v352_v7, %v65_v58  ;;  %v101_v5 = vmax.f32 %v85_v60, 0.0  ;;  %v89_v8 = vadd.f32 %v352_v7, %v66_v62 }
  0x11   :  { %v102_v6 = vmax.f32 %v86_v61, 0.0  ;;  %v90_v9 = vadd.f32 %v352_v7, %v67_v63  ;;  %v103_v10 = vmax.f32 %v87_v2, 0.0  ;;  %v91_v12 = vadd.f32 %v352_v7, %v68_v4 }
  0x12   :  { %v104_v11 = vmax.f32 %v88_v3, 0.0  ;;  %v281_v13 = vpack.c.bf16 %v101_v5, %v100_v0  ;;  %v105_v14 = vmax.f32 %v89_v8, 0.0 }
  0x13   :  { %v106_v15 = vmax.f32 %v90_v9, 0.0  ;;  %v286_v16 = vpack.c.bf16 %v103_v10, %v102_v6  ;;  %v107_v17 = vmax.f32 %v91_v12, 0.0 }
  0x14   :  { %308 = vst [vmem:[%s425_s3 + $0x20] sm:$0xff] %v281_v13   ;;  %v291_v1 = vpack.c.bf16 %v105_v14, %v104_v11 }
  0x15   :  { %309 = vst [vmem:[%s425_s3 + $0x28] sm:$0xff] %v286_v16   ;;  %v296_v18 = vpack.c.bf16 %v107_v17, %v106_v15 }
  0x16   :  { %310 = vst [vmem:[%s425_s3 + $0x30] sm:$0xff] %v291_v1  }
  0x17   :  { %311 = vst [vmem:[%s425_s3 + $0x38] sm:$0xff] %v296_v18  }

// kernel: encoder_forward.19
= control target key start
LH: loop header
LB: loop body
LE: loop exit
PB: predicated region body
PF: predicated region fallthrough
CT: control target
= control target key end

     0   :  { %s4677_s1 = inlined_call_operand.vmem [shape: bf16[2048,128], index: 1, kind: input, shape index: {}]   ;;  %s4678_s0 = inlined_call_operand.vmem [shape: bf16[128,2048], index: 0, kind: input, shape index: {}]   ;;  %s4679_s2 = inlined_call_operand.vmem [shape: bf16[128,128], index: 2, kind: output, shape index: {0}]   ;;  %s4680_s3 = inlined_call_operand.vmem [shape: f32[8,128], index: 3, kind: output, shape index: {1}]   ;;  %s4681_s4 = inlined_call_operand.vmem [shape: f32[8,128], index: 4, kind: output, shape index: {2}]  }
   0x1   :  { %v3582_v0 = vld [vmem:[%s4677_s1 + $0x40] sm:$0xff]   ;;  %v3586_v4 = vld [vmem:[%s4677_s1 + $0x48] sm:$0xff]   ;;  %v3590_v8 = vld [vmem:[%s4677_s1 + $0x50] sm:$0xff]  }
   0x2   :  { %v3583_v1 = vld [vmem:[%s4677_s1 + $0xc0] sm:$0xff]   ;;  %3070 = vmatprep.subr.bf16.mxu0 %v3582_v0  ;;  %v3587_v5 = vld [vmem:[%s4677_s1 + $0xc8] sm:$0xff]   ;;  %v3591_v9 = vld [vmem:[%s4677_s1 + $0xd0] sm:$0xff]  }
   0x3   :  { %v3584_v2 = vld [vmem:[%s4677_s1] sm:$0xff]   ;;  %3134 = vmatprep.subr.bf16.mxu1 %v3583_v1  ;;  %v3588_v6 = vld [vmem:[%s4677_s1 + $0x8] sm:$0xff]   ;;  %v3592_v10 = vld [vmem:[%s4677_s1 + $0x10] sm:$0xff]  }
   0x4   :  { %v3585_v3 = vld [vmem:[%s4677_s1 + $0x80] sm:$0xff]   ;;  %3071 = vmatpush3.bf16.msra.mxu0 %v3584_v2  ;;  %v3589_v7 = vld [vmem:[%s4677_s1 + $0x88] sm:$0xff]   ;;  %v3593_v11 = vld [vmem:[%s4677_s1 + $0x90] sm:$0xff]  }
   0x5   :  { %3135 = vmatpush3.bf16.msra.mxu1 %v3585_v3  ;;  %3072 = vmatprep.subr.bf16.mxu0 %v3586_v4  ;;  %v3594_v12 = vld [vmem:[%s4677_s1 + $0x58] sm:$0xff]   ;;  %v3598_v16 = vld [vmem:[%s4677_s1 + $0x60] sm:$0xff]   ;;  %v3602_v20 = vld [vmem:[%s4677_s1 + $0x68] sm:$0xff]  }
   0x6   :  { %3136 = vmatprep.subr.bf16.mxu1 %v3587_v5  ;;  %v3595_v13 = vld [vmem:[%s4677_s1 + $0xd8] sm:$0xff]   ;;  %v3599_v17 = vld [vmem:[%s4677_s1 + $0xe0] sm:$0xff]   ;;  %v3603_v21 = vld [vmem:[%s4677_s1 + $0xe8] sm:$0xff]  }
   0x7   :  { %v3596_v14 = vld [vmem:[%s4677_s1 + $0x18] sm:$0xff]   ;;  %v3600_v18 = vld [vmem:[%s4677_s1 + $0x20] sm:$0xff]   ;;  %v3604_v22 = vld [vmem:[%s4677_s1 + $0x28] sm:$0xff]  }
   0x8   :  { %3073 = vmatpush3.bf16.msra.mxu0 %v3588_v6  ;;  %v3597_v15 = vld [vmem:[%s4677_s1 + $0x98] sm:$0xff]   ;;  %v3601_v19 = vld [vmem:[%s4677_s1 + $0xa0] sm:$0xff]   ;;  %v3605_v23 = vld [vmem:[%s4677_s1 + $0xa8] sm:$0xff]  }
   0x9   :  { %3137 = vmatpush3.bf16.msra.mxu1 %v3589_v7  ;;  %3074 = vmatprep.subr.bf16.mxu0 %v3590_v8  ;;  %v3606_v24 = vld [vmem:[%s4677_s1 + $0x70] sm:$0xff]   ;;  %v3610_v28 = vld [vmem:[%s4677_s1 + $0x78] sm:$0xff]   ;;  %v15_v32 = vld [vmem:[%s4678_s0] sm:$0xff] }
   0xa   :  { %3138 = vmatprep.subr.bf16.mxu1 %v3591_v9  ;;  %v3607_v25 = vld [vmem:[%s4677_s1 + $0xf0] sm:$0xff]   ;;  %v3611_v29 = vld [vmem:[%s4677_s1 + $0xf8] sm:$0xff]   ;;  %v23_v33 = vld [vmem:[%s4678_s0 + $0x40] sm:$0xff] }
   0xb   :  { %v3608_v26 = vld [vmem:[%s4677_s1 + $0x30] sm:$0xff]   ;;  %v3612_v30 = vld [vmem:[%s4677_s1 + $0x38] sm:$0xff]   ;;  %v16_v34 = vld [vmem:[%s4678_s0 + $0x8] sm:$0xff]  ;;  %v2735_v35 = vcombine.low %v15_v32, %v23_v33  ;;  %v2736_v36 = vcombine.high %v15_v32, %v23_v33 }
   0xc   :  { %3075 = vmatpush3.bf16.msra.mxu0 %v3592_v10  ;;  %v3609_v27 = vld [vmem:[%s4677_s1 + $0xb0] sm:$0xff]   ;;  %v3613_v31 = vld [vmem:[%s4677_s1 + $0xb8] sm:$0xff]   ;;  %v24_v37 = vld [vmem:[%s4678_s0 + $0x48] sm:$0xff] }
   0xd   :  { %3139 = vmatpush3.bf16.msra.mxu1 %v3593_v11  ;;  %3076 = vmatprep.subr.bf16.mxu0 %v3594_v12  ;;  %v2737_v38 = vcombine.low %v16_v34, %v24_v37  ;;  %v2738_v39 = vcombine.high %v16_v34, %v24_v37  ;;  %v3614_v40 = vld [vmem:[%s4677_s1 + $0x140] sm:$0xff]   ;;  %v32_v47 = vld [vmem:[%s4678_s0 + $0x88] sm:$0xff]  ;;  %v3622_v62 = vld [vmem:[%s4677_s1 + $0x150] sm:$0xff]  }
   0xe   :  { %3140 = vmatprep.subr.bf16.mxu1 %v3595_v13  ;;  %1839 = vmatprep.mubr.bf16.mxu0 %v2736_v36  ;;  %v3615_v41 = vld [vmem:[%s4677_s1 + $0x100] sm:$0xff]   ;;  %v40_v48 = vld [vmem:[%s4678_s0 + $0xc8] sm:$0xff]  ;;  %v3623_v63 = vld [vmem:[%s4677_s1 + $0x110] sm:$0xff]  }
   0xf   :  { %1936 = vmatprep.mubr.bf16.mxu1 %v2738_v39  ;;  %v3616_v42 = vld [vmem:[%s4677_s1 + $0x1c0] sm:$0xff]   ;;  %v2754_v49 = vcombine.high %v32_v47, %v40_v48  ;;  %v3618_v50 = vld [vmem:[%s4677_s1 + $0x148] sm:$0xff]   ;;  %v2753_v53 = vcombine.low %v32_v47, %v40_v48  ;;  %v3624_v0 = vld [vmem:[%s4677_s1 + $0x1d0] sm:$0xff]  }
  0x10   :  { %3077 = vmatpush3.bf16.msra.mxu0 %v3596_v14  ;;  %v3617_v43 = vld [vmem:[%s4677_s1 + $0x180] sm:$0xff]   ;;  %v3619_v52 = vld [vmem:[%s4677_s1 + $0x108] sm:$0xff]   ;;  %v3625_v1 = vld [vmem:[%s4677_s1 + $0x190] sm:$0xff]  }
  0x11   :  { %3141 = vmatpush3.bf16.msra.mxu1 %v3597_v15  ;;  %3078 = vmatprep.subr.bf16.mxu0 %v3598_v16  ;;  %v31_v44 = vld [vmem:[%s4678_s0 + $0x80] sm:$0xff]  ;;  %v3620_v54 = vld [vmem:[%s4677_s1 + $0x1c8] sm:$0xff]   ;;  %v3626_v10 = vld [vmem:[%s4677_s1 + $0x158] sm:$0xff]  }
  0x12   :  { %3142 = vmatprep.subr.bf16.mxu1 %v3599_v17  ;;  %v39_v45 = vld [vmem:[%s4678_s0 + $0xc0] sm:$0xff]  ;;  %v3621_v55 = vld [vmem:[%s4677_s1 + $0x188] sm:$0xff]   ;;  %v3627_v11 = vld [vmem:[%s4677_s1 + $0x118] sm:$0xff]  }
  0x13   :  { %v2752_v46 = vcombine.high %v31_v44, %v39_v45  ;;  %v2751_v51 = vcombine.low %v31_v44, %v39_v45  ;;  %v47_v56 = vld [vmem:[%s4678_s0 + $0x100] sm:$0xff]  ;;  %v48_v58 = vld [vmem:[%s4678_s0 + $0x108] sm:$0xff]  ;;  %v3628_v12 = vld [vmem:[%s4677_s1 + $0x1d8] sm:$0xff]  }
  0x14   :  { %3079 = vmatpush3.bf16.msra.mxu0 %v3600_v18  ;;  %v55_v57 = vld [vmem:[%s4678_s0 + $0x140] sm:$0xff]  ;;  %v56_v59 = vld [vmem:[%s4678_s0 + $0x148] sm:$0xff]  ;;  %v3629_v13 = vld [vmem:[%s4677_s1 + $0x198] sm:$0xff]  }
  0x15   :  { %3143 = vmatpush3.bf16.msra.mxu1 %v3601_v19  ;;  %3080 = vmatprep.subr.bf16.mxu0 %v3602_v20  ;;  %v2768_v60 = vcombine.high %v47_v56, %v55_v57  ;;  %v2770_v61 = vcombine.high %v48_v58, %v56_v59  ;;  %v2767_v2 = vcombine.low %v47_v56, %v55_v57  ;;  %v63_v3 = vld [vmem:[%s4678_s0 + $0x180] sm:$0xff]  ;;  %v64_v5 = vld [vmem:[%s4678_s0 + $0x188] sm:$0xff]  ;;  %v3639_v39 = vld [vmem:[%s4677_s1 + $0x130] sm:$0xff]  }
  0x16   :  { %3144 = vmatprep.subr.bf16.mxu1 %v3603_v21  ;;  %v71_v4 = vld [vmem:[%s4678_s0 + $0x1c0] sm:$0xff]  ;;  %v2769_v6 = vcombine.low %v48_v58, %v56_v59  ;;  %v72_v8 = vld [vmem:[%s4678_s0 + $0x1c8] sm:$0xff]  ;;  %v3643_v48 = vld [vmem:[%s4677_s1 + $0x138] sm:$0xff]  }
  0x17   :  { %v2784_v7 = vcombine.high %v63_v3, %v71_v4  ;;  %v2786_v9 = vcombine.high %v64_v5, %v72_v8  ;;  %v79_v14 = vld [vmem:[%s4678_s0 + $0x200] sm:$0xff]  ;;  %v80_v16 = vld [vmem:[%s4678_s0 + $0x208] sm:$0xff]  ;;  %v2783_v19 = vcombine.low %v63_v3, %v71_v4  ;;  %v2785_v21 = vcombine.low %v64_v5, %v72_v8  ;;  %v26_v3 = vld [vmem:[%s4678_s0 + $0x58] sm:$0xff] }
  0x18   :  { %3081 = vmatpush3.bf16.msra.mxu0 %v3604_v22  ;;  %v87_v15 = vld [vmem:[%s4678_s0 + $0x240] sm:$0xff]  ;;  %v88_v17 = vld [vmem:[%s4678_s0 + $0x248] sm:$0xff]  ;;  %v33_v8 = vld [vmem:[%s4678_s0 + $0x90] sm:$0xff] }
  0x19   :  { %3145 = vmatpush3.bf16.msra.mxu1 %v3605_v23  ;;  %3082 = vmatprep.subr.bf16.mxu0 %v3606_v24  ;;  %v3630_v18 = vld [vmem:[%s4677_s1 + $0x160] sm:$0xff]   ;;  %v2800_v22 = vcombine.high %v79_v14, %v87_v15  ;;  %v2802_v24 = vcombine.high %v80_v16, %v88_v17  ;;  %v3636_v32 = vld [vmem:[%s4677_s1 + $0x1e8] sm:$0xff]   ;;  %v2799_v34 = vcombine.low %v79_v14, %v87_v15 }
  0x1a   :  { %3146 = vmatprep.subr.bf16.mxu1 %v3607_v25  ;;  %v3631_v20 = vld [vmem:[%s4677_s1 + $0x120] sm:$0xff]   ;;  %v3637_v33 = vld [vmem:[%s4677_s1 + $0x1a8] sm:$0xff]  }
  0x1b   :  { %v3632_v23 = vld [vmem:[%s4677_s1 + $0x1e0] sm:$0xff]   ;;  %v112_v44 = vld [vmem:[%s4678_s0 + $0x308] sm:$0xff] }
  0x1c   :  { %3083 = vmatpush3.bf16.msra.mxu0 %v3608_v26  ;;  %v3633_v25 = vld [vmem:[%s4677_s1 + $0x1a0] sm:$0xff]   ;;  %v120_v45 = vld [vmem:[%s4678_s0 + $0x348] sm:$0xff] }
  0x1d   :  { %3147 = vmatpush3.bf16.msra.mxu1 %v3609_v27  ;;  %3084 = vmatprep.subr.bf16.mxu0 %v3610_v28  ;;  %v95_v26 = vld [vmem:[%s4678_s0 + $0x280] sm:$0xff]  ;;  %v3634_v28 = vld [vmem:[%s4677_s1 + $0x168] sm:$0xff]  }
  0x1e   :  { %3148 = vmatprep.subr.bf16.mxu1 %v3611_v29  ;;  %v103_v27 = vld [vmem:[%s4678_s0 + $0x2c0] sm:$0xff]  ;;  %v96_v29 = vld [vmem:[%s4678_s0 + $0x288] sm:$0xff] }
  0x1f   :  { %v2816_v36 = vcombine.high %v95_v26, %v103_v27  ;;  %v2815_v47 = vcombine.low %v95_v26, %v103_v27  ;;  %v3646_v56 = vld [vmem:[%s4677_s1 + $0x240] sm:$0xff]   ;;  %v128_v57 = vld [vmem:[%s4678_s0 + $0x388] sm:$0xff]  ;;  %v3654_v26 = vld [vmem:[%s4677_s1 + $0x250] sm:$0xff]  }
  0x20   :  { %3085 = vmatpush3.bf16.msra.mxu0 %v3612_v30  ;;  %v104_v30 = vld [vmem:[%s4678_s0 + $0x2c8] sm:$0xff]  ;;  %v3648_v58 = vld [vmem:[%s4677_s1 + $0x2c0] sm:$0xff]   ;;  %v3656_v27 = vld [vmem:[%s4677_s1 + $0x2d0] sm:$0xff]  }
  0x21   :  { %3149 = vmatpush3.bf16.msra.mxu1 %v3613_v31  ;;  %3198 = vmatprep.subr.bf16.mxu0 %v3614_v40  ;;  %v3635_v31 = vld [vmem:[%s4677_s1 + $0x128] sm:$0xff]   ;;  %v2818_v37 = vcombine.high %v96_v29, %v104_v30  ;;  %v3640_v40 = vld [vmem:[%s4677_s1 + $0x1f0] sm:$0xff]   ;;  %v3649_v15 = vld [vmem:[%s4677_s1 + $0x280] sm:$0xff]  }
  0x22   :  { %3262 = vmatprep.subr.bf16.mxu1 %v3616_v42  ;;  %v119_v42 = vld [vmem:[%s4678_s0 + $0x340] sm:$0xff]  ;;  %v136_v59 = vld [vmem:[%s4678_s0 + $0x3c8] sm:$0xff] }
  0x23   :  { %1840 = vmatmul.mubr.bf16.vlgmr.msra.gmra.mrb[0].mxu0 %v2735_v35  ;;  %v2801_v35 = vcombine.low %v80_v16, %v88_v17  ;;  %v2849_v5 = vcombine.low %v128_v57, %v136_v59  ;;  %v3650_v17 = vld [vmem:[%s4677_s1 + $0x248] sm:$0xff]  }
  0x24   :  { %1937 = vmatmul.mubr.bf16.vlgmr.msra.gmra.mrb[0].mxu1 %v2737_v38  ;;  %3199 = vmatpush3.bf16.msra.mxu0 %v3615_v41  ;;  %v3638_v38 = vld [vmem:[%s4677_s1 + $0x170] sm:$0xff]   ;;  %v111_v41 = vld [vmem:[%s4678_s0 + $0x300] sm:$0xff] }
  0x25   :  { %3263 = vmatpush3.bf16.msra.mxu1 %v3617_v43  ;;  %1847 = vmatprep.mubr.bf16.mxu0 %v2752_v46  ;;  %v3641_v43 = vld [vmem:[%s4677_s1 + $0x1b0] sm:$0xff]   ;;  %v3642_v46 = vld [vmem:[%s4677_s1 + $0x178] sm:$0xff]  }
  0x26   :  { %1944 = vmatprep.mubr.bf16.mxu1 %v2754_v49  ;;  %3200 = vmatprep.subr.bf16.mxu0 %v3618_v50  ;;  %v2817_v49 = vcombine.low %v96_v29, %v104_v30  ;;  %v2832_v50 = vcombine.high %v111_v41, %v119_v42 }
  0x27   :  { %3264 = vmatprep.subr.bf16.mxu1 %v3620_v54  ;;  %v127_v54 = vld [vmem:[%s4678_s0 + $0x380] sm:$0xff] }
  0x28   :  { %3201 = vmatpush3.bf16.msra.mxu0 %v3619_v52  ;;  %v2834_v52 = vcombine.high %v112_v44, %v120_v45 }
  0x29   :  { %3265 = vmatpush3.bf16.msra.mxu1 %v3621_v55  ;;  %3202 = vmatprep.subr.bf16.mxu0 %v3622_v62  ;;  %v135_v55 = vld [vmem:[%s4678_s0 + $0x3c0] sm:$0xff] }
  0x2a   :  { %3266 = vmatprep.subr.bf16.mxu1 %v3624_v0  ;;  %v2848_v62 = vcombine.high %v127_v54, %v135_v55  ;;  %v17_v0 = vld [vmem:[%s4678_s0 + $0x10] sm:$0xff]  ;;  %v2847_v4 = vcombine.low %v127_v54, %v135_v55  ;;  %v82_v54 = vld [vmem:[%s4678_s0 + $0x218] sm:$0xff] }
  0x2b   :  { %1848 = vmatmul.mubr.bf16.gmra.mrb[4].mxu0 %v2751_v51  ;;  %v3644_v51 = vld [vmem:[%s4677_s1 + $0x1f8] sm:$0xff]  }
  0x2c   :  { %1945 = vmatmul.mubr.bf16.gmra.mrb[4].mxu1 %v2753_v53  ;;  %1855 = vmatprep.mubr.bf16.mxu0 %v2768_v60  ;;  %v3645_v53 = vld [vmem:[%s4677_s1 + $0x1b8] sm:$0xff]   ;;  %v2831_v60 = vcombine.low %v111_v41, %v119_v42  ;;  %v3662_v42 = vld [vmem:[%s4677_s1 + $0x260] sm:$0xff]  }
  0x2d   :  { %1952 = vmatprep.mubr.bf16.mxu1 %v2770_v61  ;;  %3203 = vmatpush3.bf16.msra.mxu0 %v3623_v63  ;;  %v2833_v61 = vcombine.low %v112_v44, %v120_v45  ;;  %v2850_v63 = vcombine.high %v128_v57, %v136_v59  ;;  %v3661_v41 = vld [vmem:[%s4677_s1 + $0x298] sm:$0xff]   ;;  %v3664_v44 = vld [vmem:[%s4677_s1 + $0x2e0] sm:$0xff]   ;;  %v3669_v57 = vld [vmem:[%s4677_s1 + $0x2a8] sm:$0xff]  }
  0x2e   :  { %3267 = vmatpush3.bf16.msra.mxu1 %v3625_v1  ;;  %3204 = vmatprep.subr.bf16.mxu0 %v3626_v10  ;;  %v25_v1 = vld [vmem:[%s4678_s0 + $0x50] sm:$0xff]  ;;  %v90_v55 = vld [vmem:[%s4678_s0 + $0x258] sm:$0xff] }
  0x2f   :  { %3268 = vmatprep.subr.bf16.mxu1 %v3628_v12  ;;  %v2739_v10 = vcombine.low %v17_v0, %v25_v1  ;;  %v34_v12 = vld [vmem:[%s4678_s0 + $0x98] sm:$0xff] }
  0x31   :  { %3205 = vmatpush3.bf16.msra.mxu0 %v3627_v11  ;;  %v3647_v11 = vld [vmem:[%s4677_s1 + $0x200] sm:$0xff]  }
  0x32   :  { %3269 = vmatpush3.bf16.msra.mxu1 %v3629_v13  ;;  %3206 = vmatprep.subr.bf16.mxu0 %v3630_v18  ;;  %v42_v13 = vld [vmem:[%s4678_s0 + $0xd8] sm:$0xff] }
  0x33   :  { %1856 = vmatmul.mubr.bf16.gmra.mrb[8].mxu0 %v2767_v2  ;;  %3270 = vmatprep.subr.bf16.mxu1 %v3632_v23  ;;  %v18_v2 = vld [vmem:[%s4678_s0 + $0x18] sm:$0xff]  ;;  %v2758_v18 = vcombine.high %v34_v12, %v42_v13  ;;  %v57_v23 = vld [vmem:[%s4678_s0 + $0x150] sm:$0xff]  ;;  %v2757_v29 = vcombine.low %v34_v12, %v42_v13  ;;  %v3680_v12 = vld [vmem:[%s4677_s1 + $0x3c0] sm:$0xff]   ;;  %v2805_v13 = vcombine.low %v82_v54, %v90_v55 }
  0x34   :  { %1953 = vmatmul.mubr.bf16.gmra.mrb[8].mxu1 %v2769_v6  ;;  %1863 = vmatprep.mubr.bf16.mxu0 %v2784_v7  ;;  %v2740_v6 = vcombine.high %v17_v0, %v25_v1  ;;  %v2742_v7 = vcombine.high %v18_v2, %v26_v3  ;;  %v2741_v14 = vcombine.low %v18_v2, %v26_v3  ;;  %v3671_v0 = vld [vmem:[%s4677_s1 + $0x230] sm:$0xff]   ;;  %v3674_v2 = vld [vmem:[%s4677_s1 + $0x278] sm:$0xff]  }
  0x35   :  { %1960 = vmatprep.mubr.bf16.mxu1 %v2786_v9  ;;  %3207 = vmatpush3.bf16.msra.mxu0 %v3631_v20  ;;  %v41_v9 = vld [vmem:[%s4678_s0 + $0xd0] sm:$0xff]  ;;  %v3652_v20 = vld [vmem:[%s4677_s1 + $0x2c8] sm:$0xff]  }
  0x36   :  { %3271 = vmatpush3.bf16.msra.mxu1 %v3633_v25  ;;  %3208 = vmatprep.subr.bf16.mxu0 %v3634_v28  ;;  %v2756_v16 = vcombine.high %v33_v8, %v41_v9  ;;  %v58_v25 = vld [vmem:[%s4678_s0 + $0x158] sm:$0xff]  ;;  %v2755_v28 = vcombine.low %v33_v8, %v41_v9  ;;  %v3673_v1 = vld [vmem:[%s4677_s1 + $0x2b0] sm:$0xff]  }
  0x37   :  { %3272 = vmatprep.subr.bf16.mxu1 %v3636_v32  ;;  %v3655_v32 = vld [vmem:[%s4677_s1 + $0x210] sm:$0xff]   ;;  %v3675_v8 = vld [vmem:[%s4677_s1 + $0x238] sm:$0xff]  }
  0x38   :  { %v97_v3 = vld [vmem:[%s4678_s0 + $0x290] sm:$0xff]  ;;  %v3677_v9 = vld [vmem:[%s4677_s1 + $0x2b8] sm:$0xff]  }
  0x39   :  { %3209 = vmatpush3.bf16.msra.mxu0 %v3635_v31 }
  0x3a   :  { %3273 = vmatpush3.bf16.msra.mxu1 %v3637_v33  ;;  %3210 = vmatprep.subr.bf16.mxu0 %v3638_v38  ;;  %v3657_v33 = vld [vmem:[%s4677_s1 + $0x290] sm:$0xff]   ;;  %v66_v38 = vld [vmem:[%s4678_s0 + $0x198] sm:$0xff] }
  0x3b   :  { %1864 = vmatmul.mubr.bf16.gmra.mrb[12].mxu0 %v2783_v19  ;;  %3274 = vmatprep.subr.bf16.mxu1 %v3640_v40  ;;  %v3651_v19 = vld [vmem:[%s4677_s1 + $0x208] sm:$0xff]   ;;  %v3659_v40 = vld [vmem:[%s4677_s1 + $0x218] sm:$0xff]  }
  0x3c   :  { %1961 = vmatmul.mubr.bf16.gmra.mrb[12].mxu1 %v2785_v21  ;;  %1871 = vmatprep.mubr.bf16.mxu0 %v2800_v22  ;;  %v3653_v21 = vld [vmem:[%s4677_s1 + $0x288] sm:$0xff]   ;;  %v49_v22 = vld [vmem:[%s4678_s0 + $0x110] sm:$0xff] }
  0x3d   :  { %1968 = vmatprep.mubr.bf16.mxu1 %v2802_v24  ;;  %3211 = vmatpush3.bf16.msra.mxu0 %v3639_v39  ;;  %v50_v24 = vld [vmem:[%s4678_s0 + $0x118] sm:$0xff]  ;;  %v2772_v30 = vcombine.high %v49_v22, %v57_v23 }
  0x3e   :  { %3275 = vmatpush3.bf16.msra.mxu1 %v3641_v43  ;;  %3212 = vmatprep.subr.bf16.mxu0 %v3642_v46  ;;  %v2774_v31 = vcombine.high %v50_v24, %v58_v25  ;;  %v74_v39 = vld [vmem:[%s4678_s0 + $0x1d8] sm:$0xff]  ;;  %v2771_v43 = vcombine.low %v49_v22, %v57_v23  ;;  %v2773_v45 = vcombine.low %v50_v24, %v58_v25  ;;  %v129_v24 = vld [vmem:[%s4678_s0 + $0x390] sm:$0xff] }
  0x3f   :  { %3276 = vmatprep.subr.bf16.mxu1 %v3644_v51  ;;  %v81_v51 = vld [vmem:[%s4678_s0 + $0x210] sm:$0xff] }
  0x40   :  { %v137_v25 = vld [vmem:[%s4678_s0 + $0x3d0] sm:$0xff] }
  0x41   :  { %3213 = vmatpush3.bf16.msra.mxu0 %v3643_v48  ;;  %v2790_v48 = vcombine.high %v66_v38, %v74_v39 }
  0x42   :  { %3277 = vmatpush3.bf16.msra.mxu1 %v3645_v53  ;;  %3326 = vmatprep.subr.bf16.mxu0 %v3646_v56  ;;  %v89_v53 = vld [vmem:[%s4678_s0 + $0x250] sm:$0xff]  ;;  %v3667_v56 = vld [vmem:[%s4677_s1 + $0x228] sm:$0xff]  }
  0x43   :  { %1872 = vmatmul.mubr.bf16.gmra.mrb[16].mxu0 %v2799_v34  ;;  %3390 = vmatprep.subr.bf16.mxu1 %v3648_v58  ;;  %v3658_v34 = vld [vmem:[%s4677_s1 + $0x258] sm:$0xff]   ;;  %v3670_v58 = vld [vmem:[%s4677_s1 + $0x270] sm:$0xff]  }
  0x44   :  { %1969 = vmatmul.mubr.bf16.gmra.mrb[16].mxu1 %v2801_v35  ;;  %1879 = vmatprep.mubr.bf16.mxu0 %v2816_v36  ;;  %v65_v35 = vld [vmem:[%s4678_s0 + $0x190] sm:$0xff] }
  0x45   :  { %1976 = vmatprep.mubr.bf16.mxu1 %v2818_v37  ;;  %v73_v36 = vld [vmem:[%s4678_s0 + $0x1d0] sm:$0xff]  ;;  %v3660_v37 = vld [vmem:[%s4677_s1 + $0x2d8] sm:$0xff]  }
  0x46   :  { %v2788_v46 = vcombine.high %v65_v35, %v73_v36  ;;  %v2787_v59 = vcombine.low %v65_v35, %v73_v36  ;;  %v28_v35 = vld [vmem:[%s4678_s0 + $0x68] sm:$0xff]  ;;  %v2851_v36 = vcombine.low %v129_v24, %v137_v25 }
  0x4b   :  { %1880 = vmatmul.mubr.bf16.gmra.mrb[20].mxu0 %v2815_v47  ;;  %v3663_v47 = vld [vmem:[%s4677_s1 + $0x220] sm:$0xff]  }
  0x4c   :  { %1977 = vmatmul.mubr.bf16.gmra.mrb[20].mxu1 %v2817_v49  ;;  %1887 = vmatprep.mubr.bf16.mxu0 %v2832_v50  ;;  %v3665_v49 = vld [vmem:[%s4677_s1 + $0x2a0] sm:$0xff]   ;;  %v3666_v50 = vld [vmem:[%s4677_s1 + $0x268] sm:$0xff]  }
  0x4d   :  { %1984 = vmatprep.mubr.bf16.mxu1 %v2834_v52  ;;  %v3668_v52 = vld [vmem:[%s4677_s1 + $0x2e8] sm:$0xff]  }
  0x53   :  { %1888 = vmatmul.mubr.bf16.gmra.mrb[24].mxu0 %v2831_v60  ;;  %v3672_v60 = vld [vmem:[%s4677_s1 + $0x2f0] sm:$0xff]  }
  0x54   :  { %1985 = vmatmul.mubr.bf16.gmra.mrb[24].mxu1 %v2833_v61  ;;  %1895 = vmatprep.mubr.bf16.mxu0 %v2848_v62  ;;  %v2789_v61 = vcombine.low %v66_v38, %v74_v39  ;;  %v2804_v62 = vcombine.high %v81_v51, %v89_v53 }
  0x55   :  { %1992 = vmatprep.mubr.bf16.mxu1 %v2850_v63  ;;  %v2806_v63 = vcombine.high %v82_v54, %v90_v55  ;;  %v51_v54 = vld [vmem:[%s4678_s0 + $0x120] sm:$0xff] }
  0x56   :  { %v59_v55 = vld [vmem:[%s4678_s0 + $0x160] sm:$0xff] }
  0x5b   :  { %1896 = vmatmul.mubr.bf16.gmra.mrb[28].mxu0 %v2847_v4  ;;  %v105_v4 = vld [vmem:[%s4678_s0 + $0x2d0] sm:$0xff] }
  0x5c   :  { %1993 = vmatmul.mubr.bf16.gmra.mrb[28].mxu1 %v2849_v5  ;;  %2033 = vmatprep.mubr.bf16.mxu0 %v2740_v6  ;;  %v3676_v5 = vld [vmem:[%s4677_s1 + $0x2f8] sm:$0xff]  }
  0x5d   :  { %2130 = vmatprep.mubr.bf16.mxu1 %v2742_v7  ;;  %v98_v6 = vld [vmem:[%s4678_s0 + $0x298] sm:$0xff] }
  0x5e   :  { %v106_v7 = vld [vmem:[%s4678_s0 + $0x2d8] sm:$0xff] }
  0x63   :  { %2034 = vmatmul.mubr.bf16.vlgmr.msra.gmra.mrb[32].mxu0 %v2739_v10  ;;  %v3678_v10 = vld [vmem:[%s4677_s1 + $0x340] sm:$0xff]  }
  0x64   :  { %2131 = vmatmul.mubr.bf16.vlgmr.msra.gmra.mrb[32].mxu1 %v2741_v14  ;;  %3327 = vmatpush3.bf16.msra.mxu0 %v3647_v11  ;;  %v2803_v11 = vcombine.low %v81_v51, %v89_v53  ;;  %v2820_v14 = vcombine.high %v97_v3, %v105_v4  ;;  %v3684_v51 = vld [vmem:[%s4677_s1 + $0x3c8] sm:$0xff]  }
  0x65   :  { %3391 = vmatpush3.bf16.msra.mxu1 %v3649_v15  ;;  %2041 = vmatprep.mubr.bf16.mxu0 %v2756_v16  ;;  %v2822_v15 = vcombine.high %v98_v6, %v106_v7  ;;  %v113_v16 = vld [vmem:[%s4678_s0 + $0x310] sm:$0xff]  ;;  %v3685_v53 = vld [vmem:[%s4677_s1 + $0x388] sm:$0xff]  }
  0x66   :  { %2138 = vmatprep.mubr.bf16.mxu1 %v2758_v18  ;;  %3328 = vmatprep.subr.bf16.mxu0 %v3650_v17  ;;  %v121_v17 = vld [vmem:[%s4678_s0 + $0x350] sm:$0xff]  ;;  %v114_v18 = vld [vmem:[%s4678_s0 + $0x318] sm:$0xff] }
  0x67   :  { %3392 = vmatprep.subr.bf16.mxu1 %v3652_v20  ;;  %v2819_v20 = vcombine.low %v97_v3, %v105_v4  ;;  %v2836_v22 = vcombine.high %v113_v16, %v121_v17  ;;  %v3692_v3 = vld [vmem:[%s4677_s1 + $0x3d8] sm:$0xff]   ;;  %v67_v4 = vld [vmem:[%s4678_s0 + $0x1a0] sm:$0xff] }
  0x68   :  { %3329 = vmatpush3.bf16.msra.mxu0 %v3651_v19  ;;  %v122_v19 = vld [vmem:[%s4678_s0 + $0x358] sm:$0xff] }
  0x69   :  { %3393 = vmatpush3.bf16.msra.mxu1 %v3653_v21  ;;  %3330 = vmatprep.subr.bf16.mxu0 %v3654_v26  ;;  %v2821_v21 = vcombine.low %v98_v6, %v106_v7  ;;  %v2838_v23 = vcombine.high %v114_v18, %v122_v19  ;;  %v130_v26 = vld [vmem:[%s4678_s0 + $0x398] sm:$0xff]  ;;  %v68_v6 = vld [vmem:[%s4678_s0 + $0x1a8] sm:$0xff] }
  0x6a   :  { %3394 = vmatprep.subr.bf16.mxu1 %v3656_v27  ;;  %v138_v27 = vld [vmem:[%s4678_s0 + $0x3d8] sm:$0xff] }
  0x6b   :  { %2042 = vmatmul.mubr.bf16.gmra.mrb[36].mxu0 %v2755_v28  ;;  %v2835_v28 = vcombine.low %v113_v16, %v121_v17  ;;  %v3691_v7 = vld [vmem:[%s4677_s1 + $0x318] sm:$0xff]   ;;  %v3695_v16 = vld [vmem:[%s4677_s1 + $0x320] sm:$0xff]  }
  0x6c   :  { %2139 = vmatmul.mubr.bf16.gmra.mrb[36].mxu1 %v2757_v29  ;;  %2049 = vmatprep.mubr.bf16.mxu0 %v2772_v30  ;;  %v2837_v29 = vcombine.low %v114_v18, %v122_v19  ;;  %v2852_v30 = vcombine.high %v129_v24, %v137_v25  ;;  %v3697_v17 = vld [vmem:[%s4677_s1 + $0x3a0] sm:$0xff]   ;;  %v3698_v18 = vld [vmem:[%s4677_s1 + $0x368] sm:$0xff]  }
  0x6d   :  { %2146 = vmatprep.mubr.bf16.mxu1 %v2774_v31  ;;  %3331 = vmatpush3.bf16.msra.mxu0 %v3655_v32  ;;  %v2854_v31 = vcombine.high %v130_v26, %v138_v27  ;;  %v19_v32 = vld [vmem:[%s4678_s0 + $0x20] sm:$0xff]  ;;  %v3700_v19 = vld [vmem:[%s4677_s1 + $0x3e8] sm:$0xff]  }
  0x6e   :  { %3395 = vmatpush3.bf16.msra.mxu1 %v3657_v33  ;;  %3332 = vmatprep.subr.bf16.mxu0 %v3658_v34  ;;  %v27_v33 = vld [vmem:[%s4678_s0 + $0x60] sm:$0xff]  ;;  %v20_v34 = vld [vmem:[%s4678_s0 + $0x28] sm:$0xff] }
  0x6f   :  { %3396 = vmatprep.subr.bf16.mxu1 %v3660_v37  ;;  %v2853_v37 = vcombine.low %v130_v26, %v138_v27  ;;  %v2744_v38 = vcombine.high %v19_v32, %v27_v33  ;;  %v2746_v39 = vcombine.high %v20_v34, %v28_v35  ;;  %v92_v24 = vld [vmem:[%s4678_s0 + $0x268] sm:$0xff]  ;;  %v3702_v26 = vld [vmem:[%s4677_s1 + $0x370] sm:$0xff]  }
  0x70   :  { %v3701_v25 = vld [vmem:[%s4677_s1 + $0x3a8] sm:$0xff]  }
  0x71   :  { %3333 = vmatpush3.bf16.msra.mxu0 %v3659_v40  ;;  %v35_v40 = vld [vmem:[%s4678_s0 + $0xa0] sm:$0xff] }
  0x72   :  { %3397 = vmatpush3.bf16.msra.mxu1 %v3661_v41  ;;  %3334 = vmatprep.subr.bf16.mxu0 %v3662_v42  ;;  %v43_v41 = vld [vmem:[%s4678_s0 + $0xe0] sm:$0xff]  ;;  %v2743_v42 = vcombine.low %v19_v32, %v27_v33  ;;  %v3703_v32 = vld [vmem:[%s4677_s1 + $0x330] sm:$0xff]  }
  0x73   :  { %2050 = vmatmul.mubr.bf16.gmra.mrb[40].mxu0 %v2771_v43  ;;  %3398 = vmatprep.subr.bf16.mxu1 %v3664_v44  ;;  %v36_v43 = vld [vmem:[%s4678_s0 + $0xa8] sm:$0xff]  ;;  %v3705_v33 = vld [vmem:[%s4677_s1 + $0x3b0] sm:$0xff]  }
  0x74   :  { %2147 = vmatmul.mubr.bf16.gmra.mrb[40].mxu1 %v2773_v45  ;;  %2057 = vmatprep.mubr.bf16.mxu0 %v2788_v46  ;;  %v44_v44 = vld [vmem:[%s4678_s0 + $0xe8] sm:$0xff]  ;;  %v2745_v45 = vcombine.low %v20_v34, %v28_v35  ;;  %v3679_v46 = vld [vmem:[%s4677_s1 + $0x300] sm:$0xff]   ;;  %v3706_v34 = vld [vmem:[%s4677_s1 + $0x378] sm:$0xff]  }
  0x75   :  { %2154 = vmatprep.mubr.bf16.mxu1 %v2790_v48  ;;  %3335 = vmatpush3.bf16.msra.mxu0 %v3663_v47  ;;  %v3681_v47 = vld [vmem:[%s4677_s1 + $0x380] sm:$0xff]   ;;  %v2760_v48 = vcombine.high %v35_v40, %v43_v41  ;;  %v3708_v35 = vld [vmem:[%s4677_s1 + $0x3f8] sm:$0xff]  }
  0x76   :  { %3399 = vmatpush3.bf16.msra.mxu1 %v3665_v49  ;;  %3336 = vmatprep.subr.bf16.mxu0 %v3666_v50  ;;  %v2762_v49 = vcombine.high %v36_v43, %v44_v44  ;;  %v3682_v50 = vld [vmem:[%s4677_s1 + $0x348] sm:$0xff]  }
  0x77   :  { %3400 = vmatprep.subr.bf16.mxu1 %v3668_v52  ;;  %v3683_v52 = vld [vmem:[%s4677_s1 + $0x308] sm:$0xff]  }
  0x79   :  { %3337 = vmatpush3.bf16.msra.mxu0 %v3667_v56  ;;  %v3686_v56 = vld [vmem:[%s4677_s1 + $0x350] sm:$0xff]  }
  0x7a   :  { %3401 = vmatpush3.bf16.msra.mxu1 %v3669_v57  ;;  %3338 = vmatprep.subr.bf16.mxu0 %v3670_v58  ;;  %v52_v57 = vld [vmem:[%s4678_s0 + $0x128] sm:$0xff] }
  0x7b   :  { %2058 = vmatmul.mubr.bf16.gmra.mrb[44].mxu0 %v2787_v59  ;;  %3402 = vmatprep.subr.bf16.mxu1 %v3672_v60  ;;  %v60_v58 = vld [vmem:[%s4678_s0 + $0x168] sm:$0xff]  ;;  %v3688_v59 = vld [vmem:[%s4677_s1 + $0x3d0] sm:$0xff]   ;;  %v2759_v60 = vcombine.low %v35_v40, %v43_v41  ;;  %v3709_v41 = vld [vmem:[%s4677_s1 + $0x3b8] sm:$0xff]  }
  0x7c   :  { %2155 = vmatmul.mubr.bf16.gmra.mrb[44].mxu1 %v2789_v61  ;;  %2065 = vmatprep.mubr.bf16.mxu0 %v2804_v62  ;;  %v2761_v61 = vcombine.low %v36_v43, %v44_v44  ;;  %v2776_v62 = vcombine.high %v51_v54, %v59_v55  ;;  %v108_v40 = vld [vmem:[%s4678_s0 + $0x2e8] sm:$0xff] }
  0x7d   :  { %2162 = vmatprep.mubr.bf16.mxu1 %v2806_v63  ;;  %3339 = vmatpush3.bf16.msra.mxu0 %v3671_v0  ;;  %v2778_v63 = vcombine.high %v52_v57, %v60_v58  ;;  %v3687_v0 = vld [vmem:[%s4677_s1 + $0x310] sm:$0xff]  }
  0x7e   :  { %3403 = vmatpush3.bf16.msra.mxu1 %v3673_v1  ;;  %3340 = vmatprep.subr.bf16.mxu0 %v3674_v2  ;;  %v3689_v1 = vld [vmem:[%s4677_s1 + $0x390] sm:$0xff]   ;;  %v3690_v2 = vld [vmem:[%s4677_s1 + $0x358] sm:$0xff]  }
  0x7f   :  { %3404 = vmatprep.subr.bf16.mxu1 %v3676_v5  ;;  %v75_v5 = vld [vmem:[%s4678_s0 + $0x1e0] sm:$0xff] }
  0x80   :  { %v2791_v27 = vcombine.low %v67_v4, %v75_v5 }
  0x81   :  { %3341 = vmatpush3.bf16.msra.mxu0 %v3675_v8  ;;  %v76_v8 = vld [vmem:[%s4678_s0 + $0x1e8] sm:$0xff] }
  0x82   :  { %3405 = vmatpush3.bf16.msra.mxu1 %v3677_v9  ;;  %3454 = vmatprep.subr.bf16.mxu0 %v3678_v10  ;;  %v3693_v9 = vld [vmem:[%s4677_s1 + $0x398] sm:$0xff]   ;;  %v3694_v10 = vld [vmem:[%s4677_s1 + $0x360] sm:$0xff]  }
  0x83   :  { %2066 = vmatmul.mubr.bf16.gmra.mrb[48].mxu0 %v2803_v11  ;;  %3518 = vmatprep.subr.bf16.mxu1 %v3680_v12  ;;  %v2775_v11 = vcombine.low %v51_v54, %v59_v55  ;;  %v3696_v12 = vld [vmem:[%s4677_s1 + $0x3e0] sm:$0xff]  }
  0x84   :  { %2163 = vmatmul.mubr.bf16.gmra.mrb[48].mxu1 %v2805_v13  ;;  %2073 = vmatprep.mubr.bf16.mxu0 %v2820_v14  ;;  %v2777_v13 = vcombine.low %v52_v57, %v60_v58  ;;  %v2792_v14 = vcombine.high %v67_v4, %v75_v5  ;;  %v131_v54 = vld [vmem:[%s4678_s0 + $0x3a0] sm:$0xff]  ;;  %v140_v57 = vld [vmem:[%s4678_s0 + $0x3e8] sm:$0xff] }
  0x85   :  { %2170 = vmatprep.mubr.bf16.mxu1 %v2822_v15  ;;  %v2794_v15 = vcombine.high %v68_v6, %v76_v8  ;;  %v139_v55 = vld [vmem:[%s4678_s0 + $0x3e0] sm:$0xff] }
  0x8b   :  { %2074 = vmatmul.mubr.bf16.gmra.mrb[52].mxu0 %v2819_v20  ;;  %v83_v20 = vld [vmem:[%s4678_s0 + $0x220] sm:$0xff] }
  0x8c   :  { %2171 = vmatmul.mubr.bf16.gmra.mrb[52].mxu1 %v2821_v21  ;;  %2081 = vmatprep.mubr.bf16.mxu0 %v2836_v22  ;;  %v91_v21 = vld [vmem:[%s4678_s0 + $0x260] sm:$0xff]  ;;  %v84_v22 = vld [vmem:[%s4678_s0 + $0x228] sm:$0xff] }
  0x8d   :  { %2178 = vmatprep.mubr.bf16.mxu1 %v2838_v23  ;;  %v3699_v23 = vld [vmem:[%s4677_s1 + $0x328] sm:$0xff]   ;;  %v2809_v43 = vcombine.low %v84_v22, %v92_v24 }
  0x93   :  { %2082 = vmatmul.mubr.bf16.gmra.mrb[56].mxu0 %v2835_v28  ;;  %v3704_v28 = vld [vmem:[%s4677_s1 + $0x3f0] sm:$0xff]  }
  0x94   :  { %2179 = vmatmul.mubr.bf16.gmra.mrb[56].mxu1 %v2837_v29  ;;  %2089 = vmatprep.mubr.bf16.mxu0 %v2852_v30  ;;  %v2793_v29 = vcombine.low %v68_v6, %v76_v8  ;;  %v2808_v30 = vcombine.high %v83_v20, %v91_v21  ;;  %v37_v6 = vld [vmem:[%s4678_s0 + $0xb0] sm:$0xff]  ;;  %v38_v8 = vld [vmem:[%s4678_s0 + $0xb8] sm:$0xff] }
  0x95   :  { %2186 = vmatprep.mubr.bf16.mxu1 %v2854_v31  ;;  %v2810_v31 = vcombine.high %v84_v22, %v92_v24  ;;  %v69_v22 = vld [vmem:[%s4678_s0 + $0x1b0] sm:$0xff]  ;;  %v70_v24 = vld [vmem:[%s4678_s0 + $0x1b8] sm:$0xff] }
  0x9b   :  { %2090 = vmatmul.mubr.bf16.gmra.mrb[60].mxu0 %v2851_v36  ;;  %v99_v36 = vld [vmem:[%s4678_s0 + $0x2a0] sm:$0xff] }
  0x9c   :  { %2187 = vmatmul.mubr.bf16.gmra.mrb[60].mxu1 %v2853_v37  ;;  %2227 = vmatprep.mubr.bf16.mxu0 %v2744_v38  ;;  %v107_v37 = vld [vmem:[%s4678_s0 + $0x2e0] sm:$0xff]  ;;  %v3707_v38 = vld [vmem:[%s4677_s1 + $0x338] sm:$0xff]  }
  0x9d   :  { %2324 = vmatprep.mubr.bf16.mxu1 %v2746_v39  ;;  %v100_v39 = vld [vmem:[%s4678_s0 + $0x2a8] sm:$0xff]  ;;  %v2824_v44 = vcombine.high %v99_v36, %v107_v37 }
  0xa3   :  { %2228 = vmatmul.mubr.bf16.vlgmr.msra.gmra.mrb[64].mxu0 %v2743_v42  ;;  %v2807_v42 = vcombine.low %v83_v20, %v91_v21 }
  0xa4   :  { %2325 = vmatmul.mubr.bf16.vlgmr.msra.gmra.mrb[64].mxu1 %v2745_v45  ;;  %3455 = vmatpush3.bf16.msra.mxu0 %v3679_v46  ;;  %v2826_v45 = vcombine.high %v100_v39, %v108_v40  ;;  %v115_v46 = vld [vmem:[%s4678_s0 + $0x320] sm:$0xff] }
  0xa5   :  { %3519 = vmatpush3.bf16.msra.mxu1 %v3681_v47  ;;  %2235 = vmatprep.mubr.bf16.mxu0 %v2760_v48  ;;  %v123_v47 = vld [vmem:[%s4678_s0 + $0x360] sm:$0xff]  ;;  %v116_v48 = vld [vmem:[%s4678_s0 + $0x328] sm:$0xff] }
  0xa6   :  { %2332 = vmatprep.mubr.bf16.mxu1 %v2762_v49  ;;  %3456 = vmatprep.subr.bf16.mxu0 %v3682_v50  ;;  %v124_v49 = vld [vmem:[%s4678_s0 + $0x368] sm:$0xff]  ;;  %v2823_v50 = vcombine.low %v99_v36, %v107_v37  ;;  %v2839_v58 = vcombine.low %v115_v46, %v123_v47 }
  0xa7   :  { %3520 = vmatprep.subr.bf16.mxu1 %v3684_v51  ;;  %v2825_v51 = vcombine.low %v100_v39, %v108_v40 }
  0xa8   :  { %3457 = vmatpush3.bf16.msra.mxu0 %v3683_v52  ;;  %v2840_v52 = vcombine.high %v115_v46, %v123_v47 }
  0xa9   :  { %3521 = vmatpush3.bf16.msra.mxu1 %v3685_v53  ;;  %3458 = vmatprep.subr.bf16.mxu0 %v3686_v56  ;;  %v2842_v53 = vcombine.high %v116_v48, %v124_v49  ;;  %v132_v56 = vld [vmem:[%s4678_s0 + $0x3a8] sm:$0xff] }
  0xaa   :  { %3522 = vmatprep.subr.bf16.mxu1 %v3688_v59  ;;  %v2841_v59 = vcombine.low %v116_v48, %v124_v49 }
  0xab   :  { %2236 = vmatmul.mubr.bf16.gmra.mrb[68].mxu0 %v2759_v60  ;;  %v2856_v60 = vcombine.high %v131_v54, %v139_v55 }
  0xac   :  { %2333 = vmatmul.mubr.bf16.gmra.mrb[68].mxu1 %v2761_v61  ;;  %2243 = vmatprep.mubr.bf16.mxu0 %v2776_v62  ;;  %v2858_v61 = vcombine.high %v132_v56, %v140_v57  ;;  %v21_v62 = vld [vmem:[%s4678_s0 + $0x30] sm:$0xff] }
  0xad   :  { %2340 = vmatprep.mubr.bf16.mxu1 %v2778_v63  ;;  %3459 = vmatpush3.bf16.msra.mxu0 %v3687_v0  ;;  %v29_v63 = vld [vmem:[%s4678_s0 + $0x70] sm:$0xff]  ;;  %v22_v0 = vld [vmem:[%s4678_s0 + $0x38] sm:$0xff] }
  0xae   :  { %3523 = vmatpush3.bf16.msra.mxu1 %v3689_v1  ;;  %3460 = vmatprep.subr.bf16.mxu0 %v3690_v2  ;;  %v30_v1 = vld [vmem:[%s4678_s0 + $0x78] sm:$0xff]  ;;  %v2855_v2 = vcombine.low %v131_v54, %v139_v55  ;;  %v2748_v4 = vcombine.high %v21_v62, %v29_v63 }
  0xaf   :  { %3524 = vmatprep.subr.bf16.mxu1 %v3692_v3  ;;  %v2857_v3 = vcombine.low %v132_v56, %v140_v57  ;;  %v2750_v5 = vcombine.high %v22_v0, %v30_v1  ;;  %v102_v55 = vld [vmem:[%s4678_s0 + $0x2b8] sm:$0xff] }
  0xb0   :  { %v110_v56 = vld [vmem:[%s4678_s0 + $0x2f8] sm:$0xff] }
  0xb1   :  { %3461 = vmatpush3.bf16.msra.mxu0 %v3691_v7  ;;  %v45_v7 = vld [vmem:[%s4678_s0 + $0xf0] sm:$0xff] }
  0xb2   :  { %3525 = vmatpush3.bf16.msra.mxu1 %v3693_v9  ;;  %3462 = vmatprep.subr.bf16.mxu0 %v3694_v10  ;;  %v46_v9 = vld [vmem:[%s4678_s0 + $0xf8] sm:$0xff]  ;;  %v2747_v10 = vcombine.low %v21_v62, %v29_v63 }
  0xb3   :  { %2244 = vmatmul.mubr.bf16.gmra.mrb[72].mxu0 %v2775_v11  ;;  %3526 = vmatprep.subr.bf16.mxu1 %v3696_v12  ;;  %v2749_v11 = vcombine.low %v22_v0, %v30_v1  ;;  %v2764_v12 = vcombine.high %v37_v6, %v45_v7 }
  0xb4   :  { %2341 = vmatmul.mubr.bf16.gmra.mrb[72].mxu1 %v2777_v13  ;;  %2251 = vmatprep.mubr.bf16.mxu0 %v2792_v14  ;;  %v2766_v13 = vcombine.high %v38_v8, %v46_v9  ;;  %v53_v14 = vld [vmem:[%s4678_s0 + $0x130] sm:$0xff] }
  0xb5   :  { %2348 = vmatprep.mubr.bf16.mxu1 %v2794_v15  ;;  %3463 = vmatpush3.bf16.msra.mxu0 %v3695_v16  ;;  %v61_v15 = vld [vmem:[%s4678_s0 + $0x170] sm:$0xff]  ;;  %v54_v16 = vld [vmem:[%s4678_s0 + $0x138] sm:$0xff] }
  0xb6   :  { %3527 = vmatpush3.bf16.msra.mxu1 %v3697_v17  ;;  %3464 = vmatprep.subr.bf16.mxu0 %v3698_v18  ;;  %v62_v17 = vld [vmem:[%s4678_s0 + $0x178] sm:$0xff]  ;;  %v2763_v18 = vcombine.low %v37_v6, %v45_v7  ;;  %v2780_v20 = vcombine.high %v53_v14, %v61_v15 }
  0xb7   :  { %3528 = vmatprep.subr.bf16.mxu1 %v3700_v19  ;;  %v2765_v19 = vcombine.low %v38_v8, %v46_v9  ;;  %v2782_v21 = vcombine.high %v54_v16, %v62_v17 }
  0xb9   :  { %3465 = vmatpush3.bf16.msra.mxu0 %v3699_v23  ;;  %v77_v23 = vld [vmem:[%s4678_s0 + $0x1f0] sm:$0xff] }
  0xba   :  { %3529 = vmatpush3.bf16.msra.mxu1 %v3701_v25  ;;  %3466 = vmatprep.subr.bf16.mxu0 %v3702_v26  ;;  %v78_v25 = vld [vmem:[%s4678_s0 + $0x1f8] sm:$0xff]  ;;  %v2779_v26 = vcombine.low %v53_v14, %v61_v15  ;;  %v2795_v37 = vcombine.low %v69_v22, %v77_v23 }
  0xbb   :  { %2252 = vmatmul.mubr.bf16.gmra.mrb[76].mxu0 %v2791_v27  ;;  %3530 = vmatprep.subr.bf16.mxu1 %v3704_v28  ;;  %v2781_v27 = vcombine.low %v54_v16, %v62_v17  ;;  %v2796_v28 = vcombine.high %v69_v22, %v77_v23  ;;  %v126_v14 = vld [vmem:[%s4678_s0 + $0x378] sm:$0xff] }
  0xbc   :  { %2349 = vmatmul.mubr.bf16.gmra.mrb[76].mxu1 %v2793_v29  ;;  %2259 = vmatprep.mubr.bf16.mxu0 %v2808_v30  ;;  %v2798_v29 = vcombine.high %v70_v24, %v78_v25  ;;  %v85_v30 = vld [vmem:[%s4678_s0 + $0x230] sm:$0xff] }
  0xbd   :  { %2356 = vmatprep.mubr.bf16.mxu1 %v2810_v31  ;;  %3467 = vmatpush3.bf16.msra.mxu0 %v3703_v32  ;;  %v93_v31 = vld [vmem:[%s4678_s0 + $0x270] sm:$0xff] }
  0xbe   :  { %3531 = vmatpush3.bf16.msra.mxu1 %v3705_v33  ;;  %3468 = vmatprep.subr.bf16.mxu0 %v3706_v34  ;;  %v86_v33 = vld [vmem:[%s4678_s0 + $0x238] sm:$0xff] }
  0xbf   :  { %3532 = vmatprep.subr.bf16.mxu1 %v3708_v35  ;;  %v94_v34 = vld [vmem:[%s4678_s0 + $0x278] sm:$0xff] }
  0xc0   :  { %v2814_v46 = vcombine.high %v86_v33, %v94_v34  ;;  %v2813_v63 = vcombine.low %v86_v33, %v94_v34  ;;  %v141_v33 = vld [vmem:[%s4678_s0 + $0x3f0] sm:$0xff] }
  0xc1   :  { %3469 = vmatpush3.bf16.msra.mxu0 %v3707_v38 }
  0xc2   :  { %3533 = vmatpush3.bf16.msra.mxu1 %v3709_v41  ;;  %v2797_v41 = vcombine.low %v70_v24, %v78_v25 }
  0xc3   :  { %2260 = vmatmul.mubr.bf16.gmra.mrb[80].mxu0 %v2807_v42  ;;  %v2812_v42 = vcombine.high %v85_v30, %v93_v31 }
  0xc4   :  { %2357 = vmatmul.mubr.bf16.gmra.mrb[80].mxu1 %v2809_v43  ;;  %2267 = vmatprep.mubr.bf16.mxu0 %v2824_v44 }
  0xc5   :  { %2364 = vmatprep.mubr.bf16.mxu1 %v2826_v45 }
  0xcb   :  { %2268 = vmatmul.mubr.bf16.gmra.mrb[84].mxu0 %v2823_v50 }
  0xcc   :  { %2365 = vmatmul.mubr.bf16.gmra.mrb[84].mxu1 %v2825_v51  ;;  %2275 = vmatprep.mubr.bf16.mxu0 %v2840_v52  ;;  %v101_v52 = vld [vmem:[%s4678_s0 + $0x2b0] sm:$0xff] }
  0xcd   :  { %2372 = vmatprep.mubr.bf16.mxu1 %v2842_v53  ;;  %v109_v53 = vld [vmem:[%s4678_s0 + $0x2f0] sm:$0xff] }
  0xce   :  { %v2828_v0 = vcombine.high %v101_v52, %v109_v53  ;;  %v2827_v17 = vcombine.low %v101_v52, %v109_v53 }
  0xd3   :  { %2276 = vmatmul.mubr.bf16.gmra.mrb[88].mxu0 %v2839_v58 }
  0xd4   :  { %2373 = vmatmul.mubr.bf16.gmra.mrb[88].mxu1 %v2841_v59  ;;  %2283 = vmatprep.mubr.bf16.mxu0 %v2856_v60  ;;  %v2811_v59 = vcombine.low %v85_v30, %v93_v31 }
  0xd5   :  { %2380 = vmatprep.mubr.bf16.mxu1 %v2858_v61 }
  0xdb   :  { %2284 = vmatmul.mubr.bf16.gmra.mrb[92].mxu0 %v2855_v2 }
  0xdc   :  { %2381 = vmatmul.mubr.bf16.gmra.mrb[92].mxu1 %v2857_v3  ;;  %2421 = vmatprep.mubr.bf16.mxu0 %v2748_v4  ;;  %v2830_v4 = vcombine.high %v102_v55, %v110_v56 }
  0xdd   :  { %2518 = vmatprep.mubr.bf16.mxu1 %v2750_v5 }
  0xe3   :  { %2422 = vmatmul.mubr.bf16.vlgmr.msra.gmra.mrb[96].mxu0 %v2747_v10  ;;  %v117_v10 = vld [vmem:[%s4678_s0 + $0x330] sm:$0xff] }
  0xe4   :  { %2519 = vmatmul.mubr.bf16.vlgmr.msra.gmra.mrb[96].mxu1 %v2749_v11  ;;  %2429 = vmatprep.mubr.bf16.mxu0 %v2764_v12  ;;  %v125_v11 = vld [vmem:[%s4678_s0 + $0x370] sm:$0xff] }
  0xe5   :  { %2526 = vmatprep.mubr.bf16.mxu1 %v2766_v13  ;;  %v118_v13 = vld [vmem:[%s4678_s0 + $0x338] sm:$0xff]  ;;  %v2844_v22 = vcombine.high %v117_v10, %v125_v11 }
  0xeb   :  { %2430 = vmatmul.mubr.bf16.gmra.mrb[100].mxu0 %v2763_v18 }
  0xec   :  { %2527 = vmatmul.mubr.bf16.gmra.mrb[100].mxu1 %v2765_v19  ;;  %2437 = vmatprep.mubr.bf16.mxu0 %v2780_v20 }
  0xed   :  { %2534 = vmatprep.mubr.bf16.mxu1 %v2782_v21  ;;  %v2829_v21 = vcombine.low %v102_v55, %v110_v56 }
  0xf3   :  { %2438 = vmatmul.mubr.bf16.gmra.mrb[104].mxu0 %v2779_v26  ;;  %v2846_v26 = vcombine.high %v118_v13, %v126_v14 }
  0xf4   :  { %2535 = vmatmul.mubr.bf16.gmra.mrb[104].mxu1 %v2781_v27  ;;  %2445 = vmatprep.mubr.bf16.mxu0 %v2796_v28 }
  0xf5   :  { %2542 = vmatprep.mubr.bf16.mxu1 %v2798_v29 }
  0xf6   :  { %v3086_v32 = vpop.f32.mrb[0].mxu0 }
  0xf7   :  { %v3150_v35 = vpop.f32.mrb[0].mxu1  ;;  %v3087_v36 = vpop.f32.mrb[1].mxu0 }
  0xf8   :  { %v3088_v38 = vadd.f32 %v3087_v36, %v3086_v32  ;;  %v3151_v39 = vpop.f32.mrb[1].mxu1  ;;  %v3089_v40 = vpop.f32.mrb[2].mxu0  ;;  %v133_v32 = vld [vmem:[%s4678_s0 + $0x3b0] sm:$0xff]  ;;  %v142_v36 = vld [vmem:[%s4678_s0 + $0x3f8] sm:$0xff] }
  0xf9   :  { %v3152_v43 = vadd.f32 %v3151_v39, %v3150_v35  ;;  %v3153_v44 = vpop.f32.mrb[2].mxu1  ;;  %v3090_v45 = vpop.f32.mrb[3].mxu0  ;;  %v134_v35 = vld [vmem:[%s4678_s0 + $0x3b8] sm:$0xff]  ;;  %v2843_v39 = vcombine.low %v117_v10, %v125_v11 }
  0xfa   :  { %v3091_v47 = vadd.f32 %v3090_v45, %v3089_v40  ;;  %v3154_v48 = vpop.f32.mrb[3].mxu1 }
  0xfb   :  { %v4467_v49 = vadd.f32 %v3152_v43, %v3088_v38  ;;  %v3155_v50 = vadd.f32 %v3154_v48, %v3153_v44  ;;  %2446 = vmatmul.mubr.bf16.gmra.mrb[108].mxu0 %v2795_v37  ;;  %v2845_v43 = vcombine.low %v118_v13, %v126_v14  ;;  %v2860_v44 = vcombine.high %v133_v32, %v141_v33 }
  0xfc   :  { %2543 = vmatmul.mubr.bf16.gmra.mrb[108].mxu1 %v2797_v41  ;;  %2453 = vmatprep.mubr.bf16.mxu0 %v2812_v42  ;;  %v2862_v48 = vcombine.high %v134_v35, %v142_v36 }
  0xfd   :  { %v4469_v51 = vadd.f32 %v3155_v50, %v3091_v47  ;;  %2550 = vmatprep.mubr.bf16.mxu1 %v2814_v46 }
  0xfe   :  { %v3092_v54 = vpop.f32.mrb[4].mxu0 }
  0xff   :  { %v3156_v57 = vpop.f32.mrb[4].mxu1  ;;  %v3093_v58 = vpop.f32.mrb[5].mxu0 }
 0x100   :  { %v3094_v60 = vadd.f32 %v3093_v58, %v3092_v54  ;;  %v3157_v61 = vpop.f32.mrb[5].mxu1  ;;  %v3095_v62 = vpop.f32.mrb[6].mxu0 }
 0x101   :  { %v3158_v1 = vadd.f32 %v3157_v61, %v3156_v57  ;;  %v3159_v2 = vpop.f32.mrb[6].mxu1  ;;  %v3096_v3 = vpop.f32.mrb[7].mxu0 }
 0x102   :  { %v3097_v5 = vadd.f32 %v3096_v3, %v3095_v62  ;;  %v3160_v6 = vpop.f32.mrb[7].mxu1 }
 0x103   :  { %v4483_v7 = vadd.f32 %v3158_v1, %v3094_v60  ;;  %v3161_v8 = vadd.f32 %v3160_v6, %v3159_v2  ;;  %2454 = vmatmul.mubr.bf16.gmra.mrb[112].mxu0 %v2811_v59  ;;  %v2859_v59 = vcombine.low %v133_v32, %v141_v33 }
 0x104   :  { %2551 = vmatmul.mubr.bf16.gmra.mrb[112].mxu1 %v2813_v63  ;;  %2461 = vmatprep.mubr.bf16.mxu0 %v2828_v0  ;;  %v2861_v63 = vcombine.low %v134_v35, %v142_v36 }
 0x105   :  { %v4485_v9 = vadd.f32 %v3161_v8, %v3097_v5  ;;  %2558 = vmatprep.mubr.bf16.mxu1 %v2830_v4 }
 0x106   :  { %v3098_v12 = vpop.f32.mrb[8].mxu0 }
 0x107   :  { %v3162_v15 = vpop.f32.mrb[8].mxu1  ;;  %v3099_v16 = vpop.f32.mrb[9].mxu0 }
 0x108   :  { %v3100_v18 = vadd.f32 %v3099_v16, %v3098_v12  ;;  %v3163_v19 = vpop.f32.mrb[9].mxu1  ;;  %v3101_v20 = vpop.f32.mrb[10].mxu0 }
 0x109   :  { %v3164_v23 = vadd.f32 %v3163_v19, %v3162_v15  ;;  %v3165_v24 = vpop.f32.mrb[10].mxu1  ;;  %v3102_v25 = vpop.f32.mrb[11].mxu0 }
 0x10a   :  { %v3103_v27 = vadd.f32 %v3102_v25, %v3101_v20  ;;  %v3166_v28 = vpop.f32.mrb[11].mxu1 }
 0x10b   :  { %v4499_v29 = vadd.f32 %v3164_v23, %v3100_v18  ;;  %v3167_v30 = vadd.f32 %v3166_v28, %v3165_v24  ;;  %2462 = vmatmul.mubr.bf16.gmra.mrb[116].mxu0 %v2827_v17 }
 0x10c   :  { %2559 = vmatmul.mubr.bf16.gmra.mrb[116].mxu1 %v2829_v21  ;;  %2469 = vmatprep.mubr.bf16.mxu0 %v2844_v22 }
 0x10d   :  { %v4501_v31 = vadd.f32 %v3167_v30, %v3103_v27  ;;  %2566 = vmatprep.mubr.bf16.mxu1 %v2846_v26 }
 0x10e   :  { %v3104_v34 = vpop.f32.mrb[12].mxu0 }
 0x10f   :  { %v3168_v37 = vpop.f32.mrb[12].mxu1  ;;  %v3105_v38 = vpop.f32.mrb[13].mxu0 }
 0x110   :  { %v3106_v40 = vadd.f32 %v3105_v38, %v3104_v34  ;;  %v3169_v41 = vpop.f32.mrb[13].mxu1  ;;  %v3107_v42 = vpop.f32.mrb[14].mxu0 }
 0x111   :  { %v3170_v45 = vadd.f32 %v3169_v41, %v3168_v37  ;;  %v3171_v46 = vpop.f32.mrb[14].mxu1  ;;  %v3108_v47 = vpop.f32.mrb[15].mxu0 }
 0x112   :  { %v3109_v50 = vadd.f32 %v3108_v47, %v3107_v42  ;;  %v3172_v52 = vpop.f32.mrb[15].mxu1 }
 0x113   :  { %v4515_v53 = vadd.f32 %v3170_v45, %v3106_v40  ;;  %v3173_v54 = vadd.f32 %v3172_v52, %v3171_v46  ;;  %2470 = vmatmul.mubr.bf16.gmra.mrb[120].mxu0 %v2843_v39 }
 0x114   :  { %2567 = vmatmul.mubr.bf16.gmra.mrb[120].mxu1 %v2845_v43  ;;  %2477 = vmatprep.mubr.bf16.mxu0 %v2860_v44 }
 0x115   :  { %v4517_v55 = vadd.f32 %v3173_v54, %v3109_v50  ;;  %2574 = vmatprep.mubr.bf16.mxu1 %v2862_v48 }
 0x116   :  { %v3110_v56 = vpop.f32.mrb[16].mxu0 }
 0x117   :  { %v3174_v57 = vpop.f32.mrb[16].mxu1  ;;  %v3111_v58 = vpop.f32.mrb[17].mxu0 }
 0x118   :  { %v3112_v60 = vadd.f32 %v3111_v58, %v3110_v56  ;;  %v3175_v61 = vpop.f32.mrb[17].mxu1  ;;  %v3113_v62 = vpop.f32.mrb[18].mxu0 }
 0x119   :  { %v3176_v0 = vadd.f32 %v3175_v61, %v3174_v57  ;;  %v3177_v1 = vpop.f32.mrb[18].mxu1  ;;  %v3114_v2 = vpop.f32.mrb[19].mxu0 }
 0x11a   :  { %v3115_v3 = vadd.f32 %v3114_v2, %v3113_v62  ;;  %v3178_v4 = vpop.f32.mrb[19].mxu1 }
 0x11b   :  { %v4519_v5 = vadd.f32 %v3176_v0, %v3112_v60  ;;  %v3179_v6 = vadd.f32 %v3178_v4, %v3177_v1  ;;  %2478 = vmatmul.mubr.bf16.gmra.mrb[124].mxu0 %v2859_v59 }
 0x11c   :  { %2575 = vmatmul.mubr.bf16.gmra.mrb[124].mxu1 %v2861_v63 }
 0x11d   :  { %v4521_v8 = vadd.f32 %v3179_v6, %v3115_v3 }
 0x11e   :  { %v3116_v10 = vpop.f32.mrb[20].mxu0 }
 0x11f   :  { %v3180_v11 = vpop.f32.mrb[20].mxu1  ;;  %v3117_v12 = vpop.f32.mrb[21].mxu0 }
 0x120   :  { %v3118_v13 = vadd.f32 %v3117_v12, %v3116_v10  ;;  %v3181_v14 = vpop.f32.mrb[21].mxu1  ;;  %v3119_v15 = vpop.f32.mrb[22].mxu0 }
 0x121   :  { %v3182_v16 = vadd.f32 %v3181_v14, %v3180_v11  ;;  %v3183_v17 = vpop.f32.mrb[22].mxu1  ;;  %v3120_v18 = vpop.f32.mrb[23].mxu0 }
 0x122   :  { %v3121_v19 = vadd.f32 %v3120_v18, %v3119_v15  ;;  %v3184_v20 = vpop.f32.mrb[23].mxu1 }
 0x123   :  { %v4523_v21 = vadd.f32 %v3182_v16, %v3118_v13  ;;  %v3185_v22 = vadd.f32 %v3184_v20, %v3183_v17 }
 0x125   :  { %v4525_v23 = vadd.f32 %v3185_v22, %v3121_v19 }
 0x126   :  { %v3122_v24 = vpop.f32.mrb[24].mxu0 }
 0x127   :  { %v3186_v25 = vpop.f32.mrb[24].mxu1  ;;  %v3123_v26 = vpop.f32.mrb[25].mxu0 }
 0x128   :  { %v3124_v27 = vadd.f32 %v3123_v26, %v3122_v24  ;;  %v3187_v28 = vpop.f32.mrb[25].mxu1  ;;  %v3125_v30 = vpop.f32.mrb[26].mxu0 }
 0x129   :  { %v3188_v32 = vadd.f32 %v3187_v28, %v3186_v25  ;;  %v3189_v33 = vpop.f32.mrb[26].mxu1  ;;  %v3126_v34 = vpop.f32.mrb[27].mxu0 }
 0x12a   :  { %v3127_v35 = vadd.f32 %v3126_v34, %v3125_v30  ;;  %v3190_v36 = vpop.f32.mrb[27].mxu1 }
 0x12b   :  { %v4527_v37 = vadd.f32 %v3188_v32, %v3124_v27  ;;  %v3191_v38 = vadd.f32 %v3190_v36, %v3189_v33 }
 0x12d   :  { %v4529_v39 = vadd.f32 %v3191_v38, %v3127_v35 }
 0x12e   :  { %v3128_v40 = vpop.f32.mrb[28].mxu0 }
 0x12f   :  { %v3192_v41 = vpop.f32.mrb[28].mxu1  ;;  %v3129_v42 = vpop.f32.mrb[29].mxu0 }
 0x130   :  { %v3130_v43 = vadd.f32 %v3129_v42, %v3128_v40  ;;  %v3193_v44 = vpop.f32.mrb[29].mxu1  ;;  %v3131_v45 = vpop.f32.mrb[30].mxu0 }
 0x131   :  { %v3194_v46 = vadd.f32 %v3193_v44, %v3192_v41  ;;  %v3195_v47 = vpop.f32.mrb[30].mxu1  ;;  %v3132_v48 = vpop.f32.mrb[31].mxu0 }
 0x132   :  { %v3133_v50 = vadd.f32 %v3132_v48, %v3131_v45  ;;  %v3196_v52 = vpop.f32.mrb[31].mxu1 }
 0x133   :  { %v4531_v54 = vadd.f32 %v3194_v46, %v3130_v43  ;;  %v3197_v56 = vadd.f32 %v3196_v52, %v3195_v47 }
 0x135   :  { %v4533_v57 = vadd.f32 %v3197_v56, %v3133_v50 }
 0x136   :  { %v3214_v58 = vpop.f32.mrb[32].mxu0 }
 0x137   :  { %v3278_v59 = vpop.f32.mrb[32].mxu1  ;;  %v3215_v60 = vpop.f32.mrb[33].mxu0 }
 0x138   :  { %v3216_v61 = vadd.f32 %v3215_v60, %v3214_v58  ;;  %v3279_v62 = vpop.f32.mrb[33].mxu1  ;;  %v3217_v63 = vpop.f32.mrb[34].mxu0 }
 0x139   :  { %v3280_v0 = vadd.f32 %v3279_v62, %v3278_v59  ;;  %v3281_v1 = vpop.f32.mrb[34].mxu1  ;;  %v3218_v2 = vpop.f32.mrb[35].mxu0 }
 0x13a   :  { %v2036_v3 = vadd.f32 %v3216_v61, %v4467_v49  ;;  %v3219_v4 = vadd.f32 %v3218_v2, %v3217_v63  ;;  %v3282_v6 = vpop.f32.mrb[35].mxu1 }
 0x13b   :  { %v3283_v10 = vadd.f32 %v3282_v6, %v3281_v1 }
 0x13c   :  { %v4536_v11 = vadd.f32 %v3280_v0, %v2036_v3  ;;  %v2039_v12 = vadd.f32 %v3219_v4, %v4469_v51 }
 0x13e   :  { %v4539_v13 = vadd.f32 %v3283_v10, %v2039_v12  ;;  %v3220_v14 = vpop.f32.mrb[36].mxu0 }
 0x13f   :  { %v3284_v15 = vpop.f32.mrb[36].mxu1  ;;  %v3221_v16 = vpop.f32.mrb[37].mxu0 }
 0x140   :  { %v3222_v17 = vadd.f32 %v3221_v16, %v3220_v14  ;;  %v3285_v18 = vpop.f32.mrb[37].mxu1  ;;  %v3223_v19 = vpop.f32.mrb[38].mxu0 }
 0x141   :  { %v3286_v20 = vadd.f32 %v3285_v18, %v3284_v15  ;;  %v3287_v22 = vpop.f32.mrb[38].mxu1  ;;  %v3224_v24 = vpop.f32.mrb[39].mxu0 }
 0x142   :  { %v2044_v49 = vadd.f32 %v3222_v17, %v4483_v7  ;;  %v3225_v25 = vadd.f32 %v3224_v24, %v3223_v19  ;;  %v3288_v26 = vpop.f32.mrb[39].mxu1 }
 0x143   :  { %v3289_v27 = vadd.f32 %v3288_v26, %v3287_v22 }
 0x144   :  { %v4542_v28 = vadd.f32 %v3286_v20, %v2044_v49  ;;  %v2047_v51 = vadd.f32 %v3225_v25, %v4485_v9 }
 0x146   :  { %v4545_v30 = vadd.f32 %v3289_v27, %v2047_v51  ;;  %v3226_v32 = vpop.f32.mrb[40].mxu0 }
 0x147   :  { %v3290_v33 = vpop.f32.mrb[40].mxu1  ;;  %v3227_v34 = vpop.f32.mrb[41].mxu0 }
 0x148   :  { %v3228_v35 = vadd.f32 %v3227_v34, %v3226_v32  ;;  %v3291_v36 = vpop.f32.mrb[41].mxu1  ;;  %v3229_v38 = vpop.f32.mrb[42].mxu0 }
 0x149   :  { %v3292_v40 = vadd.f32 %v3291_v36, %v3290_v33  ;;  %v3293_v41 = vpop.f32.mrb[42].mxu1  ;;  %v3230_v42 = vpop.f32.mrb[43].mxu0 }
 0x14a   :  { %v2052_v7 = vadd.f32 %v3228_v35, %v4499_v29  ;;  %v3231_v43 = vadd.f32 %v3230_v42, %v3229_v38  ;;  %v3294_v44 = vpop.f32.mrb[43].mxu1 }
 0x14b   :  { %v3295_v45 = vadd.f32 %v3294_v44, %v3293_v41 }
 0x14c   :  { %v4548_v46 = vadd.f32 %v3292_v40, %v2052_v7  ;;  %v2055_v9 = vadd.f32 %v3231_v43, %v4501_v31 }
 0x14e   :  { %v4551_v47 = vadd.f32 %v3295_v45, %v2055_v9  ;;  %v3232_v48 = vpop.f32.mrb[44].mxu0 }
 0x14f   :  { %v3296_v50 = vpop.f32.mrb[44].mxu1  ;;  %v3233_v52 = vpop.f32.mrb[45].mxu0 }
 0x150   :  { %v3234_v56 = vadd.f32 %v3233_v52, %v3232_v48  ;;  %v3297_v58 = vpop.f32.mrb[45].mxu1  ;;  %v3235_v59 = vpop.f32.mrb[46].mxu0 }
 0x151   :  { %v3298_v60 = vadd.f32 %v3297_v58, %v3296_v50  ;;  %v3299_v61 = vpop.f32.mrb[46].mxu1  ;;  %v3236_v62 = vpop.f32.mrb[47].mxu0 }
 0x152   :  { %v2060_v29 = vadd.f32 %v3234_v56, %v4515_v53  ;;  %v3237_v63 = vadd.f32 %v3236_v62, %v3235_v59  ;;  %v3300_v0 = vpop.f32.mrb[47].mxu1 }
 0x153   :  { %v3301_v1 = vadd.f32 %v3300_v0, %v3299_v61 }
 0x154   :  { %v4554_v2 = vadd.f32 %v3298_v60, %v2060_v29  ;;  %v2063_v31 = vadd.f32 %v3237_v63, %v4517_v55 }
 0x156   :  { %v4557_v3 = vadd.f32 %v3301_v1, %v2063_v31  ;;  %v3238_v4 = vpop.f32.mrb[48].mxu0 }
 0x157   :  { %v3302_v6 = vpop.f32.mrb[48].mxu1  ;;  %v3239_v10 = vpop.f32.mrb[49].mxu0 }
 0x158   :  { %v3240_v12 = vadd.f32 %v3239_v10, %v3238_v4  ;;  %v3303_v14 = vpop.f32.mrb[49].mxu1  ;;  %v3241_v15 = vpop.f32.mrb[50].mxu0 }
 0x159   :  { %v3304_v16 = vadd.f32 %v3303_v14, %v3302_v6  ;;  %v3305_v17 = vpop.f32.mrb[50].mxu1  ;;  %v3242_v18 = vpop.f32.mrb[51].mxu0 }
 0x15a   :  { %v2068_v53 = vadd.f32 %v3240_v12, %v4519_v5  ;;  %v3243_v19 = vadd.f32 %v3242_v18, %v3241_v15  ;;  %v3306_v20 = vpop.f32.mrb[51].mxu1 }
 0x15b   :  { %v3307_v22 = vadd.f32 %v3306_v20, %v3305_v17 }
 0x15c   :  { %v4560_v24 = vadd.f32 %v3304_v16, %v2068_v53  ;;  %v2071_v55 = vadd.f32 %v3243_v19, %v4521_v8 }
 0x15e   :  { %v4563_v49 = vadd.f32 %v3307_v22, %v2071_v55  ;;  %v3244_v25 = vpop.f32.mrb[52].mxu0 }
 0x15f   :  { %v3308_v26 = vpop.f32.mrb[52].mxu1  ;;  %v3245_v27 = vpop.f32.mrb[53].mxu0 }
 0x160   :  { %v3246_v51 = vadd.f32 %v3245_v27, %v3244_v25  ;;  %v3309_v32 = vpop.f32.mrb[53].mxu1  ;;  %v3247_v33 = vpop.f32.mrb[54].mxu0 }
 0x161   :  { %v3310_v34 = vadd.f32 %v3309_v32, %v3308_v26  ;;  %v3311_v35 = vpop.f32.mrb[54].mxu1  ;;  %v3248_v36 = vpop.f32.mrb[55].mxu0 }
 0x162   :  { %v2076_v5 = vadd.f32 %v3246_v51, %v4523_v21  ;;  %v3249_v38 = vadd.f32 %v3248_v36, %v3247_v33  ;;  %v3312_v40 = vpop.f32.mrb[55].mxu1 }
 0x163   :  { %v3313_v41 = vadd.f32 %v3312_v40, %v3311_v35 }
 0x164   :  { %v4566_v42 = vadd.f32 %v3310_v34, %v2076_v5  ;;  %v2079_v8 = vadd.f32 %v3249_v38, %v4525_v23 }
 0x166   :  { %v4569_v7 = vadd.f32 %v3313_v41, %v2079_v8  ;;  %v3250_v43 = vpop.f32.mrb[56].mxu0 }
 0x167   :  { %v3314_v44 = vpop.f32.mrb[56].mxu1  ;;  %v3251_v45 = vpop.f32.mrb[57].mxu0 }
 0x168   :  { %v3252_v9 = vadd.f32 %v3251_v45, %v3250_v43  ;;  %v3315_v48 = vpop.f32.mrb[57].mxu1  ;;  %v3253_v50 = vpop.f32.mrb[58].mxu0 }
 0x169   :  { %v3316_v52 = vadd.f32 %v3315_v48, %v3314_v44  ;;  %v3317_v56 = vpop.f32.mrb[58].mxu1  ;;  %v3254_v58 = vpop.f32.mrb[59].mxu0 }
 0x16a   :  { %v2084_v21 = vadd.f32 %v3252_v9, %v4527_v37  ;;  %v3255_v59 = vadd.f32 %v3254_v58, %v3253_v50  ;;  %v3318_v60 = vpop.f32.mrb[59].mxu1 }
 0x16b   :  { %v3319_v61 = vadd.f32 %v3318_v60, %v3317_v56 }
 0x16c   :  { %v4572_v62 = vadd.f32 %v3316_v52, %v2084_v21  ;;  %v2087_v23 = vadd.f32 %v3255_v59, %v4529_v39 }
 0x16e   :  { %v4575_v29 = vadd.f32 %v3319_v61, %v2087_v23  ;;  %v3256_v63 = vpop.f32.mrb[60].mxu0 }
 0x16f   :  { %v3320_v0 = vpop.f32.mrb[60].mxu1  ;;  %v3257_v1 = vpop.f32.mrb[61].mxu0 }
 0x170   :  { %v3258_v31 = vadd.f32 %v3257_v1, %v3256_v63  ;;  %v3321_v4 = vpop.f32.mrb[61].mxu1  ;;  %v3259_v6 = vpop.f32.mrb[62].mxu0 }
 0x171   :  { %v3322_v10 = vadd.f32 %v3321_v4, %v3320_v0  ;;  %v3323_v12 = vpop.f32.mrb[62].mxu1  ;;  %v3260_v14 = vpop.f32.mrb[63].mxu0 }
 0x172   :  { %v2092_v37 = vadd.f32 %v3258_v31, %v4531_v54  ;;  %v3261_v15 = vadd.f32 %v3260_v14, %v3259_v6  ;;  %v3324_v16 = vpop.f32.mrb[63].mxu1 }
 0x173   :  { %v3325_v17 = vadd.f32 %v3324_v16, %v3323_v12 }
 0x174   :  { %v4578_v18 = vadd.f32 %v3322_v10, %v2092_v37  ;;  %v2095_v39 = vadd.f32 %v3261_v15, %v4533_v57 }
 0x176   :  { %v4581_v53 = vadd.f32 %v3325_v17, %v2095_v39  ;;  %v3342_v19 = vpop.f32.mrb[64].mxu0 }
 0x177   :  { %v3406_v20 = vpop.f32.mrb[64].mxu1  ;;  %v3343_v22 = vpop.f32.mrb[65].mxu0 }
 0x178   :  { %v3344_v55 = vadd.f32 %v3343_v22, %v3342_v19  ;;  %v3407_v25 = vpop.f32.mrb[65].mxu1  ;;  %v3345_v26 = vpop.f32.mrb[66].mxu0 }
 0x179   :  { %v3408_v27 = vadd.f32 %v3407_v25, %v3406_v20  ;;  %v3409_v51 = vpop.f32.mrb[66].mxu1  ;;  %v3346_v32 = vpop.f32.mrb[67].mxu0 }
 0x17a   :  { %v2230_v54 = vadd.f32 %v3344_v55, %v4536_v11  ;;  %v3347_v33 = vadd.f32 %v3346_v32, %v3345_v26  ;;  %v3410_v34 = vpop.f32.mrb[67].mxu1 }
 0x17b   :  { %v3411_v35 = vadd.f32 %v3410_v34, %v3409_v51 }
 0x17c   :  { %v4584_v36 = vadd.f32 %v3408_v27, %v2230_v54  ;;  %v2233_v57 = vadd.f32 %v3347_v33, %v4539_v13 }
 0x17e   :  { %v4587_v5 = vadd.f32 %v3411_v35, %v2233_v57  ;;  %v3348_v38 = vpop.f32.mrb[68].mxu0 }
 0x17f   :  { %v3412_v40 = vpop.f32.mrb[68].mxu1  ;;  %v3349_v41 = vpop.f32.mrb[69].mxu0 }
 0x180   :  { %v3350_v8 = vadd.f32 %v3349_v41, %v3348_v38  ;;  %v3413_v43 = vpop.f32.mrb[69].mxu1  ;;  %v3351_v44 = vpop.f32.mrb[70].mxu0 }
 0x181   :  { %v3414_v45 = vadd.f32 %v3413_v43, %v3412_v40  ;;  %v3415_v9 = vpop.f32.mrb[70].mxu1  ;;  %v3352_v48 = vpop.f32.mrb[71].mxu0 }
 0x182   :  { %v2238_v11 = vadd.f32 %v3350_v8, %v4542_v28  ;;  %v3353_v50 = vadd.f32 %v3352_v48, %v3351_v44  ;;  %v3416_v52 = vpop.f32.mrb[71].mxu1 }
 0x183   :  { %v3417_v56 = vadd.f32 %v3416_v52, %v3415_v9 }
 0x184   :  { %v4590_v58 = vadd.f32 %v3414_v45, %v2238_v11  ;;  %v2241_v13 = vadd.f32 %v3353_v50, %v4545_v30 }
 0x186   :  { %v4593_v21 = vadd.f32 %v3417_v56, %v2241_v13  ;;  %v3354_v59 = vpop.f32.mrb[72].mxu0 }
 0x187   :  { %v3418_v60 = vpop.f32.mrb[72].mxu1  ;;  %v3355_v61 = vpop.f32.mrb[73].mxu0 }
 0x188   :  { %v3356_v23 = vadd.f32 %v3355_v61, %v3354_v59  ;;  %v3419_v63 = vpop.f32.mrb[73].mxu1  ;;  %v3357_v0 = vpop.f32.mrb[74].mxu0 }
 0x189   :  { %v3420_v1 = vadd.f32 %v3419_v63, %v3418_v60  ;;  %v3421_v31 = vpop.f32.mrb[74].mxu1  ;;  %v3358_v4 = vpop.f32.mrb[75].mxu0 }
 0x18a   :  { %v2246_v28 = vadd.f32 %v3356_v23, %v4548_v46  ;;  %v3359_v6 = vadd.f32 %v3358_v4, %v3357_v0  ;;  %v3422_v10 = vpop.f32.mrb[75].mxu1 }
 0x18b   :  { %v3423_v12 = vadd.f32 %v3422_v10, %v3421_v31 }
 0x18c   :  { %v4596_v14 = vadd.f32 %v3420_v1, %v2246_v28  ;;  %v2249_v30 = vadd.f32 %v3359_v6, %v4551_v47 }
 0x18e   :  { %v4599_v37 = vadd.f32 %v3423_v12, %v2249_v30  ;;  %v3360_v15 = vpop.f32.mrb[76].mxu0 }
 0x18f   :  { %v3424_v16 = vpop.f32.mrb[76].mxu1  ;;  %v3361_v17 = vpop.f32.mrb[77].mxu0 }
 0x190   :  { %v3362_v39 = vadd.f32 %v3361_v17, %v3360_v15  ;;  %v3425_v19 = vpop.f32.mrb[77].mxu1  ;;  %v3363_v20 = vpop.f32.mrb[78].mxu0 }
 0x191   :  { %v3426_v22 = vadd.f32 %v3425_v19, %v3424_v16  ;;  %v3427_v55 = vpop.f32.mrb[78].mxu1  ;;  %v3364_v25 = vpop.f32.mrb[79].mxu0 }
 0x192   :  { %v2254_v46 = vadd.f32 %v3362_v39, %v4554_v2  ;;  %v3365_v26 = vadd.f32 %v3364_v25, %v3363_v20  ;;  %v3428_v27 = vpop.f32.mrb[79].mxu1 }
 0x193   :  { %v3429_v51 = vadd.f32 %v3428_v27, %v3427_v55 }
 0x194   :  { %v4602_v32 = vadd.f32 %v3426_v22, %v2254_v46  ;;  %v2257_v47 = vadd.f32 %v3365_v26, %v4557_v3 }
 0x196   :  { %v4605_v54 = vadd.f32 %v3429_v51, %v2257_v47  ;;  %v3366_v33 = vpop.f32.mrb[80].mxu0 }
 0x197   :  { %v3430_v34 = vpop.f32.mrb[80].mxu1  ;;  %v3367_v35 = vpop.f32.mrb[81].mxu0 }
 0x198   :  { %v3368_v57 = vadd.f32 %v3367_v35, %v3366_v33  ;;  %v3431_v38 = vpop.f32.mrb[81].mxu1  ;;  %v3369_v40 = vpop.f32.mrb[82].mxu0 }
 0x199   :  { %v3432_v41 = vadd.f32 %v3431_v38, %v3430_v34  ;;  %v3433_v8 = vpop.f32.mrb[82].mxu1  ;;  %v3370_v43 = vpop.f32.mrb[83].mxu0 }
 0x19a   :  { %v2262_v2 = vadd.f32 %v3368_v57, %v4560_v24  ;;  %v3371_v44 = vadd.f32 %v3370_v43, %v3369_v40  ;;  %v3434_v45 = vpop.f32.mrb[83].mxu1 }
 0x19b   :  { %v3435_v9 = vadd.f32 %v3434_v45, %v3433_v8 }
 0x19c   :  { %v4608_v48 = vadd.f32 %v3432_v41, %v2262_v2  ;;  %v2265_v3 = vadd.f32 %v3371_v44, %v4563_v49 }
 0x19e   :  { %v4611_v11 = vadd.f32 %v3435_v9, %v2265_v3  ;;  %v3372_v50 = vpop.f32.mrb[84].mxu0 }
 0x19f   :  { %v3436_v52 = vpop.f32.mrb[84].mxu1  ;;  %v3373_v56 = vpop.f32.mrb[85].mxu0 }
 0x1a0   :  { %v3374_v13 = vadd.f32 %v3373_v56, %v3372_v50  ;;  %v3437_v59 = vpop.f32.mrb[85].mxu1  ;;  %v3375_v60 = vpop.f32.mrb[86].mxu0 }
 0x1a1   :  { %v3438_v61 = vadd.f32 %v3437_v59, %v3436_v52  ;;  %v3439_v23 = vpop.f32.mrb[86].mxu1  ;;  %v3376_v63 = vpop.f32.mrb[87].mxu0 }
 0x1a2   :  { %v2270_v24 = vadd.f32 %v3374_v13, %v4566_v42  ;;  %v3377_v0 = vadd.f32 %v3376_v63, %v3375_v60  ;;  %v3440_v1 = vpop.f32.mrb[87].mxu1 }
 0x1a3   :  { %v3441_v31 = vadd.f32 %v3440_v1, %v3439_v23 }
 0x1a4   :  { %v4614_v4 = vadd.f32 %v3438_v61, %v2270_v24  ;;  %v2273_v49 = vadd.f32 %v3377_v0, %v4569_v7 }
 0x1a6   :  { %v4617_v28 = vadd.f32 %v3441_v31, %v2273_v49  ;;  %v3378_v6 = vpop.f32.mrb[88].mxu0 }
 0x1a7   :  { %v3442_v10 = vpop.f32.mrb[88].mxu1  ;;  %v3379_v12 = vpop.f32.mrb[89].mxu0 }
 0x1a8   :  { %v3380_v30 = vadd.f32 %v3379_v12, %v3378_v6  ;;  %v3443_v15 = vpop.f32.mrb[89].mxu1  ;;  %v3381_v16 = vpop.f32.mrb[90].mxu0 }
 0x1a9   :  { %v3444_v17 = vadd.f32 %v3443_v15, %v3442_v10  ;;  %v3445_v39 = vpop.f32.mrb[90].mxu1  ;;  %v3382_v19 = vpop.f32.mrb[91].mxu0 }
 0x1aa   :  { %v2278_v42 = vadd.f32 %v3380_v30, %v4572_v62  ;;  %v3383_v20 = vadd.f32 %v3382_v19, %v3381_v16  ;;  %v3446_v22 = vpop.f32.mrb[91].mxu1 }
 0x1ab   :  { %v3447_v55 = vadd.f32 %v3446_v22, %v3445_v39 }
 0x1ac   :  { %v4620_v25 = vadd.f32 %v3444_v17, %v2278_v42  ;;  %v2281_v7 = vadd.f32 %v3383_v20, %v4575_v29 }
 0x1ae   :  { %v4623_v46 = vadd.f32 %v3447_v55, %v2281_v7  ;;  %v3384_v26 = vpop.f32.mrb[92].mxu0 }
 0x1af   :  { %v3448_v27 = vpop.f32.mrb[92].mxu1  ;;  %v3385_v51 = vpop.f32.mrb[93].mxu0 }
 0x1b0   :  { %v3386_v47 = vadd.f32 %v3385_v51, %v3384_v26  ;;  %v3449_v33 = vpop.f32.mrb[93].mxu1  ;;  %v3387_v34 = vpop.f32.mrb[94].mxu0 }
 0x1b1   :  { %v3450_v35 = vadd.f32 %v3449_v33, %v3448_v27  ;;  %v3451_v57 = vpop.f32.mrb[94].mxu1  ;;  %v3388_v38 = vpop.f32.mrb[95].mxu0 }
 0x1b2   :  { %v2286_v62 = vadd.f32 %v3386_v47, %v4578_v18  ;;  %v3389_v40 = vadd.f32 %v3388_v38, %v3387_v34  ;;  %v3452_v41 = vpop.f32.mrb[95].mxu1 }
 0x1b3   :  { %v3453_v8 = vadd.f32 %v3452_v41, %v3451_v57 }
 0x1b4   :  { %v4626_v43 = vadd.f32 %v3450_v35, %v2286_v62  ;;  %v2289_v29 = vadd.f32 %v3389_v40, %v4581_v53 }
 0x1b6   :  { %v4629_v2 = vadd.f32 %v3453_v8, %v2289_v29  ;;  %v3470_v44 = vpop.f32.mrb[96].mxu0 }
 0x1b7   :  { %v3534_v45 = vpop.f32.mrb[96].mxu1  ;;  %v3471_v9 = vpop.f32.mrb[97].mxu0 }
 0x1b8   :  { %v3472_v3 = vadd.f32 %v3471_v9, %v3470_v44  ;;  %v3535_v50 = vpop.f32.mrb[97].mxu1  ;;  %v3473_v52 = vpop.f32.mrb[98].mxu0 }
 0x1b9   :  { %v3536_v56 = vadd.f32 %v3535_v50, %v3534_v45  ;;  %v3537_v13 = vpop.f32.mrb[98].mxu1  ;;  %v3474_v59 = vpop.f32.mrb[99].mxu0 }
 0x1ba   :  { %v2424_v18 = vadd.f32 %v3472_v3, %v4584_v36  ;;  %v3475_v60 = vadd.f32 %v3474_v59, %v3473_v52  ;;  %v3538_v61 = vpop.f32.mrb[99].mxu1 }
 0x1bb   :  { %v3539_v23 = vadd.f32 %v3538_v61, %v3537_v13 }
 0x1bc   :  { %v2521_v63 = vadd.f32 %v3536_v56, %v2424_v18  ;;  %v2427_v24 = vadd.f32 %v3475_v60, %v4587_v5 }
 0x1be   :  { %v2524_v53 = vadd.f32 %v3539_v23, %v2427_v24  ;;  %v3476_v0 = vpop.f32.mrb[100].mxu0  ;;  %v2685_v1 = vmul.f32 %v2521_v63, %v2521_v63 }
 0x1bf   :  { %v3540_v31 = vpop.f32.mrb[100].mxu1  ;;  %v3477_v49 = vpop.f32.mrb[101].mxu0 }
 0x1c0   :  { %v3026_v6 = vpack.c.bf16 %v2524_v53, %v2521_v63  ;;  %v2663_v10 = vadd.f32 %v2524_v53, %v2521_v63  ;;  %v2686_v12 = vmul.f32 %v2524_v53, %v2524_v53  ;;  %v3478_v30 = vadd.f32 %v3477_v49, %v3476_v0  ;;  %v3541_v15 = vpop.f32.mrb[101].mxu1  ;;  %v3479_v16 = vpop.f32.mrb[102].mxu0 }
 0x1c1   :  { %v3542_v17 = vadd.f32 %v3541_v15, %v3540_v31  ;;  %v3543_v39 = vpop.f32.mrb[102].mxu1  ;;  %v3480_v36 = vpop.f32.mrb[103].mxu0 }
 0x1c2   :  { %3027 = vst [vmem:[%s4679_s2] sm:$0xff] %v3026_v6   ;;  %v2701_v19 = vadd.f32 %v2686_v12, %v2685_v1  ;;  %v2432_v5 = vadd.f32 %v3478_v30, %v4590_v58  ;;  %v3481_v42 = vadd.f32 %v3480_v36, %v3479_v16  ;;  %v3544_v20 = vpop.f32.mrb[103].mxu1 }
 0x1c3   :  { %v3545_v22 = vadd.f32 %v3544_v20, %v3543_v39 }
 0x1c4   :  { %v2529_v55 = vadd.f32 %v3542_v17, %v2432_v5  ;;  %v2435_v7 = vadd.f32 %v3481_v42, %v4593_v21 }
 0x1c6   :  { %v2664_v26 = vadd.f32 %v2663_v10, %v2529_v55  ;;  %v2687_v27 = vmul.f32 %v2529_v55, %v2529_v55  ;;  %v2532_v51 = vadd.f32 %v3545_v22, %v2435_v7  ;;  %v3482_v47 = vpop.f32.mrb[104].mxu0 }
 0x1c7   :  { %v3546_v33 = vpop.f32.mrb[104].mxu1  ;;  %v3483_v34 = vpop.f32.mrb[105].mxu0 }
 0x1c8   :  { %v2702_v35 = vadd.f32 %v2701_v19, %v2687_v27  ;;  %v3031_v57 = vpack.c.bf16 %v2532_v51, %v2529_v55  ;;  %v2665_v38 = vadd.f32 %v2664_v26, %v2532_v51  ;;  %v2688_v62 = vmul.f32 %v2532_v51, %v2532_v51  ;;  %v3547_v40 = vpop.f32.mrb[105].mxu1  ;;  %v3485_v41 = vpop.f32.mrb[106].mxu0 }
 0x1c9   :  { %v3484_v8 = vadd.f32 %v3483_v34, %v3482_v47  ;;  %v3548_v58 = vadd.f32 %v3547_v40, %v3546_v33  ;;  %v3549_v29 = vpop.f32.mrb[106].mxu1  ;;  %v3486_v44 = vpop.f32.mrb[107].mxu0 }
 0x1ca   :  { %3063 = vst [vmem:[%s4679_s2 + $0x8] sm:$0xff] %v3031_v57   ;;  %v2703_v21 = vadd.f32 %v2702_v35, %v2688_v62  ;;  %v3487_v45 = vadd.f32 %v3486_v44, %v3485_v41  ;;  %v3550_v9 = vpop.f32.mrb[107].mxu1 }
 0x1cb   :  { %v2440_v3 = vadd.f32 %v3484_v8, %v4596_v14  ;;  %v3551_v50 = vadd.f32 %v3550_v9, %v3549_v29 }
 0x1cc   :  { %v2443_v52 = vadd.f32 %v3487_v45, %v4599_v37 }
 0x1cd   :  { %v2537_v56 = vadd.f32 %v3548_v58, %v2440_v3 }
 0x1ce   :  { %v2540_v13 = vadd.f32 %v3551_v50, %v2443_v52  ;;  %v3488_v59 = vpop.f32.mrb[108].mxu0 }
 0x1cf   :  { %v2666_v18 = vadd.f32 %v2665_v38, %v2537_v56  ;;  %v2689_v60 = vmul.f32 %v2537_v56, %v2537_v56  ;;  %v3552_v61 = vpop.f32.mrb[108].mxu1  ;;  %v3489_v23 = vpop.f32.mrb[109].mxu0 }
 0x1d0   :  { %v3036_v63 = vpack.c.bf16 %v2540_v13, %v2537_v56  ;;  %v2690_v24 = vmul.f32 %v2540_v13, %v2540_v13  ;;  %v3490_v53 = vadd.f32 %v3489_v23, %v3488_v59  ;;  %v3553_v0 = vpop.f32.mrb[109].mxu1  ;;  %v3491_v1 = vpop.f32.mrb[110].mxu0 }
 0x1d1   :  { %v2704_v31 = vadd.f32 %v2703_v21, %v2689_v60  ;;  %v2667_v49 = vadd.f32 %v2666_v18, %v2540_v13  ;;  %v3554_v6 = vadd.f32 %v3553_v0, %v3552_v61  ;;  %v3555_v10 = vpop.f32.mrb[110].mxu1  ;;  %v3492_v14 = vpop.f32.mrb[111].mxu0 }
 0x1d2   :  { %3064 = vst [vmem:[%s4679_s2 + $0x10] sm:$0xff] %v3036_v63   ;;  %v2448_v37 = vadd.f32 %v3490_v53, %v4602_v32  ;;  %v3493_v12 = vadd.f32 %v3492_v14, %v3491_v1  ;;  %v3556_v30 = vpop.f32.mrb[111].mxu1 }
 0x1d3   :  { %v2705_v15 = vadd.f32 %v2704_v31, %v2690_v24  ;;  %v3557_v16 = vadd.f32 %v3556_v30, %v3555_v10 }
 0x1d4   :  { %v2545_v17 = vadd.f32 %v3554_v6, %v2448_v37  ;;  %v2451_v39 = vadd.f32 %v3493_v12, %v4605_v54 }
 0x1d6   :  { %v2668_v36 = vadd.f32 %v2667_v49, %v2545_v17  ;;  %v2691_v19 = vmul.f32 %v2545_v17, %v2545_v17  ;;  %v2548_v5 = vadd.f32 %v3557_v16, %v2451_v39  ;;  %v3494_v42 = vpop.f32.mrb[112].mxu0 }
 0x1d7   :  { %v3558_v20 = vpop.f32.mrb[112].mxu1  ;;  %v3495_v22 = vpop.f32.mrb[113].mxu0 }
 0x1d8   :  { %v2706_v55 = vadd.f32 %v2705_v15, %v2691_v19  ;;  %v3041_v7 = vpack.c.bf16 %v2548_v5, %v2545_v17  ;;  %v2669_v26 = vadd.f32 %v2668_v36, %v2548_v5  ;;  %v2692_v27 = vmul.f32 %v2548_v5, %v2548_v5  ;;  %v3559_v51 = vpop.f32.mrb[113].mxu1  ;;  %v3497_v47 = vpop.f32.mrb[114].mxu0 }
 0x1d9   :  { %v3496_v32 = vadd.f32 %v3495_v22, %v3494_v42  ;;  %v3560_v33 = vadd.f32 %v3559_v51, %v3558_v20  ;;  %v3561_v34 = vpop.f32.mrb[114].mxu1  ;;  %v3498_v35 = vpop.f32.mrb[115].mxu0 }
 0x1da   :  { %3065 = vst [vmem:[%s4679_s2 + $0x18] sm:$0xff] %v3041_v7   ;;  %v2707_v54 = vadd.f32 %v2706_v55, %v2692_v27  ;;  %v3499_v57 = vadd.f32 %v3498_v35, %v3497_v47  ;;  %v3562_v38 = vpop.f32.mrb[115].mxu1 }
 0x1db   :  { %v2456_v62 = vadd.f32 %v3496_v32, %v4608_v48  ;;  %v3563_v40 = vadd.f32 %v3562_v38, %v3561_v34 }
 0x1dc   :  { %v2459_v41 = vadd.f32 %v3499_v57, %v4611_v11 }
 0x1dd   :  { %v2553_v8 = vadd.f32 %v3560_v33, %v2456_v62 }
 0x1de   :  { %v2556_v58 = vadd.f32 %v3563_v40, %v2459_v41  ;;  %v3500_v29 = vpop.f32.mrb[116].mxu0 }
 0x1df   :  { %v2670_v44 = vadd.f32 %v2669_v26, %v2553_v8  ;;  %v2693_v21 = vmul.f32 %v2553_v8, %v2553_v8  ;;  %v3564_v45 = vpop.f32.mrb[116].mxu1  ;;  %v3501_v9 = vpop.f32.mrb[117].mxu0 }
 0x1e0   :  { %v3046_v3 = vpack.c.bf16 %v2556_v58, %v2553_v8  ;;  %v2694_v50 = vmul.f32 %v2556_v58, %v2556_v58  ;;  %v3502_v52 = vadd.f32 %v3501_v9, %v3500_v29  ;;  %v3565_v56 = vpop.f32.mrb[117].mxu1  ;;  %v3503_v13 = vpop.f32.mrb[118].mxu0 }
 0x1e1   :  { %v2708_v59 = vadd.f32 %v2707_v54, %v2693_v21  ;;  %v2671_v18 = vadd.f32 %v2670_v44, %v2556_v58  ;;  %v3566_v60 = vadd.f32 %v3565_v56, %v3564_v45  ;;  %v3567_v61 = vpop.f32.mrb[118].mxu1  ;;  %v3504_v48 = vpop.f32.mrb[119].mxu0 }
 0x1e2   :  { %3066 = vst [vmem:[%s4679_s2 + $0x20] sm:$0xff] %v3046_v3   ;;  %v2464_v11 = vadd.f32 %v3502_v52, %v4614_v4  ;;  %v3505_v23 = vadd.f32 %v3504_v48, %v3503_v13  ;;  %v3568_v63 = vpop.f32.mrb[119].mxu1 }
 0x1e3   :  { %v2709_v24 = vadd.f32 %v2708_v59, %v2694_v50  ;;  %v3569_v53 = vadd.f32 %v3568_v63, %v3567_v61 }
 0x1e4   :  { %v2561_v0 = vadd.f32 %v3566_v60, %v2464_v11  ;;  %v2467_v1 = vadd.f32 %v3505_v23, %v4617_v28 }
 0x1e6   :  { %v2672_v31 = vadd.f32 %v2671_v18, %v2561_v0  ;;  %v2695_v49 = vmul.f32 %v2561_v0, %v2561_v0  ;;  %v2564_v6 = vadd.f32 %v3569_v53, %v2467_v1  ;;  %v3506_v10 = vpop.f32.mrb[120].mxu0 }
 0x1e7   :  { %v3570_v14 = vpop.f32.mrb[120].mxu1  ;;  %v3507_v37 = vpop.f32.mrb[121].mxu0 }
 0x1e8   :  { %v2710_v12 = vadd.f32 %v2709_v24, %v2695_v49  ;;  %v3051_v30 = vpack.c.bf16 %v2564_v6, %v2561_v0  ;;  %v2673_v15 = vadd.f32 %v2672_v31, %v2564_v6  ;;  %v2696_v16 = vmul.f32 %v2564_v6, %v2564_v6  ;;  %v3571_v17 = vpop.f32.mrb[121].mxu1  ;;  %v3509_v39 = vpop.f32.mrb[122].mxu0 }
 0x1e9   :  { %v3508_v4 = vadd.f32 %v3507_v37, %v3506_v10  ;;  %v3572_v36 = vadd.f32 %v3571_v17, %v3570_v14  ;;  %v3573_v19 = vpop.f32.mrb[122].mxu1  ;;  %v3510_v5 = vpop.f32.mrb[123].mxu0 }
 0x1ea   :  { %3067 = vst [vmem:[%s4679_s2 + $0x28] sm:$0xff] %v3051_v30   ;;  %v2711_v28 = vadd.f32 %v2710_v12, %v2696_v16  ;;  %v3511_v42 = vadd.f32 %v3510_v5, %v3509_v39  ;;  %v3574_v20 = vpop.f32.mrb[123].mxu1 }
 0x1eb   :  { %v2472_v22 = vadd.f32 %v3508_v4, %v4620_v25  ;;  %v3575_v55 = vadd.f32 %v3574_v20, %v3573_v19 }
 0x1ec   :  { %v2475_v7 = vadd.f32 %v3511_v42, %v4623_v46 }
 0x1ed   :  { %v2569_v26 = vadd.f32 %v3572_v36, %v2472_v22 }
 0x1ee   :  { %v2572_v27 = vadd.f32 %v3575_v55, %v2475_v7  ;;  %v3512_v51 = vpop.f32.mrb[124].mxu0 }
 0x1ef   :  { %v2674_v47 = vadd.f32 %v2673_v15, %v2569_v26  ;;  %v2697_v32 = vmul.f32 %v2569_v26, %v2569_v26  ;;  %v3576_v33 = vpop.f32.mrb[124].mxu1  ;;  %v3513_v34 = vpop.f32.mrb[125].mxu0 }
 0x1f0   :  { %v3056_v35 = vpack.c.bf16 %v2572_v27, %v2569_v26  ;;  %v2698_v54 = vmul.f32 %v2572_v27, %v2572_v27  ;;  %v3514_v57 = vadd.f32 %v3513_v34, %v3512_v51  ;;  %v3577_v38 = vpop.f32.mrb[125].mxu1  ;;  %v3515_v62 = vpop.f32.mrb[126].mxu0 }
 0x1f1   :  { %v2712_v40 = vadd.f32 %v2711_v28, %v2697_v32  ;;  %v2675_v41 = vadd.f32 %v2674_v47, %v2572_v27  ;;  %v3578_v8 = vadd.f32 %v3577_v38, %v3576_v33  ;;  %v3579_v58 = vpop.f32.mrb[126].mxu1  ;;  %v3516_v25 = vpop.f32.mrb[127].mxu0 }
 0x1f2   :  { %3068 = vst [vmem:[%s4679_s2 + $0x30] sm:$0xff] %v3056_v35   ;;  %v2480_v46 = vadd.f32 %v3514_v57, %v4626_v43  ;;  %v3517_v29 = vadd.f32 %v3516_v25, %v3515_v62  ;;  %v3580_v44 = vpop.f32.mrb[127].mxu1 }
 0x1f3   :  { %v2713_v21 = vadd.f32 %v2712_v40, %v2698_v54  ;;  %v3581_v45 = vadd.f32 %v3580_v44, %v3579_v58 }
 0x1f4   :  { %v2577_v9 = vadd.f32 %v3578_v8, %v2480_v46  ;;  %v2483_v3 = vadd.f32 %v3517_v29, %v4629_v2 }
 0x1f6   :  { %v2676_v50 = vadd.f32 %v2675_v41, %v2577_v9  ;;  %v2699_v52 = vmul.f32 %v2577_v9, %v2577_v9  ;;  %v2580_v56 = vadd.f32 %v3581_v45, %v2483_v3 }
 0x1f8   :  { %v2714_v13 = vadd.f32 %v2713_v21, %v2699_v52  ;;  %v3061_v59 = vpack.c.bf16 %v2580_v56, %v2577_v9  ;;  %v2677_v18 = vadd.f32 %v2676_v50, %v2580_v56  ;;  %v2700_v60 = vmul.f32 %v2580_v56, %v2580_v56 }
 0x1fa   :  { %3069 = vst [vmem:[%s4679_s2 + $0x38] sm:$0xff] %v3061_v59   ;;  %v2678_v61 = vrot.slane %v2677_v18, 4  ;;  %v2715_v43 = vadd.f32 %v2714_v13, %v2700_v60 }
 0x1fc   :  { %v2679_v48 = vadd.f32 %v2678_v61, %v2677_v18  ;;  %v2716_v11 = vrot.slane %v2715_v43, 4 }
 0x1fe   :  { %v2680_v23 = vrot.slane %v2679_v48, 2  ;;  %v2717_v63 = vadd.f32 %v2716_v11, %v2715_v43 }
 0x200   :  { %v2681_v24 = vadd.f32 %v2680_v23, %v2679_v48  ;;  %v2718_v53 = vrot.slane %v2717_v63, 2 }
 0x202   :  { %v2682_v2 = vrot.slane %v2681_v24, 1  ;;  %v2719_v0 = vadd.f32 %v2718_v53, %v2717_v63 }
 0x204   :  { %v2683_v1 = vadd.f32 %v2682_v2, %v2681_v24  ;;  %v2720_v31 = vrot.slane %v2719_v0, 1 }
 0x206   :  { %2684 = vst [vmem:[%s4680_s3] sm:$0xff] %v2683_v1  ;;  %v2721_v49 = vadd.f32 %v2720_v31, %v2719_v0 }
 0x208   :  { %2722 = vst [vmem:[%s4681_s4] sm:$0xff] %v2721_v49 }

// kernel: encoder_forward.22
= control target key start
LH: loop header
LB: loop body
LE: loop exit
PB: predicated region body
PF: predicated region fallthrough
CT: control target
= control target key end

     0   :  { %s136_s0 = inlined_call_operand.vmem [shape: bf16[32,128], index: 0, kind: input, shape index: {}]   ;;  %s137_s1 = inlined_call_operand.vmem [shape: f32[1,128], index: 1, kind: input, shape index: {}]   ;;  %s138_s2 = inlined_call_operand.vmem [shape: f32[1,128], index: 2, kind: input, shape index: {}]   ;;  %s139_s3 = inlined_call_operand.vmem [shape: bf16[32,128], index: 3, kind: output, shape index: {}]  }
   0x1   :  { %v79_v0 = vld [vmem:[%s136_s0] sm:$0xff]   ;;  %v96_v4 = vld [vmem:[%s136_s0 + $0x8] sm:$0xff]  }
   0x2   :  { %v68_v1 = vld [vmem:[%s137_s1] ss:$0 sm:$0xff]  ;;  %v80_v2 = vunpack.c.l.bf16 %v79_v0  ;;  %v81_v3 = vunpack.c.h.bf16 %v79_v0  ;;  %v84_v6 = vunpack.c.l.bf16 %v96_v4  ;;  %v85_v7 = vunpack.c.h.bf16 %v96_v4 }
   0x3   :  { %v69_v5 = vld [vmem:[%s138_s2] ss:$0 sm:$0xff] }
   0x4   :  { %v29_v8 = vmul.f32 %v80_v2, %v68_v1  ;;  %v30_v9 = vmul.f32 %v81_v3, %v68_v1  ;;  %v31_v10 = vmul.f32 %v84_v6, %v68_v1  ;;  %v32_v11 = vmul.f32 %v85_v7, %v68_v1 }
   0x6   :  { %v40_v12 = vadd.f32 %v69_v5, %v29_v8  ;;  %v41_v13 = vadd.f32 %v69_v5, %v30_v9  ;;  %v42_v14 = vadd.f32 %v69_v5, %v31_v10  ;;  %v43_v15 = vadd.f32 %v69_v5, %v32_v11 }
   0x8   :  { %v89_v16 = vpack.c.bf16 %v41_v13, %v40_v12  ;;  %v94_v17 = vpack.c.bf16 %v43_v15, %v42_v14 }
   0xa   :  { %90 = vst [vmem:[%s139_s3] sm:$0xff] %v89_v16   ;;  %97 = vst [vmem:[%s139_s3 + $0x8] sm:$0xff] %v94_v17  }

// kernel: encoder_forward.23
= control target key start
LH: loop header
LB: loop body
LE: loop exit
PB: predicated region body
PF: predicated region fallthrough
CT: control target
= control target key end

     0   :  { %s670_s1 = inlined_call_operand.vmem [shape: bf16[128,128], index: 1, kind: input, shape index: {}]   ;;  %s671_s0 = inlined_call_operand.vmem [shape: bf16[128,128], index: 0, kind: input, shape index: {}]   ;;  %s672_s2 = inlined_call_operand.vmem [shape: bf16[128,128], index: 2, kind: output, shape index: {0}]   ;;  %s673_s3 = inlined_call_operand.vmem [shape: f32[8,128], index: 3, kind: output, shape index: {1}]   ;;  %s674_s4 = inlined_call_operand.vmem [shape: f32[8,128], index: 4, kind: output, shape index: {2}]  }
   0x1   :  { %v551_v0 = vld [vmem:[%s670_s1] sm:$0xff]   ;;  %v552_v1 = vld [vmem:[%s670_s1 + $0x8] sm:$0xff]   ;;  %v553_v2 = vld [vmem:[%s670_s1 + $0x10] sm:$0xff]  }
   0x2   :  { %503 = vmatprep.subr.bf16.mxu0 %v551_v0  ;;  %535 = vmatprep.subr.bf16.mxu1 %v551_v0  ;;  %v554_v3 = vld [vmem:[%s670_s1 + $0x18] sm:$0xff]   ;;  %v559_v4 = vld [vmem:[%s671_s0] sm:$0xff]   ;;  %v556_v7 = vld [vmem:[%s670_s1 + $0x28] sm:$0xff]  }
   0x3   :  { %504 = vmatpush3.bf16.msra.mxu0 %v551_v0  ;;  %543 = vmatpush3.bf16.msra.mxu1 %v551_v0  ;;  %v555_v5 = vld [vmem:[%s670_s1 + $0x20] sm:$0xff]   ;;  %v557_v8 = vld [vmem:[%s670_s1 + $0x30] sm:$0xff]   ;;  %v558_v9 = vld [vmem:[%s670_s1 + $0x38] sm:$0xff]  }
   0x4   :  { %505 = vmatprep.subr.bf16.mxu0 %v552_v1  ;;  %536 = vmatprep.subr.bf16.mxu1 %v552_v1  ;;  %v563_v6 = vld [vmem:[%s671_s0 + $0x20] sm:$0xff]   ;;  %v560_v10 = vld [vmem:[%s671_s0 + $0x8] sm:$0xff]   ;;  %v561_v12 = vld [vmem:[%s671_s0 + $0x10] sm:$0xff]  }
   0x5   :  { %519 = vmatprep.mubr.bf16.mxu0 %v559_v4  ;;  %527 = vmatprep.mubr.bf16.mxu1 %v563_v6  ;;  %v564_v11 = vld [vmem:[%s671_s0 + $0x28] sm:$0xff]   ;;  %v565_v13 = vld [vmem:[%s671_s0 + $0x30] sm:$0xff]   ;;  %v562_v14 = vld [vmem:[%s671_s0 + $0x18] sm:$0xff]  }
   0x6   :  { %v566_v15 = vld [vmem:[%s671_s0 + $0x38] sm:$0xff]  }
   0x7   :  { %506 = vmatpush3.bf16.msra.mxu0 %v552_v1  ;;  %544 = vmatpush3.bf16.msra.mxu1 %v552_v1 }
   0x8   :  { %507 = vmatprep.subr.bf16.mxu0 %v553_v2  ;;  %537 = vmatprep.subr.bf16.mxu1 %v553_v2 }
   0xb   :  { %508 = vmatpush3.bf16.msra.mxu0 %v553_v2  ;;  %545 = vmatpush3.bf16.msra.mxu1 %v553_v2 }
   0xc   :  { %509 = vmatprep.subr.bf16.mxu0 %v554_v3  ;;  %538 = vmatprep.subr.bf16.mxu1 %v554_v3 }
   0xf   :  { %510 = vmatpush3.bf16.msra.mxu0 %v554_v3  ;;  %546 = vmatpush3.bf16.msra.mxu1 %v554_v3 }
  0x10   :  { %511 = vmatprep.subr.bf16.mxu0 %v555_v5  ;;  %539 = vmatprep.subr.bf16.mxu1 %v555_v5 }
  0x13   :  { %512 = vmatpush3.bf16.msra.mxu0 %v555_v5  ;;  %547 = vmatpush3.bf16.msra.mxu1 %v555_v5 }
  0x14   :  { %513 = vmatprep.subr.bf16.mxu0 %v556_v7  ;;  %540 = vmatprep.subr.bf16.mxu1 %v556_v7 }
  0x17   :  { %514 = vmatpush3.bf16.msra.mxu0 %v556_v7  ;;  %548 = vmatpush3.bf16.msra.mxu1 %v556_v7 }
  0x18   :  { %515 = vmatprep.subr.bf16.mxu0 %v557_v8  ;;  %541 = vmatprep.subr.bf16.mxu1 %v557_v8 }
  0x1b   :  { %516 = vmatpush3.bf16.msra.mxu0 %v557_v8  ;;  %549 = vmatpush3.bf16.msra.mxu1 %v557_v8 }
  0x1c   :  { %517 = vmatprep.subr.bf16.mxu0 %v558_v9  ;;  %542 = vmatprep.subr.bf16.mxu1 %v558_v9 }
  0x1f   :  { %518 = vmatpush3.bf16.msra.mxu0 %v558_v9  ;;  %550 = vmatpush3.bf16.msra.mxu1 %v558_v9 }
  0x22   :  { %520 = vmatmul.mubr.bf16.vlgmr.msra.gmra.mrb[0].mxu0 %v560_v10  ;;  %528 = vmatmul.mubr.bf16.vlgmr.msra.gmra.mrb[0].mxu1 %v564_v11 }
  0x23   :  { %523 = vmatprep.mubr.bf16.mxu0 %v561_v12  ;;  %531 = vmatprep.mubr.bf16.mxu1 %v565_v13 }
  0x2a   :  { %524 = vmatmul.mubr.bf16.gmra.mrb[4].mxu0 %v562_v14  ;;  %532 = vmatmul.mubr.bf16.gmra.mrb[4].mxu1 %v566_v15 }
  0xf5   :  { %v521_v16 = vpop.f32.mrb[0].mxu0  ;;  %v529_v17 = vpop.f32.mrb[0].mxu1 }
  0xf6   :  { %v177_v18 = vpop.f32.mrb[1].mxu0  ;;  %v209_v19 = vpop.f32.mrb[1].mxu1  ;;  %v344_v31 = vmul.f32 %v521_v16, %v521_v16  ;;  %v352_v3 = vmul.f32 %v529_v17, %v529_v17 }
  0xf7   :  { %v522_v20 = vpop.f32.mrb[2].mxu0  ;;  %v530_v21 = vpop.f32.mrb[2].mxu1  ;;  %v342_v22 = vmul.f32 %v177_v18, %v177_v18  ;;  %v350_v61 = vmul.f32 %v209_v19, %v209_v19 }
  0xf8   :  { %v448_v23 = vpack.c.bf16 %v522_v20, %v521_v16  ;;  %v180_v24 = vpop.f32.mrb[3].mxu0  ;;  %v468_v25 = vpack.c.bf16 %v530_v21, %v529_v17  ;;  %v212_v26 = vpop.f32.mrb[3].mxu1  ;;  %v345_v34 = vmul.f32 %v522_v20, %v522_v20  ;;  %v353_v6 = vmul.f32 %v530_v21, %v530_v21 }
  0xf9   :  { %v443_v27 = vpack.c.bf16 %v180_v24, %v177_v18  ;;  %v320_v28 = vadd.f32 %v180_v24, %v177_v18  ;;  %v343_v29 = vmul.f32 %v180_v24, %v180_v24  ;;  %v463_v30 = vpack.c.bf16 %v212_v26, %v209_v19 }
  0xfa   :  { %480 = vst [vmem:[%s672_s2 + $0x8] sm:$0xff] %v448_v23   ;;  %484 = vst [vmem:[%s672_s2 + $0x28] sm:$0xff] %v468_v25   ;;  %v351_v2 = vmul.f32 %v212_v26, %v212_v26 }
  0xfb   :  { %444 = vst [vmem:[%s672_s2] sm:$0xff] %v443_v27   ;;  %v321_v32 = vadd.f32 %v521_v16, %v320_v28  ;;  %v358_v33 = vadd.f32 %v343_v29, %v342_v22  ;;  %483 = vst [vmem:[%s672_s2 + $0x20] sm:$0xff] %v463_v30  }
  0xfd   :  { %v359_v35 = vadd.f32 %v358_v33, %v344_v31  ;;  %v525_v36 = vpop.f32.mrb[4].mxu0  ;;  %v322_v37 = vadd.f32 %v522_v20, %v321_v32  ;;  %v533_v38 = vpop.f32.mrb[4].mxu1 }
  0xfe   :  { %v193_v39 = vpop.f32.mrb[5].mxu0  ;;  %v225_v40 = vpop.f32.mrb[5].mxu1  ;;  %v348_v55 = vmul.f32 %v525_v36, %v525_v36  ;;  %v356_v15 = vmul.f32 %v533_v38, %v533_v38 }
  0xff   :  { %v323_v41 = vadd.f32 %v322_v37, %v193_v39  ;;  %v346_v42 = vmul.f32 %v193_v39, %v193_v39  ;;  %v360_v43 = vadd.f32 %v359_v35, %v345_v34  ;;  %v526_v44 = vpop.f32.mrb[6].mxu0  ;;  %v534_v45 = vpop.f32.mrb[6].mxu1  ;;  %v354_v9 = vmul.f32 %v225_v40, %v225_v40 }
 0x100   :  { %v458_v46 = vpack.c.bf16 %v526_v44, %v525_v36  ;;  %v196_v47 = vpop.f32.mrb[7].mxu0  ;;  %v478_v48 = vpack.c.bf16 %v534_v45, %v533_v38  ;;  %v228_v49 = vpop.f32.mrb[7].mxu1  ;;  %v349_v58 = vmul.f32 %v526_v44, %v526_v44 }
 0x101   :  { %v361_v50 = vadd.f32 %v360_v43, %v346_v42  ;;  %v453_v51 = vpack.c.bf16 %v196_v47, %v193_v39  ;;  %v324_v52 = vadd.f32 %v323_v41, %v196_v47  ;;  %v347_v53 = vmul.f32 %v196_v47, %v196_v47 }
 0x102   :  { %482 = vst [vmem:[%s672_s2 + $0x18] sm:$0xff] %v458_v46   ;;  %486 = vst [vmem:[%s672_s2 + $0x38] sm:$0xff] %v478_v48   ;;  %v473_v54 = vpack.c.bf16 %v228_v49, %v225_v40  ;;  %v355_v14 = vmul.f32 %v228_v49, %v228_v49 }
 0x103   :  { %481 = vst [vmem:[%s672_s2 + $0x10] sm:$0xff] %v453_v51   ;;  %v325_v56 = vadd.f32 %v525_v36, %v324_v52  ;;  %v362_v57 = vadd.f32 %v361_v50, %v347_v53 }
 0x104   :  { %485 = vst [vmem:[%s672_s2 + $0x30] sm:$0xff] %v473_v54  }
 0x105   :  { %v363_v59 = vadd.f32 %v362_v57, %v348_v55  ;;  %v326_v60 = vadd.f32 %v526_v44, %v325_v56 }
 0x107   :  { %v327_v62 = vadd.f32 %v326_v60, %v209_v19  ;;  %v364_v63 = vadd.f32 %v363_v59, %v349_v58  ;;  %v357_v19 = vmul.f32 %v534_v45, %v534_v45 }
 0x109   :  { %v365_v0 = vadd.f32 %v364_v63, %v350_v61  ;;  %v328_v1 = vadd.f32 %v327_v62, %v212_v26 }
 0x10b   :  { %v329_v4 = vadd.f32 %v529_v17, %v328_v1  ;;  %v366_v5 = vadd.f32 %v365_v0, %v351_v2 }
 0x10d   :  { %v367_v7 = vadd.f32 %v366_v5, %v352_v3  ;;  %v330_v8 = vadd.f32 %v530_v21, %v329_v4 }
 0x10f   :  { %v331_v10 = vadd.f32 %v330_v8, %v225_v40  ;;  %v368_v11 = vadd.f32 %v367_v7, %v353_v6 }
 0x111   :  { %v369_v12 = vadd.f32 %v368_v11, %v354_v9  ;;  %v332_v13 = vadd.f32 %v331_v10, %v228_v49 }
 0x113   :  { %v333_v16 = vadd.f32 %v533_v38, %v332_v13  ;;  %v370_v18 = vadd.f32 %v369_v12, %v355_v14 }
 0x115   :  { %v334_v20 = vadd.f32 %v534_v45, %v333_v16  ;;  %v371_v22 = vadd.f32 %v370_v18, %v356_v15 }
 0x117   :  { %v335_v23 = vrot.slane %v334_v20, 4  ;;  %v372_v24 = vadd.f32 %v371_v22, %v357_v19 }
 0x119   :  { %v336_v25 = vadd.f32 %v335_v23, %v334_v20  ;;  %v373_v17 = vrot.slane %v372_v24, 4 }
 0x11b   :  { %v337_v26 = vrot.slane %v336_v25, 2  ;;  %v374_v27 = vadd.f32 %v373_v17, %v372_v24 }
 0x11d   :  { %v338_v28 = vadd.f32 %v337_v26, %v336_v25  ;;  %v375_v21 = vrot.slane %v374_v27, 2 }
 0x11f   :  { %v339_v29 = vrot.slane %v338_v28, 1  ;;  %v376_v30 = vadd.f32 %v375_v21, %v374_v27 }
 0x121   :  { %v340_v31 = vadd.f32 %v339_v29, %v338_v28  ;;  %v377_v32 = vrot.slane %v376_v30, 1 }
 0x123   :  { %341 = vst [vmem:[%s673_s3] sm:$0xff] %v340_v31  ;;  %v378_v33 = vadd.f32 %v377_v32, %v376_v30 }
 0x125   :  { %379 = vst [vmem:[%s674_s4] sm:$0xff] %v378_v33 }

// kernel: encoder_forward.21
= control target key start
LH: loop header
LB: loop body
LE: loop exit
PB: predicated region body
PF: predicated region fallthrough
CT: control target
= control target key end

     0   :  { %s2727_s1 = inlined_call_operand.vmem [shape: bf16[2048,128], index: 1, kind: input, shape index: {}]   ;;  %s2728_s0 = inlined_call_operand.vmem [shape: bf16[32,2048], index: 0, kind: input, shape index: {}]   ;;  %s2729_s2 = inlined_call_operand.vmem [shape: bf16[32,128], index: 2, kind: output, shape index: {0}]   ;;  %s2730_s3 = inlined_call_operand.vmem [shape: f32[8,128], index: 3, kind: output, shape index: {1}]   ;;  %s2731_s4 = inlined_call_operand.vmem [shape: f32[8,128], index: 4, kind: output, shape index: {2}]  }
   0x1   :  { %v2082_v0 = vld [vmem:[%s2727_s1 + $0x40] sm:$0xff]   ;;  %v2086_v4 = vld [vmem:[%s2727_s1 + $0x48] sm:$0xff]   ;;  %v2090_v8 = vld [vmem:[%s2727_s1 + $0x50] sm:$0xff]  }
   0x2   :  { %v2083_v1 = vld [vmem:[%s2727_s1 + $0xc0] sm:$0xff]   ;;  %1858 = vmatprep.subr.bf16.mxu0 %v2082_v0  ;;  %v2087_v5 = vld [vmem:[%s2727_s1 + $0xc8] sm:$0xff]   ;;  %v2091_v9 = vld [vmem:[%s2727_s1 + $0xd0] sm:$0xff]  }
   0x3   :  { %v2084_v2 = vld [vmem:[%s2727_s1] sm:$0xff]   ;;  %1886 = vmatprep.subr.bf16.mxu1 %v2083_v1  ;;  %v2088_v6 = vld [vmem:[%s2727_s1 + $0x8] sm:$0xff]   ;;  %v2092_v10 = vld [vmem:[%s2727_s1 + $0x10] sm:$0xff]  }
   0x4   :  { %v2085_v3 = vld [vmem:[%s2727_s1 + $0x80] sm:$0xff]   ;;  %1859 = vmatpush3.bf16.msra.mxu0 %v2084_v2  ;;  %v2089_v7 = vld [vmem:[%s2727_s1 + $0x88] sm:$0xff]   ;;  %v2093_v11 = vld [vmem:[%s2727_s1 + $0x90] sm:$0xff]  }
   0x5   :  { %1887 = vmatpush3.bf16.msra.mxu1 %v2085_v3  ;;  %1860 = vmatprep.subr.bf16.mxu0 %v2086_v4  ;;  %v2094_v12 = vld [vmem:[%s2727_s1 + $0x58] sm:$0xff]   ;;  %v2098_v16 = vld [vmem:[%s2727_s1 + $0x60] sm:$0xff]   ;;  %v2102_v20 = vld [vmem:[%s2727_s1 + $0x68] sm:$0xff]  }
   0x6   :  { %1888 = vmatprep.subr.bf16.mxu1 %v2087_v5  ;;  %v2095_v13 = vld [vmem:[%s2727_s1 + $0xd8] sm:$0xff]   ;;  %v2099_v17 = vld [vmem:[%s2727_s1 + $0xe0] sm:$0xff]   ;;  %v2103_v21 = vld [vmem:[%s2727_s1 + $0xe8] sm:$0xff]  }
   0x7   :  { %v2096_v14 = vld [vmem:[%s2727_s1 + $0x18] sm:$0xff]   ;;  %v2100_v18 = vld [vmem:[%s2727_s1 + $0x20] sm:$0xff]   ;;  %v2104_v22 = vld [vmem:[%s2727_s1 + $0x28] sm:$0xff]  }
   0x8   :  { %1861 = vmatpush3.bf16.msra.mxu0 %v2088_v6  ;;  %v2097_v15 = vld [vmem:[%s2727_s1 + $0x98] sm:$0xff]   ;;  %v2101_v19 = vld [vmem:[%s2727_s1 + $0xa0] sm:$0xff]   ;;  %v2105_v23 = vld [vmem:[%s2727_s1 + $0xa8] sm:$0xff]  }
   0x9   :  { %1889 = vmatpush3.bf16.msra.mxu1 %v2089_v7  ;;  %1862 = vmatprep.subr.bf16.mxu0 %v2090_v8  ;;  %v2106_v24 = vld [vmem:[%s2727_s1 + $0x70] sm:$0xff]   ;;  %v2110_v28 = vld [vmem:[%s2727_s1 + $0x78] sm:$0xff]   ;;  %v15_v32 = vld [vmem:[%s2728_s0] sm:$0xff] }
   0xa   :  { %1890 = vmatprep.subr.bf16.mxu1 %v2091_v9  ;;  %v2107_v25 = vld [vmem:[%s2727_s1 + $0xf0] sm:$0xff]   ;;  %v2111_v29 = vld [vmem:[%s2727_s1 + $0xf8] sm:$0xff]   ;;  %v23_v33 = vld [vmem:[%s2728_s0 + $0x40] sm:$0xff] }
   0xb   :  { %v2108_v26 = vld [vmem:[%s2727_s1 + $0x30] sm:$0xff]   ;;  %v2112_v30 = vld [vmem:[%s2727_s1 + $0x38] sm:$0xff]   ;;  %v16_v34 = vld [vmem:[%s2728_s0 + $0x8] sm:$0xff]  ;;  %v1679_v35 = vcombine.low %v15_v32, %v23_v33  ;;  %v1680_v36 = vcombine.high %v15_v32, %v23_v33 }
   0xc   :  { %1863 = vmatpush3.bf16.msra.mxu0 %v2092_v10  ;;  %v2109_v27 = vld [vmem:[%s2727_s1 + $0xb0] sm:$0xff]   ;;  %v2113_v31 = vld [vmem:[%s2727_s1 + $0xb8] sm:$0xff]   ;;  %v24_v37 = vld [vmem:[%s2728_s0 + $0x48] sm:$0xff] }
   0xd   :  { %1891 = vmatpush3.bf16.msra.mxu1 %v2093_v11  ;;  %1864 = vmatprep.subr.bf16.mxu0 %v2094_v12  ;;  %v1681_v38 = vcombine.low %v16_v34, %v24_v37  ;;  %v1682_v39 = vcombine.high %v16_v34, %v24_v37  ;;  %v2114_v40 = vld [vmem:[%s2727_s1 + $0x140] sm:$0xff]   ;;  %v2118_v44 = vld [vmem:[%s2727_s1 + $0x148] sm:$0xff]   ;;  %v2122_v48 = vld [vmem:[%s2727_s1 + $0x150] sm:$0xff]  }
   0xe   :  { %1892 = vmatprep.subr.bf16.mxu1 %v2095_v13  ;;  %1263 = vmatprep.mubr.bf16.mxu0 %v1680_v36  ;;  %v2115_v41 = vld [vmem:[%s2727_s1 + $0x1c0] sm:$0xff]   ;;  %v2119_v45 = vld [vmem:[%s2727_s1 + $0x1c8] sm:$0xff]   ;;  %v2123_v49 = vld [vmem:[%s2727_s1 + $0x1d0] sm:$0xff]  }
   0xf   :  { %1312 = vmatprep.mubr.bf16.mxu1 %v1682_v39  ;;  %v2116_v42 = vld [vmem:[%s2727_s1 + $0x100] sm:$0xff]   ;;  %v2120_v46 = vld [vmem:[%s2727_s1 + $0x108] sm:$0xff]   ;;  %v2124_v50 = vld [vmem:[%s2727_s1 + $0x110] sm:$0xff]  }
  0x10   :  { %1865 = vmatpush3.bf16.msra.mxu0 %v2096_v14  ;;  %v2117_v43 = vld [vmem:[%s2727_s1 + $0x180] sm:$0xff]   ;;  %v2121_v47 = vld [vmem:[%s2727_s1 + $0x188] sm:$0xff]   ;;  %v2125_v51 = vld [vmem:[%s2727_s1 + $0x190] sm:$0xff]  }
  0x11   :  { %1893 = vmatpush3.bf16.msra.mxu1 %v2097_v15  ;;  %1866 = vmatprep.subr.bf16.mxu0 %v2098_v16  ;;  %v2126_v52 = vld [vmem:[%s2727_s1 + $0x158] sm:$0xff]   ;;  %v2130_v56 = vld [vmem:[%s2727_s1 + $0x160] sm:$0xff]   ;;  %v2134_v60 = vld [vmem:[%s2727_s1 + $0x168] sm:$0xff]  }
  0x12   :  { %1894 = vmatprep.subr.bf16.mxu1 %v2099_v17  ;;  %v2127_v53 = vld [vmem:[%s2727_s1 + $0x1d8] sm:$0xff]   ;;  %v2131_v57 = vld [vmem:[%s2727_s1 + $0x1e0] sm:$0xff]   ;;  %v2135_v61 = vld [vmem:[%s2727_s1 + $0x1e8] sm:$0xff]  }
  0x13   :  { %v2128_v54 = vld [vmem:[%s2727_s1 + $0x118] sm:$0xff]   ;;  %v2132_v58 = vld [vmem:[%s2727_s1 + $0x120] sm:$0xff]   ;;  %v32_v1 = vld [vmem:[%s2728_s0 + $0x88] sm:$0xff] }
  0x14   :  { %1867 = vmatpush3.bf16.msra.mxu0 %v2100_v18  ;;  %v2129_v55 = vld [vmem:[%s2727_s1 + $0x198] sm:$0xff]   ;;  %v2133_v59 = vld [vmem:[%s2727_s1 + $0x1a0] sm:$0xff]   ;;  %v40_v2 = vld [vmem:[%s2728_s0 + $0xc8] sm:$0xff] }
  0x15   :  { %1895 = vmatpush3.bf16.msra.mxu1 %v2101_v19  ;;  %1868 = vmatprep.subr.bf16.mxu0 %v2102_v20  ;;  %v31_v62 = vld [vmem:[%s2728_s0 + $0x80] sm:$0xff]  ;;  %v1698_v4 = vcombine.high %v32_v1, %v40_v2  ;;  %v2136_v5 = vld [vmem:[%s2727_s1 + $0x128] sm:$0xff]   ;;  %v1697_v6 = vcombine.low %v32_v1, %v40_v2  ;;  %v2138_v8 = vld [vmem:[%s2727_s1 + $0x170] sm:$0xff]  }
  0x16   :  { %1896 = vmatprep.subr.bf16.mxu1 %v2103_v21  ;;  %v39_v63 = vld [vmem:[%s2728_s0 + $0xc0] sm:$0xff]  ;;  %v2137_v7 = vld [vmem:[%s2727_s1 + $0x1a8] sm:$0xff]   ;;  %v2139_v9 = vld [vmem:[%s2727_s1 + $0x1f0] sm:$0xff]  }
  0x17   :  { %v1696_v0 = vcombine.high %v31_v62, %v39_v63  ;;  %v1695_v3 = vcombine.low %v31_v62, %v39_v63  ;;  %v2140_v10 = vld [vmem:[%s2727_s1 + $0x130] sm:$0xff]   ;;  %v2142_v12 = vld [vmem:[%s2727_s1 + $0x178] sm:$0xff]   ;;  %v27_v1 = vld [vmem:[%s2728_s0 + $0x60] sm:$0xff] }
  0x18   :  { %1869 = vmatpush3.bf16.msra.mxu0 %v2104_v22  ;;  %v2141_v11 = vld [vmem:[%s2727_s1 + $0x1b0] sm:$0xff]   ;;  %v2143_v13 = vld [vmem:[%s2727_s1 + $0x1f8] sm:$0xff]  }
  0x19   :  { %1897 = vmatpush3.bf16.msra.mxu1 %v2105_v23  ;;  %1870 = vmatprep.subr.bf16.mxu0 %v2106_v24  ;;  %v2144_v14 = vld [vmem:[%s2727_s1 + $0x138] sm:$0xff]   ;;  %v17_v16 = vld [vmem:[%s2728_s0 + $0x10] sm:$0xff]  ;;  %v2146_v24 = vld [vmem:[%s2727_s1 + $0x240] sm:$0xff]  }
  0x1a   :  { %1898 = vmatprep.subr.bf16.mxu1 %v2107_v25  ;;  %v2145_v15 = vld [vmem:[%s2727_s1 + $0x1b8] sm:$0xff]   ;;  %v25_v17 = vld [vmem:[%s2728_s0 + $0x50] sm:$0xff]  ;;  %v2147_v25 = vld [vmem:[%s2727_s1 + $0x2c0] sm:$0xff]  }
  0x1b   :  { %v18_v18 = vld [vmem:[%s2728_s0 + $0x18] sm:$0xff]  ;;  %v1683_v20 = vcombine.low %v17_v16, %v25_v17  ;;  %v1684_v21 = vcombine.high %v17_v16, %v25_v17  ;;  %v33_v32 = vld [vmem:[%s2728_s0 + $0x90] sm:$0xff]  ;;  %v35_v16 = vld [vmem:[%s2728_s0 + $0xa0] sm:$0xff] }
  0x1c   :  { %1871 = vmatpush3.bf16.msra.mxu0 %v2108_v26  ;;  %v26_v19 = vld [vmem:[%s2728_s0 + $0x58] sm:$0xff]  ;;  %v2148_v26 = vld [vmem:[%s2727_s1 + $0x200] sm:$0xff]   ;;  %v41_v33 = vld [vmem:[%s2728_s0 + $0xd0] sm:$0xff] }
  0x1d   :  { %1899 = vmatpush3.bf16.msra.mxu1 %v2109_v27  ;;  %1872 = vmatprep.subr.bf16.mxu0 %v2110_v28  ;;  %v1685_v22 = vcombine.low %v18_v18, %v26_v19  ;;  %v1686_v23 = vcombine.high %v18_v18, %v26_v19  ;;  %v2149_v27 = vld [vmem:[%s2727_s1 + $0x280] sm:$0xff]   ;;  %v2150_v28 = vld [vmem:[%s2727_s1 + $0x248] sm:$0xff]   ;;  %v1700_v34 = vcombine.high %v33_v32, %v41_v33  ;;  %v2154_v36 = vld [vmem:[%s2727_s1 + $0x250] sm:$0xff]  }
  0x1e   :  { %1900 = vmatprep.subr.bf16.mxu1 %v2111_v29  ;;  %v2151_v29 = vld [vmem:[%s2727_s1 + $0x2c8] sm:$0xff]   ;;  %v2155_v37 = vld [vmem:[%s2727_s1 + $0x2d0] sm:$0xff]   ;;  %v42_v39 = vld [vmem:[%s2728_s0 + $0xd8] sm:$0xff] }
  0x1f   :  { %v2176_v62 = vld [vmem:[%s2727_s1 + $0x238] sm:$0xff]   ;;  %v43_v17 = vld [vmem:[%s2728_s0 + $0xe0] sm:$0xff] }
  0x20   :  { %1873 = vmatpush3.bf16.msra.mxu0 %v2112_v30  ;;  %v2152_v30 = vld [vmem:[%s2727_s1 + $0x208] sm:$0xff]   ;;  %v2177_v63 = vld [vmem:[%s2727_s1 + $0x2b8] sm:$0xff]   ;;  %v1704_v18 = vcombine.high %v35_v16, %v43_v17  ;;  %v1703_v19 = vcombine.low %v35_v16, %v43_v17 }
  0x21   :  { %1901 = vmatpush3.bf16.msra.mxu1 %v2113_v31  ;;  %1914 = vmatprep.subr.bf16.mxu0 %v2114_v40  ;;  %v2153_v31 = vld [vmem:[%s2727_s1 + $0x288] sm:$0xff]  }
  0x22   :  { %1942 = vmatprep.subr.bf16.mxu1 %v2115_v41  ;;  %v2156_v41 = vld [vmem:[%s2727_s1 + $0x210] sm:$0xff]  }
  0x23   :  { %1264 = vmatmul.mubr.bf16.vlgmr.msra.gmra.mrb[0].mxu0 %v1679_v35  ;;  %v1699_v35 = vcombine.low %v33_v32, %v41_v33  ;;  %v2194_v32 = vld [vmem:[%s2727_s1 + $0x360] sm:$0xff]  }
  0x24   :  { %1313 = vmatmul.mubr.bf16.vlgmr.msra.gmra.mrb[0].mxu1 %v1681_v38  ;;  %1915 = vmatpush3.bf16.msra.mxu0 %v2116_v42  ;;  %v34_v38 = vld [vmem:[%s2728_s0 + $0x98] sm:$0xff]  ;;  %v2195_v33 = vld [vmem:[%s2727_s1 + $0x3e0] sm:$0xff]  }
  0x25   :  { %1943 = vmatpush3.bf16.msra.mxu1 %v2117_v43  ;;  %1916 = vmatprep.subr.bf16.mxu0 %v2118_v44  ;;  %v1702_v40 = vcombine.high %v34_v38, %v42_v39  ;;  %v1701_v42 = vcombine.low %v34_v38, %v42_v39  ;;  %v2157_v43 = vld [vmem:[%s2727_s1 + $0x290] sm:$0xff]   ;;  %v2158_v44 = vld [vmem:[%s2727_s1 + $0x258] sm:$0xff]   ;;  %v2200_v38 = vld [vmem:[%s2727_s1 + $0x328] sm:$0xff]  }
  0x26   :  { %1944 = vmatprep.subr.bf16.mxu1 %v2119_v45  ;;  %1271 = vmatprep.mubr.bf16.mxu0 %v1696_v0  ;;  %v2159_v45 = vld [vmem:[%s2727_s1 + $0x2d8] sm:$0xff]   ;;  %v19_v0 = vld [vmem:[%s2728_s0 + $0x20] sm:$0xff]  ;;  %v2201_v39 = vld [vmem:[%s2727_s1 + $0x3a8] sm:$0xff]  }
  0x27   :  { %1320 = vmatprep.mubr.bf16.mxu1 %v1698_v4  ;;  %v1687_v2 = vcombine.low %v19_v0, %v27_v1  ;;  %v20_v4 = vld [vmem:[%s2728_s0 + $0x28] sm:$0xff] }
  0x28   :  { %1917 = vmatpush3.bf16.msra.mxu0 %v2120_v46  ;;  %v2160_v46 = vld [vmem:[%s2727_s1 + $0x218] sm:$0xff]  }
  0x29   :  { %1945 = vmatpush3.bf16.msra.mxu1 %v2121_v47  ;;  %1918 = vmatprep.subr.bf16.mxu0 %v2122_v48  ;;  %v2161_v47 = vld [vmem:[%s2727_s1 + $0x298] sm:$0xff]   ;;  %v2162_v48 = vld [vmem:[%s2727_s1 + $0x260] sm:$0xff]  }
  0x2a   :  { %1946 = vmatprep.subr.bf16.mxu1 %v2123_v49  ;;  %v2163_v49 = vld [vmem:[%s2727_s1 + $0x2e0] sm:$0xff]  }
  0x2b   :  { %1272 = vmatmul.mubr.bf16.gmra.mrb[4].mxu0 %v1695_v3  ;;  %v1688_v3 = vcombine.high %v19_v0, %v27_v1 }
  0x2c   :  { %1919 = vmatpush3.bf16.msra.mxu0 %v2124_v50  ;;  %1321 = vmatmul.mubr.bf16.gmra.mrb[4].mxu1 %v1697_v6  ;;  %v2164_v50 = vld [vmem:[%s2727_s1 + $0x220] sm:$0xff]  }
  0x2d   :  { %1947 = vmatpush3.bf16.msra.mxu1 %v2125_v51  ;;  %1920 = vmatprep.subr.bf16.mxu0 %v2126_v52  ;;  %v2165_v51 = vld [vmem:[%s2727_s1 + $0x2a0] sm:$0xff]   ;;  %v2166_v52 = vld [vmem:[%s2727_s1 + $0x268] sm:$0xff]  }
  0x2e   :  { %1948 = vmatprep.subr.bf16.mxu1 %v2127_v53  ;;  %1361 = vmatprep.mubr.bf16.mxu0 %v1684_v21  ;;  %v2167_v53 = vld [vmem:[%s2727_s1 + $0x2e8] sm:$0xff]   ;;  %v2187_v21 = vld [vmem:[%s2727_s1 + $0x3d0] sm:$0xff]  }
  0x2f   :  { %1410 = vmatprep.mubr.bf16.mxu1 %v1686_v23  ;;  %v44_v23 = vld [vmem:[%s2728_s0 + $0xe8] sm:$0xff] }
  0x30   :  { %1921 = vmatpush3.bf16.msra.mxu0 %v2128_v54  ;;  %v2168_v54 = vld [vmem:[%s2727_s1 + $0x228] sm:$0xff]  }
  0x31   :  { %1949 = vmatpush3.bf16.msra.mxu1 %v2129_v55  ;;  %1922 = vmatprep.subr.bf16.mxu0 %v2130_v56  ;;  %v2169_v55 = vld [vmem:[%s2727_s1 + $0x2a8] sm:$0xff]   ;;  %v2170_v56 = vld [vmem:[%s2727_s1 + $0x270] sm:$0xff]  }
  0x32   :  { %1950 = vmatprep.subr.bf16.mxu1 %v2131_v57  ;;  %v2171_v57 = vld [vmem:[%s2727_s1 + $0x2f0] sm:$0xff]  }
  0x34   :  { %1923 = vmatpush3.bf16.msra.mxu0 %v2132_v58  ;;  %v2172_v58 = vld [vmem:[%s2727_s1 + $0x230] sm:$0xff]  }
  0x35   :  { %1951 = vmatpush3.bf16.msra.mxu1 %v2133_v59  ;;  %1924 = vmatprep.subr.bf16.mxu0 %v2134_v60  ;;  %v2173_v59 = vld [vmem:[%s2727_s1 + $0x2b0] sm:$0xff]   ;;  %v2174_v60 = vld [vmem:[%s2727_s1 + $0x278] sm:$0xff]  }
  0x36   :  { %1952 = vmatprep.subr.bf16.mxu1 %v2135_v61  ;;  %v2175_v61 = vld [vmem:[%s2727_s1 + $0x2f8] sm:$0xff]  }
  0x38   :  { %1925 = vmatpush3.bf16.msra.mxu0 %v2136_v5  ;;  %v28_v5 = vld [vmem:[%s2728_s0 + $0x68] sm:$0xff] }
  0x39   :  { %1953 = vmatpush3.bf16.msra.mxu1 %v2137_v7  ;;  %1926 = vmatprep.subr.bf16.mxu0 %v2138_v8  ;;  %v1689_v6 = vcombine.low %v20_v4, %v28_v5  ;;  %v1690_v7 = vcombine.high %v20_v4, %v28_v5  ;;  %v2178_v8 = vld [vmem:[%s2727_s1 + $0x340] sm:$0xff]  }
  0x3a   :  { %1954 = vmatprep.subr.bf16.mxu1 %v2139_v9  ;;  %v2179_v9 = vld [vmem:[%s2727_s1 + $0x3c0] sm:$0xff]  }
  0x3c   :  { %1927 = vmatpush3.bf16.msra.mxu0 %v2140_v10  ;;  %v2180_v10 = vld [vmem:[%s2727_s1 + $0x300] sm:$0xff]  }
  0x3d   :  { %1955 = vmatpush3.bf16.msra.mxu1 %v2141_v11  ;;  %1928 = vmatprep.subr.bf16.mxu0 %v2142_v12  ;;  %v2181_v11 = vld [vmem:[%s2727_s1 + $0x380] sm:$0xff]   ;;  %v2182_v12 = vld [vmem:[%s2727_s1 + $0x348] sm:$0xff]  }
  0x3e   :  { %1956 = vmatprep.subr.bf16.mxu1 %v2143_v13  ;;  %v2183_v13 = vld [vmem:[%s2727_s1 + $0x3c8] sm:$0xff]  }
  0x40   :  { %1929 = vmatpush3.bf16.msra.mxu0 %v2144_v14  ;;  %v2184_v14 = vld [vmem:[%s2727_s1 + $0x308] sm:$0xff]  }
  0x41   :  { %1957 = vmatpush3.bf16.msra.mxu1 %v2145_v15  ;;  %1970 = vmatprep.subr.bf16.mxu0 %v2146_v24  ;;  %v2185_v15 = vld [vmem:[%s2727_s1 + $0x388] sm:$0xff]  }
  0x42   :  { %1998 = vmatprep.subr.bf16.mxu1 %v2147_v25  ;;  %v2188_v25 = vld [vmem:[%s2727_s1 + $0x310] sm:$0xff]  }
  0x43   :  { %1362 = vmatmul.mubr.bf16.vlgmr.msra.gmra.mrb[8].mxu0 %v1683_v20  ;;  %v2186_v20 = vld [vmem:[%s2727_s1 + $0x350] sm:$0xff]  }
  0x44   :  { %1411 = vmatmul.mubr.bf16.vlgmr.msra.gmra.mrb[8].mxu1 %v1685_v22  ;;  %1971 = vmatpush3.bf16.msra.mxu0 %v2148_v26  ;;  %v36_v22 = vld [vmem:[%s2728_s0 + $0xa8] sm:$0xff] }
  0x45   :  { %1999 = vmatpush3.bf16.msra.mxu1 %v2149_v27  ;;  %1972 = vmatprep.subr.bf16.mxu0 %v2150_v28  ;;  %v1706_v24 = vcombine.high %v36_v22, %v44_v23  ;;  %v1705_v26 = vcombine.low %v36_v22, %v44_v23  ;;  %v2189_v27 = vld [vmem:[%s2727_s1 + $0x390] sm:$0xff]   ;;  %v2190_v28 = vld [vmem:[%s2727_s1 + $0x358] sm:$0xff]  }
  0x46   :  { %2000 = vmatprep.subr.bf16.mxu1 %v2151_v29  ;;  %1369 = vmatprep.mubr.bf16.mxu0 %v1700_v34  ;;  %v2191_v29 = vld [vmem:[%s2727_s1 + $0x3d8] sm:$0xff]   ;;  %v2196_v34 = vld [vmem:[%s2727_s1 + $0x320] sm:$0xff]  }
  0x47   :  { %1418 = vmatprep.mubr.bf16.mxu1 %v1702_v40  ;;  %v2202_v40 = vld [vmem:[%s2727_s1 + $0x370] sm:$0xff]  }
  0x48   :  { %1973 = vmatpush3.bf16.msra.mxu0 %v2152_v30  ;;  %v2192_v30 = vld [vmem:[%s2727_s1 + $0x318] sm:$0xff]  }
  0x49   :  { %2001 = vmatpush3.bf16.msra.mxu1 %v2153_v31  ;;  %1974 = vmatprep.subr.bf16.mxu0 %v2154_v36  ;;  %v2193_v31 = vld [vmem:[%s2727_s1 + $0x398] sm:$0xff]   ;;  %v2198_v36 = vld [vmem:[%s2727_s1 + $0x368] sm:$0xff]  }
  0x4a   :  { %2002 = vmatprep.subr.bf16.mxu1 %v2155_v37  ;;  %v2199_v37 = vld [vmem:[%s2727_s1 + $0x3e8] sm:$0xff]  }
  0x4b   :  { %1370 = vmatmul.mubr.bf16.gmra.mrb[12].mxu0 %v1699_v35  ;;  %v2197_v35 = vld [vmem:[%s2727_s1 + $0x3a0] sm:$0xff]  }
  0x4c   :  { %1975 = vmatpush3.bf16.msra.mxu0 %v2156_v41  ;;  %1419 = vmatmul.mubr.bf16.gmra.mrb[12].mxu1 %v1701_v42  ;;  %v2203_v41 = vld [vmem:[%s2727_s1 + $0x3f0] sm:$0xff]  }
  0x4d   :  { %2003 = vmatpush3.bf16.msra.mxu1 %v2157_v43  ;;  %1976 = vmatprep.subr.bf16.mxu0 %v2158_v44  ;;  %v2204_v42 = vld [vmem:[%s2727_s1 + $0x330] sm:$0xff]   ;;  %v2206_v44 = vld [vmem:[%s2727_s1 + $0x378] sm:$0xff]  }
  0x4e   :  { %2004 = vmatprep.subr.bf16.mxu1 %v2159_v45  ;;  %1459 = vmatprep.mubr.bf16.mxu0 %v1688_v3  ;;  %v2205_v43 = vld [vmem:[%s2727_s1 + $0x3b0] sm:$0xff]   ;;  %v2207_v45 = vld [vmem:[%s2727_s1 + $0x3f8] sm:$0xff]  }
  0x4f   :  { %1508 = vmatprep.mubr.bf16.mxu1 %v1690_v7 }
  0x50   :  { %1977 = vmatpush3.bf16.msra.mxu0 %v2160_v46  ;;  %v2208_v46 = vld [vmem:[%s2727_s1 + $0x338] sm:$0xff]  }
  0x51   :  { %2005 = vmatpush3.bf16.msra.mxu1 %v2161_v47  ;;  %1978 = vmatprep.subr.bf16.mxu0 %v2162_v48  ;;  %v2209_v47 = vld [vmem:[%s2727_s1 + $0x3b8] sm:$0xff]   ;;  %v21_v48 = vld [vmem:[%s2728_s0 + $0x30] sm:$0xff] }
  0x52   :  { %2006 = vmatprep.subr.bf16.mxu1 %v2163_v49  ;;  %v29_v49 = vld [vmem:[%s2728_s0 + $0x70] sm:$0xff] }
  0x54   :  { %1979 = vmatpush3.bf16.msra.mxu0 %v2164_v50  ;;  %v22_v50 = vld [vmem:[%s2728_s0 + $0x38] sm:$0xff] }
  0x55   :  { %2007 = vmatpush3.bf16.msra.mxu1 %v2165_v51  ;;  %1980 = vmatprep.subr.bf16.mxu0 %v2166_v52  ;;  %v1691_v51 = vcombine.low %v21_v48, %v29_v49  ;;  %v1692_v52 = vcombine.high %v21_v48, %v29_v49 }
  0x56   :  { %2008 = vmatprep.subr.bf16.mxu1 %v2167_v53  ;;  %v30_v53 = vld [vmem:[%s2728_s0 + $0x78] sm:$0xff] }
  0x58   :  { %1981 = vmatpush3.bf16.msra.mxu0 %v2168_v54  ;;  %v37_v54 = vld [vmem:[%s2728_s0 + $0xb0] sm:$0xff] }
  0x59   :  { %2009 = vmatpush3.bf16.msra.mxu1 %v2169_v55  ;;  %1982 = vmatprep.subr.bf16.mxu0 %v2170_v56  ;;  %v45_v55 = vld [vmem:[%s2728_s0 + $0xf0] sm:$0xff]  ;;  %v1693_v56 = vcombine.low %v22_v50, %v30_v53 }
  0x5a   :  { %2010 = vmatprep.subr.bf16.mxu1 %v2171_v57  ;;  %v1694_v57 = vcombine.high %v22_v50, %v30_v53 }
  0x5c   :  { %1983 = vmatpush3.bf16.msra.mxu0 %v2172_v58  ;;  %v1708_v58 = vcombine.high %v37_v54, %v45_v55 }
  0x5d   :  { %2011 = vmatpush3.bf16.msra.mxu1 %v2173_v59  ;;  %1984 = vmatprep.subr.bf16.mxu0 %v2174_v60  ;;  %v38_v59 = vld [vmem:[%s2728_s0 + $0xb8] sm:$0xff] }
  0x5e   :  { %2012 = vmatprep.subr.bf16.mxu1 %v2175_v61  ;;  %v46_v60 = vld [vmem:[%s2728_s0 + $0xf8] sm:$0xff] }
  0x5f   :  { %v1710_v61 = vcombine.high %v38_v59, %v46_v60 }
  0x60   :  { %1985 = vmatpush3.bf16.msra.mxu0 %v2176_v62  ;;  %v1707_v62 = vcombine.low %v37_v54, %v45_v55 }
  0x61   :  { %2013 = vmatpush3.bf16.msra.mxu1 %v2177_v63  ;;  %2026 = vmatprep.subr.bf16.mxu0 %v2178_v8  ;;  %v1709_v63 = vcombine.low %v38_v59, %v46_v60 }
  0x62   :  { %2054 = vmatprep.subr.bf16.mxu1 %v2179_v9 }
  0x63   :  { %1460 = vmatmul.mubr.bf16.vlgmr.msra.gmra.mrb[16].mxu0 %v1687_v2 }
  0x64   :  { %1509 = vmatmul.mubr.bf16.vlgmr.msra.gmra.mrb[16].mxu1 %v1689_v6  ;;  %2027 = vmatpush3.bf16.msra.mxu0 %v2180_v10 }
  0x65   :  { %2055 = vmatpush3.bf16.msra.mxu1 %v2181_v11  ;;  %2028 = vmatprep.subr.bf16.mxu0 %v2182_v12 }
  0x66   :  { %2056 = vmatprep.subr.bf16.mxu1 %v2183_v13  ;;  %1467 = vmatprep.mubr.bf16.mxu0 %v1704_v18 }
  0x67   :  { %1516 = vmatprep.mubr.bf16.mxu1 %v1706_v24 }
  0x68   :  { %2029 = vmatpush3.bf16.msra.mxu0 %v2184_v14 }
  0x69   :  { %2057 = vmatpush3.bf16.msra.mxu1 %v2185_v15  ;;  %2030 = vmatprep.subr.bf16.mxu0 %v2186_v20 }
  0x6a   :  { %2058 = vmatprep.subr.bf16.mxu1 %v2187_v21 }
  0x6b   :  { %1468 = vmatmul.mubr.bf16.gmra.mrb[20].mxu0 %v1703_v19 }
  0x6c   :  { %2031 = vmatpush3.bf16.msra.mxu0 %v2188_v25  ;;  %1517 = vmatmul.mubr.bf16.gmra.mrb[20].mxu1 %v1705_v26 }
  0x6d   :  { %2059 = vmatpush3.bf16.msra.mxu1 %v2189_v27  ;;  %2032 = vmatprep.subr.bf16.mxu0 %v2190_v28 }
  0x6e   :  { %2060 = vmatprep.subr.bf16.mxu1 %v2191_v29  ;;  %1557 = vmatprep.mubr.bf16.mxu0 %v1692_v52 }
  0x6f   :  { %1606 = vmatprep.mubr.bf16.mxu1 %v1694_v57 }
  0x70   :  { %2033 = vmatpush3.bf16.msra.mxu0 %v2192_v30 }
  0x71   :  { %2061 = vmatpush3.bf16.msra.mxu1 %v2193_v31  ;;  %2034 = vmatprep.subr.bf16.mxu0 %v2194_v32 }
  0x72   :  { %2062 = vmatprep.subr.bf16.mxu1 %v2195_v33 }
  0x74   :  { %2035 = vmatpush3.bf16.msra.mxu0 %v2196_v34 }
  0x75   :  { %2063 = vmatpush3.bf16.msra.mxu1 %v2197_v35  ;;  %2036 = vmatprep.subr.bf16.mxu0 %v2198_v36 }
  0x76   :  { %2064 = vmatprep.subr.bf16.mxu1 %v2199_v37 }
  0x78   :  { %2037 = vmatpush3.bf16.msra.mxu0 %v2200_v38 }
  0x79   :  { %2065 = vmatpush3.bf16.msra.mxu1 %v2201_v39  ;;  %2038 = vmatprep.subr.bf16.mxu0 %v2202_v40 }
  0x7a   :  { %2066 = vmatprep.subr.bf16.mxu1 %v2203_v41 }
  0x7c   :  { %2039 = vmatpush3.bf16.msra.mxu0 %v2204_v42 }
  0x7d   :  { %2067 = vmatpush3.bf16.msra.mxu1 %v2205_v43  ;;  %2040 = vmatprep.subr.bf16.mxu0 %v2206_v44 }
  0x7e   :  { %2068 = vmatprep.subr.bf16.mxu1 %v2207_v45 }
  0x80   :  { %2041 = vmatpush3.bf16.msra.mxu0 %v2208_v46 }
  0x81   :  { %2069 = vmatpush3.bf16.msra.mxu1 %v2209_v47 }
  0x83   :  { %1558 = vmatmul.mubr.bf16.vlgmr.msra.gmra.mrb[24].mxu0 %v1691_v51 }
  0x84   :  { %1607 = vmatmul.mubr.bf16.vlgmr.msra.gmra.mrb[24].mxu1 %v1693_v56  ;;  %1565 = vmatprep.mubr.bf16.mxu0 %v1708_v58 }
  0x85   :  { %1614 = vmatprep.mubr.bf16.mxu1 %v1710_v61 }
  0x8b   :  { %1566 = vmatmul.mubr.bf16.gmra.mrb[28].mxu0 %v1707_v62 }
  0x8c   :  { %1615 = vmatmul.mubr.bf16.gmra.mrb[28].mxu1 %v1709_v63 }
  0xf6   :  { %v1874_v0 = vpop.f32.mrb[0].mxu0 }
  0xf7   :  { %v1902_v1 = vpop.f32.mrb[0].mxu1  ;;  %v1875_v2 = vpop.f32.mrb[1].mxu0 }
  0xf8   :  { %v1876_v3 = vadd.f32 %v1875_v2, %v1874_v0  ;;  %v1903_v4 = vpop.f32.mrb[1].mxu1  ;;  %v1877_v5 = vpop.f32.mrb[2].mxu0 }
  0xf9   :  { %v1904_v6 = vadd.f32 %v1903_v4, %v1902_v1  ;;  %v1905_v7 = vpop.f32.mrb[2].mxu1  ;;  %v1878_v8 = vpop.f32.mrb[3].mxu0 }
  0xfa   :  { %v1879_v9 = vadd.f32 %v1878_v8, %v1877_v5  ;;  %v1906_v10 = vpop.f32.mrb[3].mxu1 }
  0xfb   :  { %v1315_v11 = vadd.f32 %v1904_v6, %v1876_v3  ;;  %v1907_v12 = vadd.f32 %v1906_v10, %v1905_v7 }
  0xfd   :  { %v1318_v13 = vadd.f32 %v1907_v12, %v1879_v9 }
  0xfe   :  { %v1880_v14 = vpop.f32.mrb[4].mxu0 }
  0xff   :  { %v1908_v15 = vpop.f32.mrb[4].mxu1  ;;  %v1881_v16 = vpop.f32.mrb[5].mxu0 }
 0x100   :  { %v1882_v17 = vadd.f32 %v1881_v16, %v1880_v14  ;;  %v1909_v18 = vpop.f32.mrb[5].mxu1  ;;  %v1883_v19 = vpop.f32.mrb[6].mxu0 }
 0x101   :  { %v1910_v20 = vadd.f32 %v1909_v18, %v1908_v15  ;;  %v1911_v21 = vpop.f32.mrb[6].mxu1  ;;  %v1884_v22 = vpop.f32.mrb[7].mxu0 }
 0x102   :  { %v1885_v23 = vadd.f32 %v1884_v22, %v1883_v19  ;;  %v1912_v24 = vpop.f32.mrb[7].mxu1 }
 0x103   :  { %v1323_v25 = vadd.f32 %v1910_v20, %v1882_v17  ;;  %v1913_v26 = vadd.f32 %v1912_v24, %v1911_v21 }
 0x105   :  { %v1326_v27 = vadd.f32 %v1913_v26, %v1885_v23 }
 0x116   :  { %v1930_v28 = vpop.f32.mrb[8].mxu0 }
 0x117   :  { %v1958_v29 = vpop.f32.mrb[8].mxu1  ;;  %v1931_v30 = vpop.f32.mrb[9].mxu0 }
 0x118   :  { %v1959_v31 = vpop.f32.mrb[9].mxu1  ;;  %v1932_v32 = vadd.f32 %v1931_v30, %v1930_v28  ;;  %v1933_v34 = vpop.f32.mrb[10].mxu0 }
 0x119   :  { %v1960_v33 = vadd.f32 %v1959_v31, %v1958_v29  ;;  %v1961_v35 = vpop.f32.mrb[10].mxu1  ;;  %v1934_v36 = vpop.f32.mrb[11].mxu0 }
 0x11a   :  { %v1962_v37 = vpop.f32.mrb[11].mxu1  ;;  %v1364_v38 = vadd.f32 %v1932_v32, %v1315_v11  ;;  %v1935_v39 = vadd.f32 %v1934_v36, %v1933_v34 }
 0x11b   :  { %v1963_v40 = vadd.f32 %v1962_v37, %v1961_v35 }
 0x11c   :  { %v1413_v41 = vadd.f32 %v1960_v33, %v1364_v38  ;;  %v1367_v42 = vadd.f32 %v1935_v39, %v1318_v13 }
 0x11e   :  { %v1416_v43 = vadd.f32 %v1963_v40, %v1367_v42  ;;  %v1936_v44 = vpop.f32.mrb[12].mxu0 }
 0x11f   :  { %v1937_v45 = vpop.f32.mrb[13].mxu0  ;;  %v1964_v50 = vpop.f32.mrb[12].mxu1 }
 0x120   :  { %v1938_v46 = vadd.f32 %v1937_v45, %v1936_v44  ;;  %v1939_v47 = vpop.f32.mrb[14].mxu0  ;;  %v1965_v52 = vpop.f32.mrb[13].mxu1 }
 0x121   :  { %v1940_v48 = vpop.f32.mrb[15].mxu0  ;;  %v1966_v54 = vadd.f32 %v1965_v52, %v1964_v50  ;;  %v1967_v55 = vpop.f32.mrb[14].mxu1 }
 0x122   :  { %v1372_v49 = vadd.f32 %v1938_v46, %v1323_v25  ;;  %v1941_v51 = vadd.f32 %v1940_v48, %v1939_v47  ;;  %v1968_v56 = vpop.f32.mrb[15].mxu1 }
 0x123   :  { %v1969_v58 = vadd.f32 %v1968_v56, %v1967_v55 }
 0x124   :  { %v1375_v53 = vadd.f32 %v1941_v51, %v1326_v27  ;;  %v1421_v57 = vadd.f32 %v1966_v54, %v1372_v49 }
 0x126   :  { %v1424_v59 = vadd.f32 %v1969_v58, %v1375_v53 }
 0x136   :  { %v1986_v60 = vpop.f32.mrb[16].mxu0 }
 0x137   :  { %v2014_v61 = vpop.f32.mrb[16].mxu1  ;;  %v1987_v62 = vpop.f32.mrb[17].mxu0 }
 0x138   :  { %v1988_v63 = vadd.f32 %v1987_v62, %v1986_v60  ;;  %v2015_v0 = vpop.f32.mrb[17].mxu1  ;;  %v1989_v1 = vpop.f32.mrb[18].mxu0 }
 0x139   :  { %v2016_v2 = vadd.f32 %v2015_v0, %v2014_v61  ;;  %v2017_v3 = vpop.f32.mrb[18].mxu1  ;;  %v1990_v4 = vpop.f32.mrb[19].mxu0 }
 0x13a   :  { %v1462_v5 = vadd.f32 %v1988_v63, %v1413_v41  ;;  %v1991_v6 = vadd.f32 %v1990_v4, %v1989_v1  ;;  %v2018_v7 = vpop.f32.mrb[19].mxu1 }
 0x13b   :  { %v2019_v8 = vadd.f32 %v2018_v7, %v2017_v3 }
 0x13c   :  { %v1511_v9 = vadd.f32 %v2016_v2, %v1462_v5  ;;  %v1465_v10 = vadd.f32 %v1991_v6, %v1416_v43 }
 0x13e   :  { %v1514_v11 = vadd.f32 %v2019_v8, %v1465_v10  ;;  %v1992_v12 = vpop.f32.mrb[20].mxu0 }
 0x13f   :  { %v1993_v13 = vpop.f32.mrb[21].mxu0  ;;  %v2020_v16 = vpop.f32.mrb[20].mxu1 }
 0x140   :  { %v1994_v14 = vadd.f32 %v1993_v13, %v1992_v12  ;;  %v1995_v15 = vpop.f32.mrb[22].mxu0  ;;  %v2021_v20 = vpop.f32.mrb[21].mxu1 }
 0x141   :  { %v1996_v17 = vpop.f32.mrb[23].mxu0  ;;  %v2022_v21 = vadd.f32 %v2021_v20, %v2020_v16  ;;  %v2023_v22 = vpop.f32.mrb[22].mxu1 }
 0x142   :  { %v1470_v18 = vadd.f32 %v1994_v14, %v1421_v57  ;;  %v1997_v19 = vadd.f32 %v1996_v17, %v1995_v15  ;;  %v2024_v24 = vpop.f32.mrb[23].mxu1 }
 0x143   :  { %v2025_v26 = vadd.f32 %v2024_v24, %v2023_v22 }
 0x144   :  { %v1473_v23 = vadd.f32 %v1997_v19, %v1424_v59  ;;  %v1519_v25 = vadd.f32 %v2022_v21, %v1470_v18 }
 0x146   :  { %v1522_v27 = vadd.f32 %v2025_v26, %v1473_v23 }
 0x156   :  { %v2042_v28 = vpop.f32.mrb[24].mxu0 }
 0x157   :  { %v2070_v29 = vpop.f32.mrb[24].mxu1  ;;  %v2043_v30 = vpop.f32.mrb[25].mxu0 }
 0x158   :  { %v2044_v31 = vadd.f32 %v2043_v30, %v2042_v28  ;;  %v2071_v32 = vpop.f32.mrb[25].mxu1  ;;  %v2045_v33 = vpop.f32.mrb[26].mxu0 }
 0x159   :  { %v2072_v34 = vadd.f32 %v2071_v32, %v2070_v29  ;;  %v2073_v35 = vpop.f32.mrb[26].mxu1  ;;  %v2046_v36 = vpop.f32.mrb[27].mxu0 }
 0x15a   :  { %v1560_v37 = vadd.f32 %v2044_v31, %v1511_v9  ;;  %v2047_v38 = vadd.f32 %v2046_v36, %v2045_v33  ;;  %v2074_v39 = vpop.f32.mrb[27].mxu1 }
 0x15b   :  { %v2075_v40 = vadd.f32 %v2074_v39, %v2073_v35 }
 0x15c   :  { %v1609_v41 = vadd.f32 %v2072_v34, %v1560_v37  ;;  %v1563_v42 = vadd.f32 %v2047_v38, %v1514_v11 }
 0x15e   :  { %v1612_v43 = vadd.f32 %v2075_v40, %v1563_v42  ;;  %v2048_v44 = vpop.f32.mrb[28].mxu0  ;;  %v1653_v45 = vmul.f32 %v1609_v41, %v1609_v41 }
 0x15f   :  { %v2076_v46 = vpop.f32.mrb[28].mxu1  ;;  %v2049_v47 = vpop.f32.mrb[29].mxu0 }
 0x160   :  { %v1850_v48 = vpack.c.bf16 %v1612_v43, %v1609_v41  ;;  %v1643_v49 = vadd.f32 %v1612_v43, %v1609_v41  ;;  %v1654_v50 = vmul.f32 %v1612_v43, %v1612_v43  ;;  %v2050_v51 = vadd.f32 %v2049_v47, %v2048_v44  ;;  %v2077_v52 = vpop.f32.mrb[29].mxu1  ;;  %v2051_v53 = vpop.f32.mrb[30].mxu0 }
 0x161   :  { %v2078_v54 = vadd.f32 %v2077_v52, %v2076_v46  ;;  %v2079_v55 = vpop.f32.mrb[30].mxu1  ;;  %v2052_v56 = vpop.f32.mrb[31].mxu0 }
 0x162   :  { %1851 = vst [vmem:[%s2729_s2] sm:$0xff] %v1850_v48   ;;  %v1657_v57 = vadd.f32 %v1654_v50, %v1653_v45  ;;  %v1568_v58 = vadd.f32 %v2050_v51, %v1519_v25  ;;  %v2053_v59 = vadd.f32 %v2052_v56, %v2051_v53  ;;  %v2080_v60 = vpop.f32.mrb[31].mxu1 }
 0x163   :  { %v2081_v61 = vadd.f32 %v2080_v60, %v2079_v55 }
 0x164   :  { %v1617_v62 = vadd.f32 %v2078_v54, %v1568_v58  ;;  %v1571_v63 = vadd.f32 %v2053_v59, %v1522_v27 }
 0x166   :  { %v1644_v0 = vadd.f32 %v1643_v49, %v1617_v62  ;;  %v1655_v1 = vmul.f32 %v1617_v62, %v1617_v62  ;;  %v1620_v2 = vadd.f32 %v2081_v61, %v1571_v63 }
 0x168   :  { %v1658_v3 = vadd.f32 %v1657_v57, %v1655_v1  ;;  %v1855_v4 = vpack.c.bf16 %v1620_v2, %v1617_v62  ;;  %v1645_v5 = vadd.f32 %v1644_v0, %v1620_v2  ;;  %v1656_v6 = vmul.f32 %v1620_v2, %v1620_v2 }
 0x16a   :  { %1857 = vst [vmem:[%s2729_s2 + $0x8] sm:$0xff] %v1855_v4   ;;  %v1646_v7 = vrot.slane %v1645_v5, 4  ;;  %v1659_v8 = vadd.f32 %v1658_v3, %v1656_v6 }
 0x16c   :  { %v1647_v9 = vadd.f32 %v1646_v7, %v1645_v5  ;;  %v1660_v10 = vrot.slane %v1659_v8, 4 }
 0x16e   :  { %v1648_v11 = vrot.slane %v1647_v9, 2  ;;  %v1661_v12 = vadd.f32 %v1660_v10, %v1659_v8 }
 0x170   :  { %v1649_v13 = vadd.f32 %v1648_v11, %v1647_v9  ;;  %v1662_v14 = vrot.slane %v1661_v12, 2 }
 0x172   :  { %v1650_v15 = vrot.slane %v1649_v13, 1  ;;  %v1663_v16 = vadd.f32 %v1662_v14, %v1661_v12 }
 0x174   :  { %v1651_v17 = vadd.f32 %v1650_v15, %v1649_v13  ;;  %v1664_v18 = vrot.slane %v1663_v16, 1 }
 0x176   :  { %1652 = vst [vmem:[%s2730_s3] sm:$0xff] %v1651_v17  ;;  %v1665_v19 = vadd.f32 %v1664_v18, %v1663_v16 }
 0x178   :  { %1666 = vst [vmem:[%s2731_s4] sm:$0xff] %v1665_v19 }

// kernel: encoder_forward.26
= control target key start
LH: loop header
LB: loop body
LE: loop exit
PB: predicated region body
PF: predicated region fallthrough
CT: control target
= control target key end

     0   :  { %s140_s0 = inlined_call_operand.vmem [shape: bf16[32,128], index: 0, kind: input, shape index: {}]   ;;  %s141_s1 = inlined_call_operand.vmem [shape: f32[1,128], index: 1, kind: input, shape index: {}]   ;;  %s142_s2 = inlined_call_operand.vmem [shape: f32[1,128], index: 2, kind: input, shape index: {}]   ;;  %s143_s3 = inlined_call_operand.vmem [shape: bf16[32,128], index: 3, kind: output, shape index: {}]  }
   0x1   :  { %v83_v0 = vld [vmem:[%s140_s0] sm:$0xff]   ;;  %v100_v4 = vld [vmem:[%s140_s0 + $0x8] sm:$0xff]  }
   0x2   :  { %v72_v1 = vld [vmem:[%s141_s1] ss:$0 sm:$0xff]  ;;  %v84_v2 = vunpack.c.l.bf16 %v83_v0  ;;  %v85_v3 = vunpack.c.h.bf16 %v83_v0  ;;  %v88_v6 = vunpack.c.l.bf16 %v100_v4  ;;  %v89_v7 = vunpack.c.h.bf16 %v100_v4 }
   0x3   :  { %v73_v5 = vld [vmem:[%s142_s2] ss:$0 sm:$0xff] }
   0x4   :  { %v29_v8 = vmul.f32 %v84_v2, %v72_v1  ;;  %v30_v9 = vmul.f32 %v85_v3, %v72_v1  ;;  %v31_v10 = vmul.f32 %v88_v6, %v72_v1  ;;  %v32_v11 = vmul.f32 %v89_v7, %v72_v1 }
   0x6   :  { %v40_v12 = vadd.f32 %v73_v5, %v29_v8  ;;  %v41_v13 = vadd.f32 %v73_v5, %v30_v9  ;;  %v42_v14 = vadd.f32 %v73_v5, %v31_v10  ;;  %v43_v15 = vadd.f32 %v73_v5, %v32_v11 }
   0x8   :  { %v44_v16 = vmax.f32 %v40_v12, 0.0  ;;  %v45_v17 = vmax.f32 %v41_v13, 0.0  ;;  %v46_v18 = vmax.f32 %v42_v14, 0.0  ;;  %v47_v19 = vmax.f32 %v43_v15, 0.0 }
   0xa   :  { %v93_v20 = vpack.c.bf16 %v45_v17, %v44_v16  ;;  %v98_v21 = vpack.c.bf16 %v47_v19, %v46_v18 }
   0xc   :  { %94 = vst [vmem:[%s143_s3] sm:$0xff] %v93_v20   ;;  %101 = vst [vmem:[%s143_s3 + $0x8] sm:$0xff] %v98_v21  }

// kernel: encoder_forward.27
= control target key start
LH: loop header
LB: loop body
LE: loop exit
PB: predicated region body
PF: predicated region fallthrough
CT: control target
= control target key end

     0   :  { %s336_s1 = inlined_call_operand.vmem [shape: bf16[128,128], index: 1, kind: input, shape index: {}]   ;;  %s337_s0 = inlined_call_operand.vmem [shape: bf16[32,128], index: 0, kind: input, shape index: {}]   ;;  %s338_s2 = inlined_call_operand.vmem [shape: bf16[32,128], index: 2, kind: output, shape index: {0}]   ;;  %s339_s3 = inlined_call_operand.vmem [shape: f32[8,128], index: 3, kind: output, shape index: {1}]   ;;  %s340_s4 = inlined_call_operand.vmem [shape: f32[8,128], index: 4, kind: output, shape index: {2}]  }
   0x1   :  { %v259_v0 = vld [vmem:[%s336_s1] sm:$0xff]   ;;  %v260_v1 = vld [vmem:[%s336_s1 + $0x8] sm:$0xff]   ;;  %v261_v2 = vld [vmem:[%s336_s1 + $0x10] sm:$0xff]  }
   0x2   :  { %239 = vmatprep.subr.bf16.mxu0 %v259_v0  ;;  %v262_v3 = vld [vmem:[%s336_s1 + $0x18] sm:$0xff]   ;;  %v267_v4 = vld [vmem:[%s337_s0] sm:$0xff]   ;;  %v264_v6 = vld [vmem:[%s336_s1 + $0x28] sm:$0xff]  }
   0x3   :  { %240 = vmatpush3.bf16.msra.mxu0 %v259_v0  ;;  %255 = vmatprep.mubr.bf16.mxu0 %v267_v4  ;;  %v263_v5 = vld [vmem:[%s336_s1 + $0x20] sm:$0xff]   ;;  %v265_v7 = vld [vmem:[%s336_s1 + $0x30] sm:$0xff]   ;;  %v266_v8 = vld [vmem:[%s336_s1 + $0x38] sm:$0xff]  }
   0x4   :  { %241 = vmatprep.subr.bf16.mxu0 %v260_v1  ;;  %v268_v9 = vld [vmem:[%s337_s0 + $0x8] sm:$0xff]  }
   0x7   :  { %242 = vmatpush3.bf16.msra.mxu0 %v260_v1 }
   0x8   :  { %243 = vmatprep.subr.bf16.mxu0 %v261_v2 }
   0xb   :  { %244 = vmatpush3.bf16.msra.mxu0 %v261_v2 }
   0xc   :  { %245 = vmatprep.subr.bf16.mxu0 %v262_v3 }
   0xf   :  { %246 = vmatpush3.bf16.msra.mxu0 %v262_v3 }
  0x10   :  { %247 = vmatprep.subr.bf16.mxu0 %v263_v5 }
  0x13   :  { %248 = vmatpush3.bf16.msra.mxu0 %v263_v5 }
  0x14   :  { %249 = vmatprep.subr.bf16.mxu0 %v264_v6 }
  0x17   :  { %250 = vmatpush3.bf16.msra.mxu0 %v264_v6 }
  0x18   :  { %251 = vmatprep.subr.bf16.mxu0 %v265_v7 }
  0x1b   :  { %252 = vmatpush3.bf16.msra.mxu0 %v265_v7 }
  0x1c   :  { %253 = vmatprep.subr.bf16.mxu0 %v266_v8 }
  0x1f   :  { %254 = vmatpush3.bf16.msra.mxu0 %v266_v8 }
  0x22   :  { %256 = vmatmul.mubr.bf16.vlgmr.msra.gmra.mrb[0].mxu0 %v268_v9 }
  0xf5   :  { %v257_v10 = vpop.f32.mrb[0].mxu0 }
  0xf6   :  { %v129_v11 = vpop.f32.mrb[1].mxu0  ;;  %v176_v19 = vmul.f32 %v257_v10, %v257_v10 }
  0xf7   :  { %v258_v12 = vpop.f32.mrb[2].mxu0  ;;  %v174_v15 = vmul.f32 %v129_v11, %v129_v11 }
  0xf8   :  { %v226_v13 = vpack.c.bf16 %v258_v12, %v257_v10  ;;  %v132_v14 = vpop.f32.mrb[3].mxu0  ;;  %v177_v22 = vmul.f32 %v258_v12, %v258_v12 }
  0xf9   :  { %v221_v16 = vpack.c.bf16 %v132_v14, %v129_v11  ;;  %v164_v17 = vadd.f32 %v132_v14, %v129_v11  ;;  %v175_v18 = vmul.f32 %v132_v14, %v132_v14 }
  0xfa   :  { %228 = vst [vmem:[%s338_s2 + $0x8] sm:$0xff] %v226_v13  }
  0xfb   :  { %222 = vst [vmem:[%s338_s2] sm:$0xff] %v221_v16   ;;  %v165_v20 = vadd.f32 %v257_v10, %v164_v17  ;;  %v178_v21 = vadd.f32 %v175_v18, %v174_v15 }
  0xfd   :  { %v166_v23 = vadd.f32 %v258_v12, %v165_v20  ;;  %v179_v24 = vadd.f32 %v178_v21, %v176_v19 }
  0xff   :  { %v167_v25 = vrot.slane %v166_v23, 4  ;;  %v180_v26 = vadd.f32 %v179_v24, %v177_v22 }
 0x101   :  { %v168_v27 = vadd.f32 %v167_v25, %v166_v23  ;;  %v181_v28 = vrot.slane %v180_v26, 4 }
 0x103   :  { %v169_v29 = vrot.slane %v168_v27, 2  ;;  %v182_v30 = vadd.f32 %v181_v28, %v180_v26 }
 0x105   :  { %v170_v31 = vadd.f32 %v169_v29, %v168_v27  ;;  %v183_v32 = vrot.slane %v182_v30, 2 }
 0x107   :  { %v171_v33 = vrot.slane %v170_v31, 1  ;;  %v184_v34 = vadd.f32 %v183_v32, %v182_v30 }
 0x109   :  { %v172_v35 = vadd.f32 %v171_v33, %v170_v31  ;;  %v185_v36 = vrot.slane %v184_v34, 1 }
 0x10b   :  { %173 = vst [vmem:[%s339_s3] sm:$0xff] %v172_v35  ;;  %v186_v37 = vadd.f32 %v185_v36, %v184_v34 }
 0x10d   :  { %187 = vst [vmem:[%s340_s4] sm:$0xff] %v186_v37 }

// kernel: encoder_forward.28
= control target key start
LH: loop header
LB: loop body
LE: loop exit
PB: predicated region body
PF: predicated region fallthrough
CT: control target
= control target key end

     0   :  { %s175_s0 = inlined_call_operand.vmem [shape: bf16[32,128], index: 0, kind: input, shape index: {}]   ;;  %s176_s1 = inlined_call_operand.vmem [shape: f32[1,128], index: 1, kind: input, shape index: {}]   ;;  %s177_s2 = inlined_call_operand.vmem [shape: f32[1,128], index: 2, kind: input, shape index: {}]   ;;  %s178_s3 = inlined_call_operand.vmem [shape: bf16[32,128], index: 3, kind: input, shape index: {}]   ;;  %s179_s4 = inlined_call_operand.vmem [shape: bf16[32,128], index: 4, kind: output, shape index: {}]  }
   0x1   :  { %v98_v0 = vld [vmem:[%s175_s0] sm:$0xff]   ;;  %v123_v5 = vld [vmem:[%s175_s0 + $0x8] sm:$0xff]  }
   0x2   :  { %v87_v1 = vld [vmem:[%s176_s1] ss:$0 sm:$0xff]  ;;  %v99_v2 = vunpack.c.l.bf16 %v98_v0  ;;  %v100_v3 = vunpack.c.h.bf16 %v98_v0  ;;  %v124_v6 = vld [vmem:[%s178_s3 + $0x8] sm:$0xff]   ;;  %v103_v8 = vunpack.c.l.bf16 %v123_v5  ;;  %v104_v9 = vunpack.c.h.bf16 %v123_v5 }
   0x3   :  { %v106_v4 = vld [vmem:[%s178_s3] sm:$0xff]   ;;  %v111_v16 = vunpack.c.l.bf16 %v124_v6  ;;  %v112_v17 = vunpack.c.h.bf16 %v124_v6 }
   0x4   :  { %v88_v7 = vld [vmem:[%s177_s2] ss:$0 sm:$0xff]  ;;  %v32_v10 = vmul.f32 %v99_v2, %v87_v1  ;;  %v33_v11 = vmul.f32 %v100_v3, %v87_v1  ;;  %v107_v12 = vunpack.c.l.bf16 %v106_v4  ;;  %v108_v13 = vunpack.c.h.bf16 %v106_v4 }
   0x5   :  { %v34_v14 = vmul.f32 %v103_v8, %v87_v1  ;;  %v35_v15 = vmul.f32 %v104_v9, %v87_v1 }
   0x6   :  { %v43_v18 = vadd.f32 %v88_v7, %v32_v10  ;;  %v44_v19 = vadd.f32 %v88_v7, %v33_v11 }
   0x7   :  { %v45_v20 = vadd.f32 %v88_v7, %v34_v14  ;;  %v46_v21 = vadd.f32 %v88_v7, %v35_v15 }
   0x8   :  { %v55_v22 = vadd.f32 %v107_v12, %v43_v18  ;;  %v56_v23 = vadd.f32 %v108_v13, %v44_v19 }
   0x9   :  { %v57_v24 = vadd.f32 %v111_v16, %v45_v20  ;;  %v58_v25 = vadd.f32 %v112_v17, %v46_v21 }
   0xa   :  { %v59_v26 = vmax.f32 %v55_v22, 0.0  ;;  %v60_v27 = vmax.f32 %v56_v23, 0.0 }
   0xb   :  { %v61_v28 = vmax.f32 %v57_v24, 0.0  ;;  %v62_v29 = vmax.f32 %v58_v25, 0.0 }
   0xc   :  { %v116_v30 = vpack.c.bf16 %v60_v27, %v59_v26 }
   0xd   :  { %v121_v31 = vpack.c.bf16 %v62_v29, %v61_v28 }
   0xe   :  { %117 = vst [vmem:[%s179_s4] sm:$0xff] %v116_v30  }
   0xf   :  { %125 = vst [vmem:[%s179_s4 + $0x8] sm:$0xff] %v121_v31  }

// kernel: encoder_forward.25
= control target key start
LH: loop header
LB: loop body
LE: loop exit
PB: predicated region body
PF: predicated region fallthrough
CT: control target
= control target key end

     0   :  { %s1660_s1 = inlined_call_operand.vmem [shape: bf16[1152,128], index: 1, kind: input, shape index: {}]   ;;  %s1661_s0 = inlined_call_operand.vmem [shape: bf16[32,1152], index: 0, kind: input, shape index: {}]   ;;  %s1662_s2 = inlined_call_operand.vmem [shape: bf16[32,128], index: 2, kind: output, shape index: {0}]   ;;  %s1663_s3 = inlined_call_operand.vmem [shape: f32[8,128], index: 3, kind: output, shape index: {1}]   ;;  %s1664_s4 = inlined_call_operand.vmem [shape: f32[8,128], index: 4, kind: output, shape index: {2}]  }
   0x1   :  { %v1255_v0 = vld [vmem:[%s1660_s1 + $0x40] sm:$0xff]   ;;  %v1259_v4 = vld [vmem:[%s1660_s1 + $0x48] sm:$0xff]   ;;  %v1263_v8 = vld [vmem:[%s1660_s1 + $0x50] sm:$0xff]  }
   0x2   :  { %v1256_v1 = vld [vmem:[%s1660_s1 + $0xc0] sm:$0xff]   ;;  %1113 = vmatprep.subr.bf16.mxu0 %v1255_v0  ;;  %v1260_v5 = vld [vmem:[%s1660_s1 + $0xc8] sm:$0xff]   ;;  %v1264_v9 = vld [vmem:[%s1660_s1 + $0xd0] sm:$0xff]  }
   0x3   :  { %v1257_v2 = vld [vmem:[%s1660_s1] sm:$0xff]   ;;  %1141 = vmatprep.subr.bf16.mxu1 %v1256_v1  ;;  %v1261_v6 = vld [vmem:[%s1660_s1 + $0x8] sm:$0xff]   ;;  %v1265_v10 = vld [vmem:[%s1660_s1 + $0x10] sm:$0xff]  }
   0x4   :  { %v1258_v3 = vld [vmem:[%s1660_s1 + $0x80] sm:$0xff]   ;;  %1114 = vmatpush3.bf16.msra.mxu0 %v1257_v2  ;;  %v1262_v7 = vld [vmem:[%s1660_s1 + $0x88] sm:$0xff]   ;;  %v1266_v11 = vld [vmem:[%s1660_s1 + $0x90] sm:$0xff]  }
   0x5   :  { %1142 = vmatpush3.bf16.msra.mxu1 %v1258_v3  ;;  %1115 = vmatprep.subr.bf16.mxu0 %v1259_v4  ;;  %v1267_v12 = vld [vmem:[%s1660_s1 + $0x58] sm:$0xff]   ;;  %v1271_v16 = vld [vmem:[%s1660_s1 + $0x60] sm:$0xff]   ;;  %v1275_v20 = vld [vmem:[%s1660_s1 + $0x68] sm:$0xff]  }
   0x6   :  { %1143 = vmatprep.subr.bf16.mxu1 %v1260_v5  ;;  %v1268_v13 = vld [vmem:[%s1660_s1 + $0xd8] sm:$0xff]   ;;  %v1272_v17 = vld [vmem:[%s1660_s1 + $0xe0] sm:$0xff]   ;;  %v1276_v21 = vld [vmem:[%s1660_s1 + $0xe8] sm:$0xff]  }
   0x7   :  { %v1269_v14 = vld [vmem:[%s1660_s1 + $0x18] sm:$0xff]   ;;  %v1273_v18 = vld [vmem:[%s1660_s1 + $0x20] sm:$0xff]   ;;  %v1277_v22 = vld [vmem:[%s1660_s1 + $0x28] sm:$0xff]  }
   0x8   :  { %1116 = vmatpush3.bf16.msra.mxu0 %v1261_v6  ;;  %v1270_v15 = vld [vmem:[%s1660_s1 + $0x98] sm:$0xff]   ;;  %v1274_v19 = vld [vmem:[%s1660_s1 + $0xa0] sm:$0xff]   ;;  %v1278_v23 = vld [vmem:[%s1660_s1 + $0xa8] sm:$0xff]  }
   0x9   :  { %1144 = vmatpush3.bf16.msra.mxu1 %v1262_v7  ;;  %1117 = vmatprep.subr.bf16.mxu0 %v1263_v8  ;;  %v1279_v24 = vld [vmem:[%s1660_s1 + $0x70] sm:$0xff]   ;;  %v1283_v28 = vld [vmem:[%s1660_s1 + $0x78] sm:$0xff]   ;;  %v1287_v32 = vld [vmem:[%s1661_s0] ss:$36 sps:$4 sm:$0xff]  }
   0xa   :  { %1145 = vmatprep.subr.bf16.mxu1 %v1264_v9  ;;  %v1280_v25 = vld [vmem:[%s1660_s1 + $0xf0] sm:$0xff]   ;;  %v1284_v29 = vld [vmem:[%s1660_s1 + $0xf8] sm:$0xff]   ;;  %v1289_v33 = vld [vmem:[%s1661_s0 + $0x4] ss:$36 sps:$4 sm:$0xff]  }
   0xb   :  { %v1281_v26 = vld [vmem:[%s1660_s1 + $0x30] sm:$0xff]   ;;  %v1285_v30 = vld [vmem:[%s1660_s1 + $0x38] sm:$0xff]   ;;  %v1290_v34 = vld [vmem:[%s1661_s0 + $0x8] ss:$36 sps:$4 sm:$0xff]   ;;  %735 = vmatprep.mubr.bf16.mxu0 %v1289_v33 }
   0xc   :  { %1118 = vmatpush3.bf16.msra.mxu0 %v1265_v10  ;;  %v1282_v27 = vld [vmem:[%s1660_s1 + $0xb0] sm:$0xff]   ;;  %v1286_v31 = vld [vmem:[%s1660_s1 + $0xb8] sm:$0xff]   ;;  %v1293_v36 = vld [vmem:[%s1660_s1 + $0x140] sm:$0xff]  }
   0xd   :  { %1146 = vmatpush3.bf16.msra.mxu1 %v1266_v11  ;;  %1119 = vmatprep.subr.bf16.mxu0 %v1267_v12  ;;  %v1292_v35 = vld [vmem:[%s1661_s0 + $0xc] ss:$36 sps:$4 sm:$0xff]   ;;  %v1294_v37 = vld [vmem:[%s1660_s1 + $0x100] sm:$0xff]   ;;  %v1305_v48 = vld [vmem:[%s1660_s1 + $0x158] sm:$0xff]  }
   0xe   :  { %1147 = vmatprep.subr.bf16.mxu1 %v1268_v13  ;;  %784 = vmatprep.mubr.bf16.mxu1 %v1292_v35  ;;  %v1295_v38 = vld [vmem:[%s1660_s1 + $0x1c0] sm:$0xff]   ;;  %v1297_v40 = vld [vmem:[%s1660_s1 + $0x148] sm:$0xff]   ;;  %v1301_v44 = vld [vmem:[%s1660_s1 + $0x150] sm:$0xff]  }
   0xf   :  { %v1296_v39 = vld [vmem:[%s1660_s1 + $0x180] sm:$0xff]   ;;  %v1298_v41 = vld [vmem:[%s1660_s1 + $0x108] sm:$0xff]   ;;  %v1302_v45 = vld [vmem:[%s1660_s1 + $0x110] sm:$0xff]  }
  0x10   :  { %1120 = vmatpush3.bf16.msra.mxu0 %v1269_v14  ;;  %v1299_v42 = vld [vmem:[%s1660_s1 + $0x1c8] sm:$0xff]   ;;  %v1303_v46 = vld [vmem:[%s1660_s1 + $0x1d0] sm:$0xff]   ;;  %v1306_v49 = vld [vmem:[%s1660_s1 + $0x118] sm:$0xff]  }
  0x11   :  { %1148 = vmatpush3.bf16.msra.mxu1 %v1270_v15  ;;  %1121 = vmatprep.subr.bf16.mxu0 %v1271_v16  ;;  %v1300_v43 = vld [vmem:[%s1660_s1 + $0x188] sm:$0xff]   ;;  %v1304_v47 = vld [vmem:[%s1660_s1 + $0x190] sm:$0xff]   ;;  %v1307_v50 = vld [vmem:[%s1660_s1 + $0x1d8] sm:$0xff]  }
  0x12   :  { %1149 = vmatprep.subr.bf16.mxu1 %v1272_v17  ;;  %v1308_v51 = vld [vmem:[%s1660_s1 + $0x198] sm:$0xff]   ;;  %v1309_v52 = vld [vmem:[%s1660_s1 + $0x160] sm:$0xff]   ;;  %v1313_v56 = vld [vmem:[%s1660_s1 + $0x168] sm:$0xff]  }
  0x13   :  { %v1310_v53 = vld [vmem:[%s1660_s1 + $0x120] sm:$0xff]   ;;  %v1314_v57 = vld [vmem:[%s1661_s0 + $0x4c] ss:$36 sps:$4 sm:$0xff]   ;;  %v1316_v58 = vld [vmem:[%s1661_s0 + $0x54] ss:$36 sps:$4 sm:$0xff]  }
  0x14   :  { %1122 = vmatpush3.bf16.msra.mxu0 %v1273_v18  ;;  %v1311_v54 = vld [vmem:[%s1660_s1 + $0x1e0] sm:$0xff]   ;;  %v1318_v59 = vld [vmem:[%s1660_s1 + $0x128] sm:$0xff]   ;;  %v1320_v61 = vld [vmem:[%s1661_s0 + $0x50] ss:$36 sps:$4 sm:$0xff]  }
  0x15   :  { %1150 = vmatpush3.bf16.msra.mxu1 %v1274_v19  ;;  %1123 = vmatprep.subr.bf16.mxu0 %v1275_v20  ;;  %v1312_v55 = vld [vmem:[%s1660_s1 + $0x1a0] sm:$0xff]   ;;  %v1319_v60 = vld [vmem:[%s1661_s0 + $0x48] ss:$36 sps:$4 sm:$0xff]   ;;  %v1323_v0 = vld [vmem:[%s1660_s1 + $0x170] sm:$0xff]  }
  0x16   :  { %1151 = vmatprep.subr.bf16.mxu1 %v1276_v21  ;;  %v1321_v62 = vld [vmem:[%s1660_s1 + $0x1e8] sm:$0xff]   ;;  %v1324_v1 = vld [vmem:[%s1660_s1 + $0x130] sm:$0xff]   ;;  %v1327_v4 = vld [vmem:[%s1660_s1 + $0x178] sm:$0xff]  }
  0x17   :  { %v1322_v63 = vld [vmem:[%s1660_s1 + $0x1a8] sm:$0xff]   ;;  %v1325_v2 = vld [vmem:[%s1660_s1 + $0x1f0] sm:$0xff]   ;;  %v1328_v5 = vld [vmem:[%s1660_s1 + $0x138] sm:$0xff]  }
  0x18   :  { %1124 = vmatpush3.bf16.msra.mxu0 %v1277_v22  ;;  %v1326_v3 = vld [vmem:[%s1660_s1 + $0x1b0] sm:$0xff]   ;;  %v1329_v6 = vld [vmem:[%s1660_s1 + $0x1f8] sm:$0xff]   ;;  %v1334_v10 = vld [vmem:[%s1660_s1 + $0x200] sm:$0xff]  }
  0x19   :  { %1152 = vmatpush3.bf16.msra.mxu1 %v1278_v23  ;;  %1125 = vmatprep.subr.bf16.mxu0 %v1279_v24  ;;  %v1330_v7 = vld [vmem:[%s1661_s0 + $0x10] ss:$36 sps:$4 sm:$0xff]   ;;  %v1333_v9 = vld [vmem:[%s1660_s1 + $0x1b8] sm:$0xff]   ;;  %v1338_v13 = vld [vmem:[%s1660_s1 + $0x208] sm:$0xff]  }
  0x1a   :  { %1153 = vmatprep.subr.bf16.mxu1 %v1280_v25  ;;  %v1332_v8 = vld [vmem:[%s1661_s0 + $0x14] ss:$36 sps:$4 sm:$0xff]   ;;  %v1337_v12 = vld [vmem:[%s1661_s0 + $0x1c] ss:$36 sps:$4 sm:$0xff]   ;;  %v1343_v17 = vld [vmem:[%s1661_s0 + $0x64] ss:$36 sps:$4 sm:$0xff]  }
  0x1b   :  { %v1335_v11 = vld [vmem:[%s1661_s0 + $0x18] ss:$36 sps:$4 sm:$0xff]   ;;  %v1342_v16 = vld [vmem:[%s1660_s1 + $0x210] sm:$0xff]   ;;  %v1345_v18 = vld [vmem:[%s1661_s0 + $0x60] ss:$36 sps:$4 sm:$0xff]  }
  0x1c   :  { %1126 = vmatpush3.bf16.msra.mxu0 %v1281_v26  ;;  %v1339_v14 = vld [vmem:[%s1661_s0 + $0x5c] ss:$36 sps:$4 sm:$0xff]   ;;  %v1348_v22 = vld [vmem:[%s1660_s1 + $0x228] sm:$0xff]   ;;  %v1349_v23 = vld [vmem:[%s1660_s1 + $0x230] sm:$0xff]  }
  0x1d   :  { %1154 = vmatpush3.bf16.msra.mxu1 %v1282_v27  ;;  %1127 = vmatprep.subr.bf16.mxu0 %v1283_v28  ;;  %v1341_v15 = vld [vmem:[%s1661_s0 + $0x58] ss:$36 sps:$4 sm:$0xff]   ;;  %v1347_v20 = vld [vmem:[%s1660_s1 + $0x220] sm:$0xff]   ;;  %v1352_v25 = vld [vmem:[%s1661_s0 + $0x68] ss:$36 sps:$4 sm:$0xff]  }
  0x1e   :  { %1155 = vmatprep.subr.bf16.mxu1 %v1284_v29  ;;  %v1346_v19 = vld [vmem:[%s1660_s1 + $0x218] sm:$0xff]   ;;  %v1351_v21 = vld [vmem:[%s1661_s0 + $0x20] ss:$36 sps:$4 sm:$0xff]  }
  0x1f   :  { %v1350_v24 = vld [vmem:[%s1660_s1 + $0x238] sm:$0xff]  }
  0x20   :  { %1128 = vmatpush3.bf16.msra.mxu0 %v1285_v30 }
  0x21   :  { %1156 = vmatpush3.bf16.msra.mxu1 %v1286_v31  ;;  %1169 = vmatprep.subr.bf16.mxu0 %v1293_v36 }
  0x22   :  { %1197 = vmatprep.subr.bf16.mxu1 %v1295_v38 }
  0x23   :  { %736 = vmatmul.mubr.bf16.vlgmr.msra.gmra.mrb[0].mxu0 %v1287_v32 }
  0x24   :  { %785 = vmatmul.mubr.bf16.vlgmr.msra.gmra.mrb[0].mxu1 %v1290_v34  ;;  %1170 = vmatpush3.bf16.msra.mxu0 %v1294_v37 }
  0x25   :  { %1198 = vmatpush3.bf16.msra.mxu1 %v1296_v39  ;;  %1171 = vmatprep.subr.bf16.mxu0 %v1297_v40 }
  0x26   :  { %1199 = vmatprep.subr.bf16.mxu1 %v1299_v42  ;;  %743 = vmatprep.mubr.bf16.mxu0 %v1314_v57 }
  0x27   :  { %792 = vmatprep.mubr.bf16.mxu1 %v1316_v58 }
  0x28   :  { %1172 = vmatpush3.bf16.msra.mxu0 %v1298_v41 }
  0x29   :  { %1200 = vmatpush3.bf16.msra.mxu1 %v1300_v43  ;;  %1173 = vmatprep.subr.bf16.mxu0 %v1301_v44 }
  0x2a   :  { %1201 = vmatprep.subr.bf16.mxu1 %v1303_v46 }
  0x2b   :  { %744 = vmatmul.mubr.bf16.gmra.mrb[4].mxu0 %v1319_v60 }
  0x2c   :  { %1174 = vmatpush3.bf16.msra.mxu0 %v1302_v45  ;;  %793 = vmatmul.mubr.bf16.gmra.mrb[4].mxu1 %v1320_v61 }
  0x2d   :  { %1202 = vmatpush3.bf16.msra.mxu1 %v1304_v47  ;;  %1175 = vmatprep.subr.bf16.mxu0 %v1305_v48 }
  0x2e   :  { %1203 = vmatprep.subr.bf16.mxu1 %v1307_v50  ;;  %833 = vmatprep.mubr.bf16.mxu0 %v1332_v8 }
  0x2f   :  { %882 = vmatprep.mubr.bf16.mxu1 %v1337_v12 }
  0x30   :  { %1176 = vmatpush3.bf16.msra.mxu0 %v1306_v49 }
  0x31   :  { %1204 = vmatpush3.bf16.msra.mxu1 %v1308_v51  ;;  %1177 = vmatprep.subr.bf16.mxu0 %v1309_v52 }
  0x32   :  { %1205 = vmatprep.subr.bf16.mxu1 %v1311_v54 }
  0x34   :  { %1178 = vmatpush3.bf16.msra.mxu0 %v1310_v53 }
  0x35   :  { %1206 = vmatpush3.bf16.msra.mxu1 %v1312_v55  ;;  %1179 = vmatprep.subr.bf16.mxu0 %v1313_v56 }
  0x36   :  { %1207 = vmatprep.subr.bf16.mxu1 %v1321_v62 }
  0x38   :  { %1180 = vmatpush3.bf16.msra.mxu0 %v1318_v59 }
  0x39   :  { %1208 = vmatpush3.bf16.msra.mxu1 %v1322_v63  ;;  %1181 = vmatprep.subr.bf16.mxu0 %v1323_v0 }
  0x3a   :  { %1209 = vmatprep.subr.bf16.mxu1 %v1325_v2 }
  0x3c   :  { %1182 = vmatpush3.bf16.msra.mxu0 %v1324_v1 }
  0x3d   :  { %1210 = vmatpush3.bf16.msra.mxu1 %v1326_v3  ;;  %1183 = vmatprep.subr.bf16.mxu0 %v1327_v4 }
  0x3e   :  { %1211 = vmatprep.subr.bf16.mxu1 %v1329_v6 }
  0x40   :  { %1184 = vmatpush3.bf16.msra.mxu0 %v1328_v5 }
  0x41   :  { %1212 = vmatpush3.bf16.msra.mxu1 %v1333_v9  ;;  %1235 = vmatprep.subr.bf16.mxu0 %v1334_v10 }
  0x43   :  { %834 = vmatmul.mubr.bf16.vlgmr.msra.gmra.mrb[8].mxu0 %v1330_v7 }
  0x44   :  { %1236 = vmatpush3.bf16.msra.mxu0 %v1334_v10  ;;  %883 = vmatmul.mubr.bf16.vlgmr.msra.gmra.mrb[8].mxu1 %v1335_v11 }
  0x45   :  { %1237 = vmatprep.subr.bf16.mxu0 %v1338_v13  ;;  %841 = vmatprep.mubr.bf16.mxu0 %v1339_v14 }
  0x46   :  { %890 = vmatprep.mubr.bf16.mxu1 %v1343_v17 }
  0x48   :  { %1238 = vmatpush3.bf16.msra.mxu0 %v1338_v13 }
  0x49   :  { %1239 = vmatprep.subr.bf16.mxu0 %v1342_v16 }
  0x4b   :  { %842 = vmatmul.mubr.bf16.gmra.mrb[12].mxu0 %v1341_v15 }
  0x4c   :  { %1240 = vmatpush3.bf16.msra.mxu0 %v1342_v16  ;;  %891 = vmatmul.mubr.bf16.gmra.mrb[12].mxu1 %v1345_v18 }
  0x4d   :  { %1241 = vmatprep.subr.bf16.mxu0 %v1346_v19  ;;  %1251 = vmatprep.mubr.bf16.mxu0 %v1351_v21 }
  0x50   :  { %1242 = vmatpush3.bf16.msra.mxu0 %v1346_v19 }
  0x51   :  { %1243 = vmatprep.subr.bf16.mxu0 %v1347_v20 }
  0x54   :  { %1244 = vmatpush3.bf16.msra.mxu0 %v1347_v20 }
  0x55   :  { %1245 = vmatprep.subr.bf16.mxu0 %v1348_v22 }
  0x58   :  { %1246 = vmatpush3.bf16.msra.mxu0 %v1348_v22 }
  0x59   :  { %1247 = vmatprep.subr.bf16.mxu0 %v1349_v23 }
  0x5c   :  { %1248 = vmatpush3.bf16.msra.mxu0 %v1349_v23 }
  0x5d   :  { %1249 = vmatprep.subr.bf16.mxu0 %v1350_v24 }
  0x60   :  { %1250 = vmatpush3.bf16.msra.mxu0 %v1350_v24 }
  0x63   :  { %1252 = vmatmul.mubr.bf16.vlgmr.msra.gmra.mrb[16].mxu0 %v1352_v25 }
  0xf6   :  { %v1129_v26 = vpop.f32.mrb[0].mxu0 }
  0xf7   :  { %v1157_v27 = vpop.f32.mrb[0].mxu1  ;;  %v1130_v28 = vpop.f32.mrb[1].mxu0 }
  0xf8   :  { %v1131_v29 = vadd.f32 %v1130_v28, %v1129_v26  ;;  %v1158_v30 = vpop.f32.mrb[1].mxu1  ;;  %v1132_v31 = vpop.f32.mrb[2].mxu0 }
  0xf9   :  { %v1159_v32 = vadd.f32 %v1158_v30, %v1157_v27  ;;  %v1160_v33 = vpop.f32.mrb[2].mxu1  ;;  %v1133_v34 = vpop.f32.mrb[3].mxu0 }
  0xfa   :  { %v1134_v35 = vadd.f32 %v1133_v34, %v1132_v31  ;;  %v1161_v36 = vpop.f32.mrb[3].mxu1 }
  0xfb   :  { %v787_v37 = vadd.f32 %v1159_v32, %v1131_v29  ;;  %v1162_v38 = vadd.f32 %v1161_v36, %v1160_v33 }
  0xfd   :  { %v790_v39 = vadd.f32 %v1162_v38, %v1134_v35 }
  0xfe   :  { %v1135_v40 = vpop.f32.mrb[4].mxu0 }
  0xff   :  { %v1163_v41 = vpop.f32.mrb[4].mxu1  ;;  %v1136_v42 = vpop.f32.mrb[5].mxu0 }
 0x100   :  { %v1164_v43 = vpop.f32.mrb[5].mxu1  ;;  %v1137_v44 = vadd.f32 %v1136_v42, %v1135_v40  ;;  %v1138_v46 = vpop.f32.mrb[6].mxu0 }
 0x101   :  { %v1165_v45 = vadd.f32 %v1164_v43, %v1163_v41  ;;  %v1166_v47 = vpop.f32.mrb[6].mxu1  ;;  %v1139_v48 = vpop.f32.mrb[7].mxu0 }
 0x102   :  { %v1167_v49 = vpop.f32.mrb[7].mxu1  ;;  %v1140_v51 = vadd.f32 %v1139_v48, %v1138_v46 }
 0x103   :  { %v795_v50 = vadd.f32 %v1165_v45, %v1137_v44  ;;  %v1168_v52 = vadd.f32 %v1167_v49, %v1166_v47 }
 0x105   :  { %v798_v53 = vadd.f32 %v1168_v52, %v1140_v51 }
 0x116   :  { %v1185_v54 = vpop.f32.mrb[8].mxu0 }
 0x117   :  { %v1186_v55 = vpop.f32.mrb[9].mxu0  ;;  %v1213_v58 = vpop.f32.mrb[8].mxu1 }
 0x118   :  { %v1187_v56 = vadd.f32 %v1186_v55, %v1185_v54  ;;  %v1188_v57 = vpop.f32.mrb[10].mxu0  ;;  %v1214_v62 = vpop.f32.mrb[9].mxu1 }
 0x119   :  { %v1189_v59 = vpop.f32.mrb[11].mxu0  ;;  %v1215_v63 = vadd.f32 %v1214_v62, %v1213_v58  ;;  %v1216_v0 = vpop.f32.mrb[10].mxu1 }
 0x11a   :  { %v836_v60 = vadd.f32 %v1187_v56, %v787_v37  ;;  %v1190_v61 = vadd.f32 %v1189_v59, %v1188_v57  ;;  %v1217_v2 = vpop.f32.mrb[11].mxu1 }
 0x11b   :  { %v1218_v3 = vadd.f32 %v1217_v2, %v1216_v0 }
 0x11c   :  { %v839_v1 = vadd.f32 %v1190_v61, %v790_v39  ;;  %v885_v4 = vadd.f32 %v1215_v63, %v836_v60 }
 0x11e   :  { %v1191_v5 = vpop.f32.mrb[12].mxu0  ;;  %v888_v7 = vadd.f32 %v1218_v3, %v839_v1 }
 0x11f   :  { %v1192_v6 = vpop.f32.mrb[13].mxu0  ;;  %v1219_v10 = vpop.f32.mrb[12].mxu1 }
 0x120   :  { %v1193_v8 = vadd.f32 %v1192_v6, %v1191_v5  ;;  %v1194_v9 = vpop.f32.mrb[14].mxu0  ;;  %v1220_v14 = vpop.f32.mrb[13].mxu1 }
 0x121   :  { %v1195_v11 = vpop.f32.mrb[15].mxu0  ;;  %v1221_v15 = vadd.f32 %v1220_v14, %v1219_v10  ;;  %v1222_v16 = vpop.f32.mrb[14].mxu1 }
 0x122   :  { %v844_v12 = vadd.f32 %v1193_v8, %v795_v50  ;;  %v1196_v13 = vadd.f32 %v1195_v11, %v1194_v9  ;;  %v1223_v18 = vpop.f32.mrb[15].mxu1 }
 0x123   :  { %v1224_v19 = vadd.f32 %v1223_v18, %v1222_v16 }
 0x124   :  { %v847_v17 = vadd.f32 %v1196_v13, %v798_v53  ;;  %v893_v20 = vadd.f32 %v1221_v15, %v844_v12 }
 0x126   :  { %v896_v21 = vadd.f32 %v1224_v19, %v847_v17 }
 0x136   :  { %v1253_v22 = vpop.f32.mrb[16].mxu0 }
 0x137   :  { %v942_v23 = vadd.f32 %v1253_v22, %v893_v20  ;;  %v933_v24 = vpop.f32.mrb[17].mxu0 }
 0x138   :  { %v934_v25 = vadd.f32 %v933_v24, %v885_v4  ;;  %v1254_v26 = vpop.f32.mrb[18].mxu0 }
 0x139   :  { %v945_v27 = vadd.f32 %v1254_v26, %v896_v21  ;;  %v936_v28 = vpop.f32.mrb[19].mxu0  ;;  %v980_v35 = vmul.f32 %v942_v23, %v942_v23 }
 0x13a   :  { %v937_v29 = vadd.f32 %v936_v28, %v888_v7  ;;  %v978_v31 = vmul.f32 %v934_v25, %v934_v25 }
 0x13b   :  { %v1110_v30 = vpack.c.bf16 %v945_v27, %v942_v23  ;;  %v981_v38 = vmul.f32 %v945_v27, %v945_v27 }
 0x13c   :  { %v1105_v32 = vpack.c.bf16 %v937_v29, %v934_v25  ;;  %v968_v33 = vadd.f32 %v937_v29, %v934_v25  ;;  %v979_v34 = vmul.f32 %v937_v29, %v937_v29 }
 0x13d   :  { %1112 = vst [vmem:[%s1662_s2 + $0x8] sm:$0xff] %v1110_v30  }
 0x13e   :  { %1106 = vst [vmem:[%s1662_s2] sm:$0xff] %v1105_v32   ;;  %v969_v36 = vadd.f32 %v968_v33, %v942_v23  ;;  %v982_v37 = vadd.f32 %v979_v34, %v978_v31 }
 0x140   :  { %v970_v39 = vadd.f32 %v969_v36, %v945_v27  ;;  %v983_v40 = vadd.f32 %v982_v37, %v980_v35 }
 0x142   :  { %v971_v41 = vrot.slane %v970_v39, 4  ;;  %v984_v42 = vadd.f32 %v983_v40, %v981_v38 }
 0x144   :  { %v972_v43 = vadd.f32 %v971_v41, %v970_v39  ;;  %v985_v44 = vrot.slane %v984_v42, 4 }
 0x146   :  { %v973_v45 = vrot.slane %v972_v43, 2  ;;  %v986_v46 = vadd.f32 %v985_v44, %v984_v42 }
 0x148   :  { %v974_v47 = vadd.f32 %v973_v45, %v972_v43  ;;  %v987_v48 = vrot.slane %v986_v46, 2 }
 0x14a   :  { %v975_v49 = vrot.slane %v974_v47, 1  ;;  %v988_v50 = vadd.f32 %v987_v48, %v986_v46 }
 0x14c   :  { %v976_v51 = vadd.f32 %v975_v49, %v974_v47  ;;  %v989_v52 = vrot.slane %v988_v50, 1 }
 0x14e   :  { %977 = vst [vmem:[%s1663_s3] sm:$0xff] %v976_v51  ;;  %v990_v53 = vadd.f32 %v989_v52, %v988_v50 }
 0x150   :  { %991 = vst [vmem:[%s1664_s4] sm:$0xff] %v990_v53 }

// kernel: encoder_forward.36
= control target key start
LH: loop header
LB: loop body
LE: loop exit
PB: predicated region body
PF: predicated region fallthrough
CT: control target
= control target key end

     0   :  { %s339_s1 = inlined_call_operand.vmem [shape: bf16[128,128], index: 1, kind: input, shape index: {}]   ;;  %s340_s0 = inlined_call_operand.vmem [shape: bf16[32,128], index: 0, kind: input, shape index: {}]   ;;  %s341_s2 = inlined_call_operand.vmem [shape: f32[1,128], index: 2, kind: input, shape index: {}]   ;;  %s342_s3 = inlined_call_operand.vmem [shape: bf16[32,128], index: 3, kind: input, shape index: {}]   ;;  %s343_s4 = inlined_call_operand.vmem [shape: bf16[32,128], index: 4, kind: output, shape index: {}]  }
   0x1   :  { %v259_v0 = vld [vmem:[%s339_s1] sm:$0xff]   ;;  %v260_v1 = vld [vmem:[%s339_s1 + $0x8] sm:$0xff]   ;;  %v261_v2 = vld [vmem:[%s339_s1 + $0x10] sm:$0xff]  }
   0x2   :  { %239 = vmatprep.subr.bf16.mxu0 %v259_v0  ;;  %v262_v3 = vld [vmem:[%s339_s1 + $0x18] sm:$0xff]   ;;  %v267_v4 = vld [vmem:[%s340_s0] sm:$0xff]   ;;  %v264_v6 = vld [vmem:[%s339_s1 + $0x28] sm:$0xff]  }
   0x3   :  { %240 = vmatpush3.bf16.msra.mxu0 %v259_v0  ;;  %255 = vmatprep.mubr.bf16.mxu0 %v267_v4  ;;  %v263_v5 = vld [vmem:[%s339_s1 + $0x20] sm:$0xff]   ;;  %v265_v7 = vld [vmem:[%s339_s1 + $0x30] sm:$0xff]   ;;  %v266_v8 = vld [vmem:[%s339_s1 + $0x38] sm:$0xff]  }
   0x4   :  { %241 = vmatprep.subr.bf16.mxu0 %v260_v1  ;;  %v268_v9 = vld [vmem:[%s340_s0 + $0x8] sm:$0xff]   ;;  %v190_v10 = vld [vmem:[%s341_s2] ss:$0 sm:$0xff] }
   0x5   :  { %v227_v11 = vld [vmem:[%s342_s3 + $0x8] sm:$0xff]   ;;  %v210_v12 = vld [vmem:[%s342_s3] sm:$0xff]  }
   0x6   :  { %v215_v15 = vunpack.c.l.bf16 %v227_v11  ;;  %v216_v17 = vunpack.c.h.bf16 %v227_v11  ;;  %v211_v19 = vunpack.c.l.bf16 %v210_v12  ;;  %v212_v21 = vunpack.c.h.bf16 %v210_v12 }
   0x7   :  { %242 = vmatpush3.bf16.msra.mxu0 %v260_v1 }
   0x8   :  { %243 = vmatprep.subr.bf16.mxu0 %v261_v2 }
   0xb   :  { %244 = vmatpush3.bf16.msra.mxu0 %v261_v2 }
   0xc   :  { %245 = vmatprep.subr.bf16.mxu0 %v262_v3 }
   0xf   :  { %246 = vmatpush3.bf16.msra.mxu0 %v262_v3 }
  0x10   :  { %247 = vmatprep.subr.bf16.mxu0 %v263_v5 }
  0x13   :  { %248 = vmatpush3.bf16.msra.mxu0 %v263_v5 }
  0x14   :  { %249 = vmatprep.subr.bf16.mxu0 %v264_v6 }
  0x17   :  { %250 = vmatpush3.bf16.msra.mxu0 %v264_v6 }
  0x18   :  { %251 = vmatprep.subr.bf16.mxu0 %v265_v7 }
  0x1b   :  { %252 = vmatpush3.bf16.msra.mxu0 %v265_v7 }
  0x1c   :  { %253 = vmatprep.subr.bf16.mxu0 %v266_v8 }
  0x1f   :  { %254 = vmatpush3.bf16.msra.mxu0 %v266_v8 }
  0x22   :  { %256 = vmatmul.mubr.bf16.vlgmr.msra.gmra.mrb[0].mxu0 %v268_v9 }
  0xf5   :  { %v257_v13 = vpop.f32.mrb[0].mxu0 }
  0xf6   :  { %v148_v14 = vadd.f32 %v257_v13, %v190_v10  ;;  %v139_v16 = vpop.f32.mrb[1].mxu0 }
  0xf7   :  { %v140_v18 = vadd.f32 %v190_v10, %v139_v16  ;;  %v258_v20 = vpop.f32.mrb[2].mxu0 }
  0xf8   :  { %v151_v22 = vadd.f32 %v258_v20, %v190_v10  ;;  %v142_v23 = vpop.f32.mrb[3].mxu0  ;;  %v164_v25 = vadd.f32 %v215_v15, %v148_v14 }
  0xf9   :  { %v143_v24 = vadd.f32 %v190_v10, %v142_v23  ;;  %v162_v27 = vadd.f32 %v211_v19, %v140_v18 }
  0xfa   :  { %v165_v26 = vadd.f32 %v216_v17, %v151_v22 }
  0xfb   :  { %v163_v28 = vadd.f32 %v212_v21, %v143_v24 }
  0xfc   :  { %v225_v29 = vpack.c.bf16 %v165_v26, %v164_v25 }
  0xfd   :  { %v220_v30 = vpack.c.bf16 %v163_v28, %v162_v27 }
  0xfe   :  { %228 = vst [vmem:[%s343_s4 + $0x8] sm:$0xff] %v225_v29  }
  0xff   :  { %221 = vst [vmem:[%s343_s4] sm:$0xff] %v220_v30  }

// kernel: encoder_forward.37
= control target key start
LH: loop header
LB: loop body
LE: loop exit
PB: predicated region body
PF: predicated region fallthrough
CT: control target
= control target key end

     0   :  { %s1609_s1 = inlined_call_operand.vmem [shape: bf16[1152,128], index: 1, kind: input, shape index: {}]   ;;  %s1610_s0 = inlined_call_operand.vmem [shape: bf16[32,1152], index: 0, kind: input, shape index: {}]   ;;  %s1611_s2 = inlined_call_operand.vmem [shape: bf16[32,128], index: 2, kind: output, shape index: {}]  }
   0x1   :  { %v1220_v0 = vld [vmem:[%s1609_s1 + $0x40] sm:$0xff]   ;;  %v1224_v4 = vld [vmem:[%s1609_s1 + $0x48] sm:$0xff]   ;;  %v1228_v8 = vld [vmem:[%s1609_s1 + $0x50] sm:$0xff]  }
   0x2   :  { %v1221_v1 = vld [vmem:[%s1609_s1 + $0xc0] sm:$0xff]   ;;  %1078 = vmatprep.subr.bf16.mxu0 %v1220_v0  ;;  %v1225_v5 = vld [vmem:[%s1609_s1 + $0xc8] sm:$0xff]   ;;  %v1229_v9 = vld [vmem:[%s1609_s1 + $0xd0] sm:$0xff]  }
   0x3   :  { %v1222_v2 = vld [vmem:[%s1609_s1] sm:$0xff]   ;;  %1106 = vmatprep.subr.bf16.mxu1 %v1221_v1  ;;  %v1226_v6 = vld [vmem:[%s1609_s1 + $0x8] sm:$0xff]   ;;  %v1230_v10 = vld [vmem:[%s1609_s1 + $0x10] sm:$0xff]  }
   0x4   :  { %v1223_v3 = vld [vmem:[%s1609_s1 + $0x80] sm:$0xff]   ;;  %1079 = vmatpush3.bf16.msra.mxu0 %v1222_v2  ;;  %v1227_v7 = vld [vmem:[%s1609_s1 + $0x88] sm:$0xff]   ;;  %v1231_v11 = vld [vmem:[%s1609_s1 + $0x90] sm:$0xff]  }
   0x5   :  { %1107 = vmatpush3.bf16.msra.mxu1 %v1223_v3  ;;  %1080 = vmatprep.subr.bf16.mxu0 %v1224_v4  ;;  %v1232_v12 = vld [vmem:[%s1609_s1 + $0x58] sm:$0xff]   ;;  %v1236_v16 = vld [vmem:[%s1609_s1 + $0x60] sm:$0xff]   ;;  %v1240_v20 = vld [vmem:[%s1609_s1 + $0x68] sm:$0xff]  }
   0x6   :  { %1108 = vmatprep.subr.bf16.mxu1 %v1225_v5  ;;  %v1233_v13 = vld [vmem:[%s1609_s1 + $0xd8] sm:$0xff]   ;;  %v1237_v17 = vld [vmem:[%s1609_s1 + $0xe0] sm:$0xff]   ;;  %v1241_v21 = vld [vmem:[%s1609_s1 + $0xe8] sm:$0xff]  }
   0x7   :  { %v1234_v14 = vld [vmem:[%s1609_s1 + $0x18] sm:$0xff]   ;;  %v1238_v18 = vld [vmem:[%s1609_s1 + $0x20] sm:$0xff]   ;;  %v1242_v22 = vld [vmem:[%s1609_s1 + $0x28] sm:$0xff]  }
   0x8   :  { %1081 = vmatpush3.bf16.msra.mxu0 %v1226_v6  ;;  %v1235_v15 = vld [vmem:[%s1609_s1 + $0x98] sm:$0xff]   ;;  %v1239_v19 = vld [vmem:[%s1609_s1 + $0xa0] sm:$0xff]   ;;  %v1243_v23 = vld [vmem:[%s1609_s1 + $0xa8] sm:$0xff]  }
   0x9   :  { %1109 = vmatpush3.bf16.msra.mxu1 %v1227_v7  ;;  %1082 = vmatprep.subr.bf16.mxu0 %v1228_v8  ;;  %v1244_v24 = vld [vmem:[%s1609_s1 + $0x70] sm:$0xff]   ;;  %v1248_v28 = vld [vmem:[%s1609_s1 + $0x78] sm:$0xff]   ;;  %v1252_v32 = vld [vmem:[%s1610_s0] ss:$36 sps:$4 sm:$0xff]  }
   0xa   :  { %1110 = vmatprep.subr.bf16.mxu1 %v1229_v9  ;;  %v1245_v25 = vld [vmem:[%s1609_s1 + $0xf0] sm:$0xff]   ;;  %v1249_v29 = vld [vmem:[%s1609_s1 + $0xf8] sm:$0xff]   ;;  %v1254_v33 = vld [vmem:[%s1610_s0 + $0x4] ss:$36 sps:$4 sm:$0xff]  }
   0xb   :  { %v1246_v26 = vld [vmem:[%s1609_s1 + $0x30] sm:$0xff]   ;;  %v1250_v30 = vld [vmem:[%s1609_s1 + $0x38] sm:$0xff]   ;;  %v1255_v34 = vld [vmem:[%s1610_s0 + $0x8] ss:$36 sps:$4 sm:$0xff]   ;;  %732 = vmatprep.mubr.bf16.mxu0 %v1254_v33 }
   0xc   :  { %1083 = vmatpush3.bf16.msra.mxu0 %v1230_v10  ;;  %v1247_v27 = vld [vmem:[%s1609_s1 + $0xb0] sm:$0xff]   ;;  %v1251_v31 = vld [vmem:[%s1609_s1 + $0xb8] sm:$0xff]   ;;  %v1258_v36 = vld [vmem:[%s1609_s1 + $0x140] sm:$0xff]  }
   0xd   :  { %1111 = vmatpush3.bf16.msra.mxu1 %v1231_v11  ;;  %1084 = vmatprep.subr.bf16.mxu0 %v1232_v12  ;;  %v1257_v35 = vld [vmem:[%s1610_s0 + $0xc] ss:$36 sps:$4 sm:$0xff]   ;;  %v1259_v37 = vld [vmem:[%s1609_s1 + $0x100] sm:$0xff]   ;;  %v1270_v48 = vld [vmem:[%s1609_s1 + $0x158] sm:$0xff]  }
   0xe   :  { %1112 = vmatprep.subr.bf16.mxu1 %v1233_v13  ;;  %781 = vmatprep.mubr.bf16.mxu1 %v1257_v35  ;;  %v1260_v38 = vld [vmem:[%s1609_s1 + $0x1c0] sm:$0xff]   ;;  %v1262_v40 = vld [vmem:[%s1609_s1 + $0x148] sm:$0xff]   ;;  %v1266_v44 = vld [vmem:[%s1609_s1 + $0x150] sm:$0xff]  }
   0xf   :  { %v1261_v39 = vld [vmem:[%s1609_s1 + $0x180] sm:$0xff]   ;;  %v1263_v41 = vld [vmem:[%s1609_s1 + $0x108] sm:$0xff]   ;;  %v1267_v45 = vld [vmem:[%s1609_s1 + $0x110] sm:$0xff]  }
  0x10   :  { %1085 = vmatpush3.bf16.msra.mxu0 %v1234_v14  ;;  %v1264_v42 = vld [vmem:[%s1609_s1 + $0x1c8] sm:$0xff]   ;;  %v1268_v46 = vld [vmem:[%s1609_s1 + $0x1d0] sm:$0xff]   ;;  %v1271_v49 = vld [vmem:[%s1609_s1 + $0x118] sm:$0xff]  }
  0x11   :  { %1113 = vmatpush3.bf16.msra.mxu1 %v1235_v15  ;;  %1086 = vmatprep.subr.bf16.mxu0 %v1236_v16  ;;  %v1265_v43 = vld [vmem:[%s1609_s1 + $0x188] sm:$0xff]   ;;  %v1269_v47 = vld [vmem:[%s1609_s1 + $0x190] sm:$0xff]   ;;  %v1272_v50 = vld [vmem:[%s1609_s1 + $0x1d8] sm:$0xff]  }
  0x12   :  { %1114 = vmatprep.subr.bf16.mxu1 %v1237_v17  ;;  %v1273_v51 = vld [vmem:[%s1609_s1 + $0x198] sm:$0xff]   ;;  %v1274_v52 = vld [vmem:[%s1609_s1 + $0x160] sm:$0xff]   ;;  %v1278_v56 = vld [vmem:[%s1609_s1 + $0x168] sm:$0xff]  }
  0x13   :  { %v1275_v53 = vld [vmem:[%s1609_s1 + $0x120] sm:$0xff]   ;;  %v1279_v57 = vld [vmem:[%s1610_s0 + $0x4c] ss:$36 sps:$4 sm:$0xff]   ;;  %v1281_v58 = vld [vmem:[%s1610_s0 + $0x54] ss:$36 sps:$4 sm:$0xff]  }
  0x14   :  { %1087 = vmatpush3.bf16.msra.mxu0 %v1238_v18  ;;  %v1276_v54 = vld [vmem:[%s1609_s1 + $0x1e0] sm:$0xff]   ;;  %v1283_v59 = vld [vmem:[%s1609_s1 + $0x128] sm:$0xff]   ;;  %v1285_v61 = vld [vmem:[%s1610_s0 + $0x50] ss:$36 sps:$4 sm:$0xff]  }
  0x15   :  { %1115 = vmatpush3.bf16.msra.mxu1 %v1239_v19  ;;  %1088 = vmatprep.subr.bf16.mxu0 %v1240_v20  ;;  %v1277_v55 = vld [vmem:[%s1609_s1 + $0x1a0] sm:$0xff]   ;;  %v1284_v60 = vld [vmem:[%s1610_s0 + $0x48] ss:$36 sps:$4 sm:$0xff]   ;;  %v1288_v0 = vld [vmem:[%s1609_s1 + $0x170] sm:$0xff]  }
  0x16   :  { %1116 = vmatprep.subr.bf16.mxu1 %v1241_v21  ;;  %v1286_v62 = vld [vmem:[%s1609_s1 + $0x1e8] sm:$0xff]   ;;  %v1289_v1 = vld [vmem:[%s1609_s1 + $0x130] sm:$0xff]   ;;  %v1292_v4 = vld [vmem:[%s1609_s1 + $0x178] sm:$0xff]  }
  0x17   :  { %v1287_v63 = vld [vmem:[%s1609_s1 + $0x1a8] sm:$0xff]   ;;  %v1290_v2 = vld [vmem:[%s1609_s1 + $0x1f0] sm:$0xff]   ;;  %v1293_v5 = vld [vmem:[%s1609_s1 + $0x138] sm:$0xff]  }
  0x18   :  { %1089 = vmatpush3.bf16.msra.mxu0 %v1242_v22  ;;  %v1291_v3 = vld [vmem:[%s1609_s1 + $0x1b0] sm:$0xff]   ;;  %v1294_v6 = vld [vmem:[%s1609_s1 + $0x1f8] sm:$0xff]   ;;  %v1299_v10 = vld [vmem:[%s1609_s1 + $0x200] sm:$0xff]  }
  0x19   :  { %1117 = vmatpush3.bf16.msra.mxu1 %v1243_v23  ;;  %1090 = vmatprep.subr.bf16.mxu0 %v1244_v24  ;;  %v1295_v7 = vld [vmem:[%s1610_s0 + $0x10] ss:$36 sps:$4 sm:$0xff]   ;;  %v1298_v9 = vld [vmem:[%s1609_s1 + $0x1b8] sm:$0xff]   ;;  %v1303_v13 = vld [vmem:[%s1609_s1 + $0x208] sm:$0xff]  }
  0x1a   :  { %1118 = vmatprep.subr.bf16.mxu1 %v1245_v25  ;;  %v1297_v8 = vld [vmem:[%s1610_s0 + $0x14] ss:$36 sps:$4 sm:$0xff]   ;;  %v1302_v12 = vld [vmem:[%s1610_s0 + $0x1c] ss:$36 sps:$4 sm:$0xff]   ;;  %v1308_v17 = vld [vmem:[%s1610_s0 + $0x64] ss:$36 sps:$4 sm:$0xff]  }
  0x1b   :  { %v1300_v11 = vld [vmem:[%s1610_s0 + $0x18] ss:$36 sps:$4 sm:$0xff]   ;;  %v1307_v16 = vld [vmem:[%s1609_s1 + $0x210] sm:$0xff]   ;;  %v1310_v18 = vld [vmem:[%s1610_s0 + $0x60] ss:$36 sps:$4 sm:$0xff]  }
  0x1c   :  { %1091 = vmatpush3.bf16.msra.mxu0 %v1246_v26  ;;  %v1304_v14 = vld [vmem:[%s1610_s0 + $0x5c] ss:$36 sps:$4 sm:$0xff]   ;;  %v1313_v22 = vld [vmem:[%s1609_s1 + $0x228] sm:$0xff]   ;;  %v1314_v23 = vld [vmem:[%s1609_s1 + $0x230] sm:$0xff]  }
  0x1d   :  { %1119 = vmatpush3.bf16.msra.mxu1 %v1247_v27  ;;  %1092 = vmatprep.subr.bf16.mxu0 %v1248_v28  ;;  %v1306_v15 = vld [vmem:[%s1610_s0 + $0x58] ss:$36 sps:$4 sm:$0xff]   ;;  %v1312_v20 = vld [vmem:[%s1609_s1 + $0x220] sm:$0xff]   ;;  %v1317_v25 = vld [vmem:[%s1610_s0 + $0x68] ss:$36 sps:$4 sm:$0xff]  }
  0x1e   :  { %1120 = vmatprep.subr.bf16.mxu1 %v1249_v29  ;;  %v1311_v19 = vld [vmem:[%s1609_s1 + $0x218] sm:$0xff]   ;;  %v1316_v21 = vld [vmem:[%s1610_s0 + $0x20] ss:$36 sps:$4 sm:$0xff]  }
  0x1f   :  { %v1315_v24 = vld [vmem:[%s1609_s1 + $0x238] sm:$0xff]  }
  0x20   :  { %1093 = vmatpush3.bf16.msra.mxu0 %v1250_v30 }
  0x21   :  { %1121 = vmatpush3.bf16.msra.mxu1 %v1251_v31  ;;  %1134 = vmatprep.subr.bf16.mxu0 %v1258_v36 }
  0x22   :  { %1162 = vmatprep.subr.bf16.mxu1 %v1260_v38 }
  0x23   :  { %733 = vmatmul.mubr.bf16.vlgmr.msra.gmra.mrb[0].mxu0 %v1252_v32 }
  0x24   :  { %782 = vmatmul.mubr.bf16.vlgmr.msra.gmra.mrb[0].mxu1 %v1255_v34  ;;  %1135 = vmatpush3.bf16.msra.mxu0 %v1259_v37 }
  0x25   :  { %1163 = vmatpush3.bf16.msra.mxu1 %v1261_v39  ;;  %1136 = vmatprep.subr.bf16.mxu0 %v1262_v40 }
  0x26   :  { %1164 = vmatprep.subr.bf16.mxu1 %v1264_v42  ;;  %740 = vmatprep.mubr.bf16.mxu0 %v1279_v57 }
  0x27   :  { %789 = vmatprep.mubr.bf16.mxu1 %v1281_v58 }
  0x28   :  { %1137 = vmatpush3.bf16.msra.mxu0 %v1263_v41 }
  0x29   :  { %1165 = vmatpush3.bf16.msra.mxu1 %v1265_v43  ;;  %1138 = vmatprep.subr.bf16.mxu0 %v1266_v44 }
  0x2a   :  { %1166 = vmatprep.subr.bf16.mxu1 %v1268_v46 }
  0x2b   :  { %741 = vmatmul.mubr.bf16.gmra.mrb[4].mxu0 %v1284_v60 }
  0x2c   :  { %1139 = vmatpush3.bf16.msra.mxu0 %v1267_v45  ;;  %790 = vmatmul.mubr.bf16.gmra.mrb[4].mxu1 %v1285_v61 }
  0x2d   :  { %1167 = vmatpush3.bf16.msra.mxu1 %v1269_v47  ;;  %1140 = vmatprep.subr.bf16.mxu0 %v1270_v48 }
  0x2e   :  { %1168 = vmatprep.subr.bf16.mxu1 %v1272_v50  ;;  %830 = vmatprep.mubr.bf16.mxu0 %v1297_v8 }
  0x2f   :  { %879 = vmatprep.mubr.bf16.mxu1 %v1302_v12 }
  0x30   :  { %1141 = vmatpush3.bf16.msra.mxu0 %v1271_v49 }
  0x31   :  { %1169 = vmatpush3.bf16.msra.mxu1 %v1273_v51  ;;  %1142 = vmatprep.subr.bf16.mxu0 %v1274_v52 }
  0x32   :  { %1170 = vmatprep.subr.bf16.mxu1 %v1276_v54 }
  0x34   :  { %1143 = vmatpush3.bf16.msra.mxu0 %v1275_v53 }
  0x35   :  { %1171 = vmatpush3.bf16.msra.mxu1 %v1277_v55  ;;  %1144 = vmatprep.subr.bf16.mxu0 %v1278_v56 }
  0x36   :  { %1172 = vmatprep.subr.bf16.mxu1 %v1286_v62 }
  0x38   :  { %1145 = vmatpush3.bf16.msra.mxu0 %v1283_v59 }
  0x39   :  { %1173 = vmatpush3.bf16.msra.mxu1 %v1287_v63  ;;  %1146 = vmatprep.subr.bf16.mxu0 %v1288_v0 }
  0x3a   :  { %1174 = vmatprep.subr.bf16.mxu1 %v1290_v2 }
  0x3c   :  { %1147 = vmatpush3.bf16.msra.mxu0 %v1289_v1 }
  0x3d   :  { %1175 = vmatpush3.bf16.msra.mxu1 %v1291_v3  ;;  %1148 = vmatprep.subr.bf16.mxu0 %v1292_v4 }
  0x3e   :  { %1176 = vmatprep.subr.bf16.mxu1 %v1294_v6 }
  0x40   :  { %1149 = vmatpush3.bf16.msra.mxu0 %v1293_v5 }
  0x41   :  { %1177 = vmatpush3.bf16.msra.mxu1 %v1298_v9  ;;  %1200 = vmatprep.subr.bf16.mxu0 %v1299_v10 }
  0x43   :  { %831 = vmatmul.mubr.bf16.vlgmr.msra.gmra.mrb[8].mxu0 %v1295_v7 }
  0x44   :  { %1201 = vmatpush3.bf16.msra.mxu0 %v1299_v10  ;;  %880 = vmatmul.mubr.bf16.vlgmr.msra.gmra.mrb[8].mxu1 %v1300_v11 }
  0x45   :  { %1202 = vmatprep.subr.bf16.mxu0 %v1303_v13  ;;  %838 = vmatprep.mubr.bf16.mxu0 %v1304_v14 }
  0x46   :  { %887 = vmatprep.mubr.bf16.mxu1 %v1308_v17 }
  0x48   :  { %1203 = vmatpush3.bf16.msra.mxu0 %v1303_v13 }
  0x49   :  { %1204 = vmatprep.subr.bf16.mxu0 %v1307_v16 }
  0x4b   :  { %839 = vmatmul.mubr.bf16.gmra.mrb[12].mxu0 %v1306_v15 }
  0x4c   :  { %1205 = vmatpush3.bf16.msra.mxu0 %v1307_v16  ;;  %888 = vmatmul.mubr.bf16.gmra.mrb[12].mxu1 %v1310_v18 }
  0x4d   :  { %1206 = vmatprep.subr.bf16.mxu0 %v1311_v19  ;;  %1216 = vmatprep.mubr.bf16.mxu0 %v1316_v21 }
  0x50   :  { %1207 = vmatpush3.bf16.msra.mxu0 %v1311_v19 }
  0x51   :  { %1208 = vmatprep.subr.bf16.mxu0 %v1312_v20 }
  0x54   :  { %1209 = vmatpush3.bf16.msra.mxu0 %v1312_v20 }
  0x55   :  { %1210 = vmatprep.subr.bf16.mxu0 %v1313_v22 }
  0x58   :  { %1211 = vmatpush3.bf16.msra.mxu0 %v1313_v22 }
  0x59   :  { %1212 = vmatprep.subr.bf16.mxu0 %v1314_v23 }
  0x5c   :  { %1213 = vmatpush3.bf16.msra.mxu0 %v1314_v23 }
  0x5d   :  { %1214 = vmatprep.subr.bf16.mxu0 %v1315_v24 }
  0x60   :  { %1215 = vmatpush3.bf16.msra.mxu0 %v1315_v24 }
  0x63   :  { %1217 = vmatmul.mubr.bf16.vlgmr.msra.gmra.mrb[16].mxu0 %v1317_v25 }
  0xf6   :  { %v1094_v26 = vpop.f32.mrb[0].mxu0 }
  0xf7   :  { %v1122_v27 = vpop.f32.mrb[0].mxu1  ;;  %v1095_v28 = vpop.f32.mrb[1].mxu0 }
  0xf8   :  { %v1096_v29 = vadd.f32 %v1095_v28, %v1094_v26  ;;  %v1123_v30 = vpop.f32.mrb[1].mxu1  ;;  %v1097_v31 = vpop.f32.mrb[2].mxu0 }
  0xf9   :  { %v1124_v32 = vadd.f32 %v1123_v30, %v1122_v27  ;;  %v1125_v33 = vpop.f32.mrb[2].mxu1  ;;  %v1098_v34 = vpop.f32.mrb[3].mxu0 }
  0xfa   :  { %v1099_v35 = vadd.f32 %v1098_v34, %v1097_v31  ;;  %v1126_v36 = vpop.f32.mrb[3].mxu1 }
  0xfb   :  { %v784_v37 = vadd.f32 %v1124_v32, %v1096_v29  ;;  %v1127_v38 = vadd.f32 %v1126_v36, %v1125_v33 }
  0xfd   :  { %v787_v39 = vadd.f32 %v1127_v38, %v1099_v35 }
  0xfe   :  { %v1100_v40 = vpop.f32.mrb[4].mxu0 }
  0xff   :  { %v1128_v41 = vpop.f32.mrb[4].mxu1  ;;  %v1101_v42 = vpop.f32.mrb[5].mxu0 }
 0x100   :  { %v1129_v43 = vpop.f32.mrb[5].mxu1  ;;  %v1102_v44 = vadd.f32 %v1101_v42, %v1100_v40  ;;  %v1103_v46 = vpop.f32.mrb[6].mxu0 }
 0x101   :  { %v1130_v45 = vadd.f32 %v1129_v43, %v1128_v41  ;;  %v1131_v47 = vpop.f32.mrb[6].mxu1  ;;  %v1104_v48 = vpop.f32.mrb[7].mxu0 }
 0x102   :  { %v1132_v49 = vpop.f32.mrb[7].mxu1  ;;  %v1105_v51 = vadd.f32 %v1104_v48, %v1103_v46 }
 0x103   :  { %v792_v50 = vadd.f32 %v1130_v45, %v1102_v44  ;;  %v1133_v52 = vadd.f32 %v1132_v49, %v1131_v47 }
 0x105   :  { %v795_v53 = vadd.f32 %v1133_v52, %v1105_v51 }
 0x116   :  { %v1150_v54 = vpop.f32.mrb[8].mxu0 }
 0x117   :  { %v1151_v55 = vpop.f32.mrb[9].mxu0  ;;  %v1178_v58 = vpop.f32.mrb[8].mxu1 }
 0x118   :  { %v1152_v56 = vadd.f32 %v1151_v55, %v1150_v54  ;;  %v1153_v57 = vpop.f32.mrb[10].mxu0  ;;  %v1179_v62 = vpop.f32.mrb[9].mxu1 }
 0x119   :  { %v1154_v59 = vpop.f32.mrb[11].mxu0  ;;  %v1180_v63 = vadd.f32 %v1179_v62, %v1178_v58  ;;  %v1181_v0 = vpop.f32.mrb[10].mxu1 }
 0x11a   :  { %v833_v60 = vadd.f32 %v1152_v56, %v784_v37  ;;  %v1155_v61 = vadd.f32 %v1154_v59, %v1153_v57  ;;  %v1182_v2 = vpop.f32.mrb[11].mxu1 }
 0x11b   :  { %v1183_v3 = vadd.f32 %v1182_v2, %v1181_v0 }
 0x11c   :  { %v836_v1 = vadd.f32 %v1155_v61, %v787_v39  ;;  %v882_v4 = vadd.f32 %v1180_v63, %v833_v60 }
 0x11e   :  { %v1156_v5 = vpop.f32.mrb[12].mxu0  ;;  %v885_v7 = vadd.f32 %v1183_v3, %v836_v1 }
 0x11f   :  { %v1157_v6 = vpop.f32.mrb[13].mxu0  ;;  %v1184_v10 = vpop.f32.mrb[12].mxu1 }
 0x120   :  { %v1158_v8 = vadd.f32 %v1157_v6, %v1156_v5  ;;  %v1159_v9 = vpop.f32.mrb[14].mxu0  ;;  %v1185_v14 = vpop.f32.mrb[13].mxu1 }
 0x121   :  { %v1160_v11 = vpop.f32.mrb[15].mxu0  ;;  %v1186_v15 = vadd.f32 %v1185_v14, %v1184_v10  ;;  %v1187_v16 = vpop.f32.mrb[14].mxu1 }
 0x122   :  { %v841_v12 = vadd.f32 %v1158_v8, %v792_v50  ;;  %v1161_v13 = vadd.f32 %v1160_v11, %v1159_v9  ;;  %v1188_v18 = vpop.f32.mrb[15].mxu1 }
 0x123   :  { %v1189_v19 = vadd.f32 %v1188_v18, %v1187_v16 }
 0x124   :  { %v844_v17 = vadd.f32 %v1161_v13, %v795_v53  ;;  %v890_v20 = vadd.f32 %v1186_v15, %v841_v12 }
 0x126   :  { %v893_v21 = vadd.f32 %v1189_v19, %v844_v17 }
 0x136   :  { %v1218_v22 = vpop.f32.mrb[16].mxu0 }
 0x137   :  { %v939_v23 = vadd.f32 %v1218_v22, %v890_v20  ;;  %v930_v24 = vpop.f32.mrb[17].mxu0 }
 0x138   :  { %v931_v25 = vadd.f32 %v930_v24, %v882_v4  ;;  %v1219_v26 = vpop.f32.mrb[18].mxu0 }
 0x139   :  { %v942_v27 = vadd.f32 %v1219_v26, %v893_v21  ;;  %v933_v28 = vpop.f32.mrb[19].mxu0 }
 0x13a   :  { %v934_v29 = vadd.f32 %v933_v28, %v885_v7 }
 0x13b   :  { %v1075_v30 = vpack.c.bf16 %v942_v27, %v939_v23 }
 0x13c   :  { %v1070_v31 = vpack.c.bf16 %v934_v29, %v931_v25 }
 0x13d   :  { %1077 = vst [vmem:[%s1611_s2 + $0x8] sm:$0xff] %v1075_v30  }
 0x13e   :  { %1071 = vst [vmem:[%s1611_s2] sm:$0xff] %v1070_v31  }

// kernel: encoder_forward.35
= control target key start
LH: loop header
LB: loop body
LE: loop exit
PB: predicated region body
PF: predicated region fallthrough
CT: control target
= control target key end

     0   :  { %v1328_v33 = vmov 0   ;;  %s1654_s1 = inlined_call_operand.vmem [shape: bf16[1152,128], index: 1, kind: input, shape index: {}]   ;;  %s1655_s0 = inlined_call_operand.vmem [shape: bf16[32,1152], index: 0, kind: input, shape index: {}]   ;;  %s1656_s2 = inlined_call_operand.vmem [shape: f32[1,128], index: 2, kind: input, shape index: {}]   ;;  %s1657_s3 = inlined_call_operand.vmem [shape: bf16[32,128], index: 3, kind: output, shape index: {}]  }
   0x1   :  { %v1256_v0 = vld [vmem:[%s1654_s1 + $0x40] sm:$0xff]   ;;  %v1260_v4 = vld [vmem:[%s1654_s1 + $0x48] sm:$0xff]   ;;  %v1264_v8 = vld [vmem:[%s1654_s1 + $0x50] sm:$0xff]  }
   0x2   :  { %v1257_v1 = vld [vmem:[%s1654_s1] sm:$0xff]   ;;  %1113 = vmatprep.subr.bf16.mxu0 %v1256_v0  ;;  %v1261_v5 = vld [vmem:[%s1654_s1 + $0x8] sm:$0xff]   ;;  %v1265_v9 = vld [vmem:[%s1654_s1 + $0x10] sm:$0xff]  }
   0x3   :  { %v1258_v2 = vld [vmem:[%s1654_s1 + $0xc0] sm:$0xff]   ;;  %1114 = vmatpush3.bf16.msra.mxu0 %v1257_v1  ;;  %v1262_v6 = vld [vmem:[%s1654_s1 + $0xc8] sm:$0xff]   ;;  %v1266_v10 = vld [vmem:[%s1654_s1 + $0xd0] sm:$0xff]  }
   0x4   :  { %v1259_v3 = vld [vmem:[%s1654_s1 + $0x80] sm:$0xff]   ;;  %1141 = vmatprep.subr.bf16.mxu1 %v1258_v2  ;;  %1115 = vmatprep.subr.bf16.mxu0 %v1260_v4  ;;  %v1263_v7 = vld [vmem:[%s1654_s1 + $0x88] sm:$0xff]   ;;  %v1267_v11 = vld [vmem:[%s1654_s1 + $0x90] sm:$0xff]  }
   0x5   :  { %1142 = vmatpush3.bf16.msra.mxu1 %v1259_v3  ;;  %v1268_v12 = vld [vmem:[%s1654_s1 + $0x58] sm:$0xff]   ;;  %v1272_v16 = vld [vmem:[%s1654_s1 + $0x60] sm:$0xff]   ;;  %v1276_v20 = vld [vmem:[%s1654_s1 + $0x68] sm:$0xff]  }
   0x6   :  { %1143 = vmatprep.subr.bf16.mxu1 %v1262_v6  ;;  %v1269_v13 = vld [vmem:[%s1654_s1 + $0x18] sm:$0xff]   ;;  %v1273_v17 = vld [vmem:[%s1654_s1 + $0x20] sm:$0xff]   ;;  %v1277_v21 = vld [vmem:[%s1654_s1 + $0x28] sm:$0xff]  }
   0x7   :  { %1116 = vmatpush3.bf16.msra.mxu0 %v1261_v5  ;;  %v1270_v14 = vld [vmem:[%s1654_s1 + $0xd8] sm:$0xff]   ;;  %v1274_v18 = vld [vmem:[%s1654_s1 + $0xe0] sm:$0xff]   ;;  %v1278_v22 = vld [vmem:[%s1654_s1 + $0xe8] sm:$0xff]  }
   0x8   :  { %1117 = vmatprep.subr.bf16.mxu0 %v1264_v8  ;;  %v1271_v15 = vld [vmem:[%s1654_s1 + $0x98] sm:$0xff]   ;;  %v1275_v19 = vld [vmem:[%s1654_s1 + $0xa0] sm:$0xff]   ;;  %v1279_v23 = vld [vmem:[%s1654_s1 + $0xa8] sm:$0xff]  }
   0x9   :  { %1144 = vmatpush3.bf16.msra.mxu1 %v1263_v7  ;;  %v1280_v24 = vld [vmem:[%s1654_s1 + $0x70] sm:$0xff]   ;;  %v1284_v28 = vld [vmem:[%s1654_s1 + $0x78] sm:$0xff]   ;;  %v15_v31 = vld [vmem:[%s1655_s0] sm:$0xff] }
   0xa   :  { %1145 = vmatprep.subr.bf16.mxu1 %v1266_v10  ;;  %v1281_v25 = vld [vmem:[%s1654_s1 + $0x30] sm:$0xff]   ;;  %v1285_v29 = vld [vmem:[%s1654_s1 + $0x38] sm:$0xff]   ;;  %v20_v32 = vld [vmem:[%s1655_s0 + $0x24] sm:$0xff]  ;;  %v35_v34 = vmax.bf16 %v1328_v33, %v15_v31 }
   0xb   :  { %1118 = vmatpush3.bf16.msra.mxu0 %v1265_v9  ;;  %v1282_v26 = vld [vmem:[%s1654_s1 + $0xf0] sm:$0xff]   ;;  %v1286_v30 = vld [vmem:[%s1654_s1 + $0xf8] sm:$0xff]   ;;  %v40_v35 = vmax.bf16 %v1328_v33, %v20_v32  ;;  %v1288_v37 = vld [vmem:[%s1654_s1 + $0x140] sm:$0xff]  }
   0xc   :  { %1119 = vmatprep.subr.bf16.mxu0 %v1268_v12  ;;  %v1283_v27 = vld [vmem:[%s1654_s1 + $0xb0] sm:$0xff]   ;;  %v1287_v36 = vld [vmem:[%s1654_s1 + $0xb8] sm:$0xff]   ;;  %v16_v38 = vld [vmem:[%s1655_s0 + $0x8] sm:$0xff] }
   0xd   :  { %1146 = vmatpush3.bf16.msra.mxu1 %v1267_v11  ;;  %v1005_v39 = vcombine.high %v35_v34, %v40_v35  ;;  %v1004_v40 = vcombine.low %v35_v34, %v40_v35  ;;  %v21_v41 = vld [vmem:[%s1655_s0 + $0x2c] sm:$0xff]  ;;  %v36_v42 = vmax.bf16 %v1328_v33, %v16_v38  ;;  %v1289_v44 = vld [vmem:[%s1654_s1 + $0x100] sm:$0xff]   ;;  %v1300_v57 = vld [vmem:[%s1654_s1 + $0x158] sm:$0xff]  }
   0xe   :  { %1147 = vmatprep.subr.bf16.mxu1 %v1270_v14  ;;  %v41_v43 = vmax.bf16 %v1328_v33, %v21_v41  ;;  %v1290_v45 = vld [vmem:[%s1654_s1 + $0x1c0] sm:$0xff]   ;;  %v1292_v49 = vld [vmem:[%s1654_s1 + $0x148] sm:$0xff]   ;;  %v1296_v53 = vld [vmem:[%s1654_s1 + $0x150] sm:$0xff]  }
   0xf   :  { %1120 = vmatpush3.bf16.msra.mxu0 %v1269_v13  ;;  %762 = vmatprep.mubr.bf16.mxu0 %v1005_v39  ;;  %v1291_v48 = vld [vmem:[%s1654_s1 + $0x180] sm:$0xff]   ;;  %v1293_v50 = vld [vmem:[%s1654_s1 + $0x108] sm:$0xff]   ;;  %v1297_v54 = vld [vmem:[%s1654_s1 + $0x110] sm:$0xff]  }
  0x10   :  { %1121 = vmatprep.subr.bf16.mxu0 %v1272_v16  ;;  %v1007_v46 = vcombine.high %v36_v42, %v41_v43  ;;  %v1006_v47 = vcombine.low %v36_v42, %v41_v43  ;;  %v1294_v51 = vld [vmem:[%s1654_s1 + $0x1c8] sm:$0xff]   ;;  %v1298_v55 = vld [vmem:[%s1654_s1 + $0x1d0] sm:$0xff]   ;;  %v1301_v58 = vld [vmem:[%s1654_s1 + $0x118] sm:$0xff]  }
  0x11   :  { %1148 = vmatpush3.bf16.msra.mxu1 %v1271_v15  ;;  %v1295_v52 = vld [vmem:[%s1654_s1 + $0x188] sm:$0xff]   ;;  %v1299_v56 = vld [vmem:[%s1654_s1 + $0x190] sm:$0xff]   ;;  %v1302_v59 = vld [vmem:[%s1654_s1 + $0x1d8] sm:$0xff]  }
  0x12   :  { %1149 = vmatprep.subr.bf16.mxu1 %v1274_v18  ;;  %811 = vmatprep.mubr.bf16.mxu1 %v1007_v46  ;;  %v1303_v60 = vld [vmem:[%s1654_s1 + $0x198] sm:$0xff]   ;;  %v1304_v61 = vld [vmem:[%s1654_s1 + $0x160] sm:$0xff]   ;;  %v1308_v1 = vld [vmem:[%s1654_s1 + $0x168] sm:$0xff]  }
  0x13   :  { %1122 = vmatpush3.bf16.msra.mxu0 %v1273_v17  ;;  %v1305_v62 = vld [vmem:[%s1654_s1 + $0x120] sm:$0xff]   ;;  %v25_v2 = vld [vmem:[%s1655_s0 + $0x48] sm:$0xff]  ;;  %v26_v10 = vld [vmem:[%s1655_s0 + $0x50] sm:$0xff] }
  0x14   :  { %1123 = vmatprep.subr.bf16.mxu0 %v1276_v20  ;;  %v1306_v63 = vld [vmem:[%s1654_s1 + $0x1e0] sm:$0xff]   ;;  %v30_v3 = vld [vmem:[%s1655_s0 + $0x6c] sm:$0xff]  ;;  %v45_v4 = vmax.bf16 %v1328_v33, %v25_v2  ;;  %v31_v11 = vld [vmem:[%s1655_s0 + $0x74] sm:$0xff]  ;;  %v46_v12 = vmax.bf16 %v1328_v33, %v26_v10 }
  0x15   :  { %1150 = vmatpush3.bf16.msra.mxu1 %v1275_v19  ;;  %v1307_v0 = vld [vmem:[%s1654_s1 + $0x1a0] sm:$0xff]   ;;  %v50_v5 = vmax.bf16 %v1328_v33, %v30_v3  ;;  %v1309_v6 = vld [vmem:[%s1654_s1 + $0x128] sm:$0xff]   ;;  %v51_v13 = vmax.bf16 %v1328_v33, %v31_v11  ;;  %v1312_v15 = vld [vmem:[%s1654_s1 + $0x170] sm:$0xff]  }
  0x16   :  { %1151 = vmatprep.subr.bf16.mxu1 %v1278_v22  ;;  %v1310_v7 = vld [vmem:[%s1654_s1 + $0x1e8] sm:$0xff]   ;;  %v1313_v18 = vld [vmem:[%s1654_s1 + $0x130] sm:$0xff]   ;;  %v1317_v22 = vld [vmem:[%s1654_s1 + $0x138] sm:$0xff]  }
  0x17   :  { %1124 = vmatpush3.bf16.msra.mxu0 %v1277_v21  ;;  %v1014_v8 = vcombine.high %v45_v4, %v50_v5  ;;  %v1013_v9 = vcombine.low %v45_v4, %v50_v5  ;;  %v1311_v14 = vld [vmem:[%s1654_s1 + $0x1a8] sm:$0xff]   ;;  %v1016_v16 = vcombine.high %v46_v12, %v51_v13  ;;  %v1015_v17 = vcombine.low %v46_v12, %v51_v13  ;;  %v1314_v19 = vld [vmem:[%s1654_s1 + $0x1f0] sm:$0xff]   ;;  %v1316_v21 = vld [vmem:[%s1654_s1 + $0x178] sm:$0xff]  }
  0x18   :  { %1125 = vmatprep.subr.bf16.mxu0 %v1280_v24  ;;  %v1315_v20 = vld [vmem:[%s1654_s1 + $0x1b0] sm:$0xff]   ;;  %v23_v31 = vld [vmem:[%s1655_s0 + $0x3c] sm:$0xff] }
  0x19   :  { %1152 = vmatpush3.bf16.msra.mxu1 %v1279_v23  ;;  %v1318_v23 = vld [vmem:[%s1654_s1 + $0x1f8] sm:$0xff]   ;;  %v17_v24 = vld [vmem:[%s1655_s0 + $0x10] sm:$0xff]  ;;  %v1003_v4 = vld [vmem:[%s1656_s2] ss:$0 sm:$0xff] }
  0x1a   :  { %1153 = vmatprep.subr.bf16.mxu1 %v1282_v26  ;;  %v37_v26 = vmax.bf16 %v1328_v33, %v17_v24  ;;  %v27_v38 = vld [vmem:[%s1655_s0 + $0x58] sm:$0xff] }
  0x1b   :  { %1126 = vmatpush3.bf16.msra.mxu0 %v1281_v25  ;;  %v22_v25 = vld [vmem:[%s1655_s0 + $0x34] sm:$0xff]  ;;  %v32_v39 = vld [vmem:[%s1655_s0 + $0x7c] sm:$0xff]  ;;  %v47_v42 = vmax.bf16 %v1328_v33, %v27_v38 }
  0x1c   :  { %1127 = vmatprep.subr.bf16.mxu0 %v1284_v28  ;;  %v1319_v28 = vld [vmem:[%s1654_s1 + $0x1b8] sm:$0xff]   ;;  %v52_v43 = vmax.bf16 %v1328_v33, %v32_v39 }
  0x1d   :  { %1154 = vmatpush3.bf16.msra.mxu1 %v1283_v27  ;;  %v42_v27 = vmax.bf16 %v1328_v33, %v22_v25  ;;  %v1327_v2 = vld [vmem:[%s1654_s1 + $0x238] sm:$0xff]  }
  0x1e   :  { %1155 = vmatprep.subr.bf16.mxu1 %v1286_v30  ;;  %v18_v30 = vld [vmem:[%s1655_s0 + $0x18] sm:$0xff] }
  0x1f   :  { %1128 = vmatpush3.bf16.msra.mxu0 %v1285_v29  ;;  %v1320_v29 = vld [vmem:[%s1654_s1 + $0x200] sm:$0xff]   ;;  %v1008_v32 = vcombine.low %v37_v26, %v42_v27  ;;  %v1009_v34 = vcombine.high %v37_v26, %v42_v27  ;;  %v38_v35 = vmax.bf16 %v1328_v33, %v18_v30 }
  0x20   :  { %1169 = vmatprep.subr.bf16.mxu0 %v1288_v37  ;;  %v1321_v37 = vld [vmem:[%s1654_s1 + $0x208] sm:$0xff]  }
  0x21   :  { %1156 = vmatpush3.bf16.msra.mxu1 %v1287_v36  ;;  %v43_v36 = vmax.bf16 %v1328_v33, %v23_v31 }
  0x22   :  { %763 = vmatmul.mubr.bf16.vlgmr.msra.gmra.mrb[0].mxu0 %v1004_v40  ;;  %1197 = vmatprep.subr.bf16.mxu1 %v1290_v45  ;;  %v33_v45 = vld [vmem:[%s1655_s0 + $0x84] sm:$0xff] }
  0x23   :  { %1170 = vmatpush3.bf16.msra.mxu0 %v1289_v44  ;;  %770 = vmatprep.mubr.bf16.mxu0 %v1014_v8  ;;  %v1010_v40 = vcombine.low %v38_v35, %v43_v36  ;;  %v1011_v41 = vcombine.high %v38_v35, %v43_v36  ;;  %v28_v44 = vld [vmem:[%s1655_s0 + $0x60] sm:$0xff] }
  0x24   :  { %812 = vmatmul.mubr.bf16.vlgmr.msra.gmra.mrb[0].mxu1 %v1006_v47  ;;  %1171 = vmatprep.subr.bf16.mxu0 %v1292_v49  ;;  %v48_v46 = vmax.bf16 %v1328_v33, %v28_v44  ;;  %v1018_v47 = vcombine.high %v47_v42, %v52_v43  ;;  %v1322_v49 = vld [vmem:[%s1654_s1 + $0x210] sm:$0xff]  }
  0x25   :  { %1198 = vmatpush3.bf16.msra.mxu1 %v1291_v48  ;;  %819 = vmatprep.mubr.bf16.mxu1 %v1016_v16  ;;  %v53_v48 = vmax.bf16 %v1328_v33, %v33_v45 }
  0x26   :  { %1199 = vmatprep.subr.bf16.mxu1 %v1294_v51  ;;  %v1017_v51 = vcombine.low %v47_v42, %v52_v43 }
  0x27   :  { %1172 = vmatpush3.bf16.msra.mxu0 %v1293_v50  ;;  %v1020_v50 = vcombine.high %v48_v46, %v53_v48 }
  0x28   :  { %1173 = vmatprep.subr.bf16.mxu0 %v1296_v53  ;;  %v24_v53 = vld [vmem:[%s1655_s0 + $0x44] sm:$0xf] }
  0x29   :  { %1200 = vmatpush3.bf16.msra.mxu1 %v1295_v52  ;;  %v19_v52 = vld [vmem:[%s1655_s0 + $0x20] sm:$0xf] }
  0x2a   :  { %1201 = vmatprep.subr.bf16.mxu1 %v1298_v55  ;;  %771 = vmatmul.mubr.bf16.gmra.mrb[4].mxu0 %v1013_v9  ;;  %v1323_v55 = vld [vmem:[%s1654_s1 + $0x218] sm:$0xff]  }
  0x2b   :  { %1174 = vmatpush3.bf16.msra.mxu0 %v1297_v54  ;;  %860 = vmatprep.mubr.bf16.mxu0 %v1009_v34  ;;  %v1019_v54 = vcombine.low %v48_v46, %v53_v48 }
  0x2c   :  { %1175 = vmatprep.subr.bf16.mxu0 %v1300_v57  ;;  %820 = vmatmul.mubr.bf16.gmra.mrb[4].mxu1 %v1015_v17  ;;  %v44_v57 = vmax.bf16 %v1328_v33, %v24_v53 }
  0x2d   :  { %1202 = vmatpush3.bf16.msra.mxu1 %v1299_v56  ;;  %909 = vmatprep.mubr.bf16.mxu1 %v1011_v41  ;;  %v39_v56 = vmax.bf16 %v1328_v33, %v19_v52 }
  0x2e   :  { %1203 = vmatprep.subr.bf16.mxu1 %v1302_v59  ;;  %v34_v59 = vld [vmem:[%s1655_s0 + $0x8c] sm:$0xf] }
  0x2f   :  { %1176 = vmatpush3.bf16.msra.mxu0 %v1301_v58  ;;  %v29_v58 = vld [vmem:[%s1655_s0 + $0x68] sm:$0xf] }
  0x30   :  { %1177 = vmatprep.subr.bf16.mxu0 %v1304_v61  ;;  %v54_v61 = vmax.bf16 %v1328_v33, %v34_v59 }
  0x31   :  { %1204 = vmatpush3.bf16.msra.mxu1 %v1303_v60  ;;  %v49_v60 = vmax.bf16 %v1328_v33, %v29_v58  ;;  %v1326_v33 = vld [vmem:[%s1654_s1 + $0x230] sm:$0xff]  }
  0x32   :  { %1205 = vmatprep.subr.bf16.mxu1 %v1306_v63 }
  0x33   :  { %1178 = vmatpush3.bf16.msra.mxu0 %v1305_v62  ;;  %v1012_v62 = vcombine.low %v39_v56, %v44_v57  ;;  %v1021_v63 = vcombine.low %v49_v60, %v54_v61 }
  0x34   :  { %1179 = vmatprep.subr.bf16.mxu0 %v1308_v1  ;;  %v1325_v1 = vld [vmem:[%s1654_s1 + $0x228] sm:$0xff]  }
  0x35   :  { %1206 = vmatpush3.bf16.msra.mxu1 %v1307_v0  ;;  %v1324_v0 = vld [vmem:[%s1654_s1 + $0x220] sm:$0xff]  }
  0x36   :  { %1207 = vmatprep.subr.bf16.mxu1 %v1310_v7 }
  0x37   :  { %1180 = vmatpush3.bf16.msra.mxu0 %v1309_v6 }
  0x38   :  { %1181 = vmatprep.subr.bf16.mxu0 %v1312_v15 }
  0x39   :  { %1208 = vmatpush3.bf16.msra.mxu1 %v1311_v14 }
  0x3a   :  { %1209 = vmatprep.subr.bf16.mxu1 %v1314_v19 }
  0x3b   :  { %1182 = vmatpush3.bf16.msra.mxu0 %v1313_v18 }
  0x3c   :  { %1183 = vmatprep.subr.bf16.mxu0 %v1316_v21 }
  0x3d   :  { %1210 = vmatpush3.bf16.msra.mxu1 %v1315_v20 }
  0x3e   :  { %1211 = vmatprep.subr.bf16.mxu1 %v1318_v23 }
  0x3f   :  { %1184 = vmatpush3.bf16.msra.mxu0 %v1317_v22 }
  0x40   :  { %1235 = vmatprep.subr.bf16.mxu0 %v1320_v29 }
  0x41   :  { %1212 = vmatpush3.bf16.msra.mxu1 %v1319_v28 }
  0x42   :  { %861 = vmatmul.mubr.bf16.vlgmr.msra.gmra.mrb[8].mxu0 %v1008_v32 }
  0x43   :  { %1236 = vmatpush3.bf16.msra.mxu0 %v1320_v29  ;;  %868 = vmatprep.mubr.bf16.mxu0 %v1018_v47 }
  0x44   :  { %910 = vmatmul.mubr.bf16.vlgmr.msra.gmra.mrb[8].mxu1 %v1010_v40  ;;  %1237 = vmatprep.subr.bf16.mxu0 %v1321_v37 }
  0x45   :  { %917 = vmatprep.mubr.bf16.mxu1 %v1020_v50 }
  0x47   :  { %1238 = vmatpush3.bf16.msra.mxu0 %v1321_v37 }
  0x48   :  { %1239 = vmatprep.subr.bf16.mxu0 %v1322_v49 }
  0x4a   :  { %869 = vmatmul.mubr.bf16.gmra.mrb[12].mxu0 %v1017_v51 }
  0x4b   :  { %1240 = vmatpush3.bf16.msra.mxu0 %v1322_v49  ;;  %1251 = vmatprep.mubr.bf16.mxu0 %v1012_v62 }
  0x4c   :  { %918 = vmatmul.mubr.bf16.gmra.mrb[12].mxu1 %v1019_v54  ;;  %1241 = vmatprep.subr.bf16.mxu0 %v1323_v55 }
  0x4f   :  { %1242 = vmatpush3.bf16.msra.mxu0 %v1323_v55 }
  0x50   :  { %1243 = vmatprep.subr.bf16.mxu0 %v1324_v0 }
  0x53   :  { %1244 = vmatpush3.bf16.msra.mxu0 %v1324_v0 }
  0x54   :  { %1245 = vmatprep.subr.bf16.mxu0 %v1325_v1 }
  0x57   :  { %1246 = vmatpush3.bf16.msra.mxu0 %v1325_v1 }
  0x58   :  { %1247 = vmatprep.subr.bf16.mxu0 %v1326_v33 }
  0x5b   :  { %1248 = vmatpush3.bf16.msra.mxu0 %v1326_v33 }
  0x5c   :  { %1249 = vmatprep.subr.bf16.mxu0 %v1327_v2 }
  0x5f   :  { %1250 = vmatpush3.bf16.msra.mxu0 %v1327_v2 }
  0x62   :  { %1252 = vmatmul.mubr.bf16.vlgmr.msra.gmra.mrb[16].mxu0 %v1021_v63 }
  0xf5   :  { %v1129_v3 = vpop.f32.mrb[0].mxu0 }
  0xf6   :  { %v1130_v5 = vpop.f32.mrb[1].mxu0 }
  0xf7   :  { %v1131_v6 = vadd.f32 %v1130_v5, %v1129_v3  ;;  %v1132_v7 = vpop.f32.mrb[2].mxu0  ;;  %v1157_v8 = vpop.f32.mrb[0].mxu1 }
  0xf8   :  { %v1133_v9 = vpop.f32.mrb[3].mxu0  ;;  %v1158_v12 = vpop.f32.mrb[1].mxu1 }
  0xf9   :  { %v765_v10 = vadd.f32 %v1131_v6, %v1003_v4  ;;  %v1134_v11 = vadd.f32 %v1133_v9, %v1132_v7  ;;  %v1159_v13 = vadd.f32 %v1158_v12, %v1157_v8  ;;  %v1160_v14 = vpop.f32.mrb[2].mxu1 }
  0xfa   :  { %v1161_v16 = vpop.f32.mrb[3].mxu1 }
  0xfb   :  { %v768_v15 = vadd.f32 %v1134_v11, %v1003_v4  ;;  %v814_v17 = vadd.f32 %v1159_v13, %v765_v10  ;;  %v1162_v18 = vadd.f32 %v1161_v16, %v1160_v14 }
  0xfd   :  { %v817_v19 = vadd.f32 %v1162_v18, %v768_v15  ;;  %v1135_v20 = vpop.f32.mrb[4].mxu0 }
  0xfe   :  { %v1136_v21 = vpop.f32.mrb[5].mxu0 }
  0xff   :  { %v1137_v22 = vadd.f32 %v1136_v21, %v1135_v20  ;;  %v1138_v23 = vpop.f32.mrb[6].mxu0  ;;  %v1163_v24 = vpop.f32.mrb[4].mxu1 }
 0x100   :  { %v1139_v25 = vpop.f32.mrb[7].mxu0  ;;  %v1164_v28 = vpop.f32.mrb[5].mxu1 }
 0x101   :  { %v773_v26 = vadd.f32 %v1137_v22, %v1003_v4  ;;  %v1140_v27 = vadd.f32 %v1139_v25, %v1138_v23  ;;  %v1165_v29 = vadd.f32 %v1164_v28, %v1163_v24  ;;  %v1166_v30 = vpop.f32.mrb[6].mxu1 }
 0x102   :  { %v1167_v32 = vpop.f32.mrb[7].mxu1 }
 0x103   :  { %v776_v31 = vadd.f32 %v1140_v27, %v1003_v4  ;;  %v822_v34 = vadd.f32 %v1165_v29, %v773_v26  ;;  %v1168_v35 = vadd.f32 %v1167_v32, %v1166_v30 }
 0x105   :  { %v825_v36 = vadd.f32 %v1168_v35, %v776_v31 }
 0x115   :  { %v1185_v37 = vpop.f32.mrb[8].mxu0 }
 0x116   :  { %v1186_v38 = vpop.f32.mrb[9].mxu0 }
 0x117   :  { %v1187_v39 = vadd.f32 %v1186_v38, %v1185_v37  ;;  %v1188_v40 = vpop.f32.mrb[10].mxu0  ;;  %v1213_v41 = vpop.f32.mrb[8].mxu1 }
 0x118   :  { %v1189_v42 = vpop.f32.mrb[11].mxu0  ;;  %v1214_v43 = vpop.f32.mrb[9].mxu1 }
 0x119   :  { %v863_v44 = vadd.f32 %v1187_v39, %v814_v17  ;;  %v1190_v45 = vadd.f32 %v1189_v42, %v1188_v40  ;;  %v1215_v46 = vadd.f32 %v1214_v43, %v1213_v41  ;;  %v1216_v47 = vpop.f32.mrb[10].mxu1 }
 0x11a   :  { %v1217_v48 = vpop.f32.mrb[11].mxu1 }
 0x11b   :  { %v866_v49 = vadd.f32 %v1190_v45, %v817_v19  ;;  %v1218_v50 = vadd.f32 %v1217_v48, %v1216_v47  ;;  %v912_v51 = vadd.f32 %v1215_v46, %v863_v44 }
 0x11d   :  { %v1191_v52 = vpop.f32.mrb[12].mxu0  ;;  %v915_v53 = vadd.f32 %v1218_v50, %v866_v49 }
 0x11e   :  { %v1192_v54 = vpop.f32.mrb[13].mxu0 }
 0x11f   :  { %v1193_v55 = vadd.f32 %v1192_v54, %v1191_v52  ;;  %v1194_v56 = vpop.f32.mrb[14].mxu0  ;;  %v1219_v57 = vpop.f32.mrb[12].mxu1 }
 0x120   :  { %v1195_v58 = vpop.f32.mrb[15].mxu0  ;;  %v1220_v59 = vpop.f32.mrb[13].mxu1 }
 0x121   :  { %v871_v60 = vadd.f32 %v1193_v55, %v822_v34  ;;  %v1196_v61 = vadd.f32 %v1195_v58, %v1194_v56  ;;  %v1221_v62 = vadd.f32 %v1220_v59, %v1219_v57  ;;  %v1222_v63 = vpop.f32.mrb[14].mxu1 }
 0x122   :  { %v1223_v0 = vpop.f32.mrb[15].mxu1 }
 0x123   :  { %v874_v1 = vadd.f32 %v1196_v61, %v825_v36  ;;  %v1224_v33 = vadd.f32 %v1223_v0, %v1222_v63  ;;  %v920_v2 = vadd.f32 %v1221_v62, %v871_v60 }
 0x125   :  { %v923_v3 = vadd.f32 %v1224_v33, %v874_v1 }
 0x135   :  { %v1253_v4 = vpop.f32.mrb[16].mxu0 }
 0x136   :  { %v969_v5 = vadd.f32 %v1253_v4, %v920_v2  ;;  %v960_v6 = vpop.f32.mrb[17].mxu0 }
 0x137   :  { %v961_v7 = vadd.f32 %v960_v6, %v912_v51  ;;  %v1254_v8 = vpop.f32.mrb[18].mxu0 }
 0x138   :  { %v972_v9 = vadd.f32 %v1254_v8, %v923_v3  ;;  %v963_v10 = vpop.f32.mrb[19].mxu0  ;;  %v977_v12 = vmax.f32 %v969_v5, 0.0 }
 0x139   :  { %v964_v11 = vadd.f32 %v963_v10, %v915_v53  ;;  %v975_v14 = vmax.f32 %v961_v7, 0.0 }
 0x13a   :  { %v978_v13 = vmax.f32 %v972_v9, 0.0 }
 0x13b   :  { %v976_v15 = vmax.f32 %v964_v11, 0.0 }
 0x13c   :  { %v1110_v16 = vpack.c.bf16 %v978_v13, %v977_v12 }
 0x13d   :  { %v1105_v17 = vpack.c.bf16 %v976_v15, %v975_v14 }
 0x13e   :  { %1112 = vst [vmem:[%s1657_s3 + $0x8] sm:$0xff] %v1110_v16  }
 0x13f   :  { %1106 = vst [vmem:[%s1657_s3] sm:$0xff] %v1105_v17  }

</bundles_post_ra>
